<compile_context>
chip_gen: v7x
topology: tpu7x:2x2x1
jax: 0.10.0
libtpu: 0.0.40
codegen_flags: <defaults>
</compile_context>

<pallas_src>
import jax
import jax.numpy as jnp
from jax import lax
from jax.experimental import pallas as pl
from jax.experimental.pallas import tpu as pltpu

NUM_CLASSES = 6
N = 2                       # batch
CIN = 3                     # RGB
IMG = 96                    # 96/32 = 3 -> 3x3 feature map, so AvgPool2d(3) -> 1x1 (as the module assumes)
PATCH = 32                  # stride-32 downsampling stub (DenseNet total stride)
HO = IMG // PATCH           # 3
FEAT_C = 512                # per-backbone channels (stand-in for densenet161's 2208; multiple of 256
                            # so the 2-way FEAT_C split below stays 128-lane aligned)
NUM_FTRS = 4 * FEAT_C       # concat of 4 quadrants
K = CIN * PATCH * PATCH     # 3072 (patch row length)
GROUPS = 4 * N              # 8   (one pre-pooled row per (quadrant, image); multiple of 8 sublanes)
NSPLIT = 2                  # FEAT_C split == max TensorCores per chip (v7x)
FC_HALF = FEAT_C // NSPLIT  # 256


# ---------------- single fused kernel: (pre-pooled) embed + classifier partial ----------------
def _quadrant_kernel(xp_ref, we_ref, wc_ref, o_ref):
    # xp_ref: (GROUPS, K)                bf16  pre-pooled patch rows (grid-invariant)
    # we_ref: (K, FC_HALF)               bf16  this step's / core's column half of the embed weight
    # wc_ref: (4, NUM_CLASSES, FC_HALF)  f32   matching classifier channels (lane-dense)
    # o_ref : (1, N, NUM_CLASSES)        f32   partial logits for this channel half
    feat = jnp.dot(xp_ref[...], we_ref[...],
                   preferred_element_type=jnp.float32)            # (GROUPS, FC_HALF)
    out = jnp.zeros((N, NUM_CLASSES), jnp.float32)
    for q in range(4):                                            # static unroll, ~50 kFLOP total
        out = out + lax.dot_general(
            feat[q * N:(q + 1) * N, :], wc_ref[q],
            dimension_numbers=(((1,), (1,)), ((), ())),
            preferred_element_type=jnp.float32)
    o_ref[...] = out[None]


def fused_forward_call(xp, w_e, wc_g):
    return pl.pallas_call(
        _quadrant_kernel,
        out_shape=jax.ShapeDtypeStruct((NSPLIT, N, NUM_CLASSES), jnp.float32),
        grid_spec=pltpu.PrefetchScalarGridSpec(
            num_scalar_prefetch=0,
            grid=(NSPLIT,),
            in_specs=[
                pl.BlockSpec((GROUPS, K), lambda i: (0, 0)),                   # pooled rows (bf16)
                pl.BlockSpec((K, FC_HALF), lambda i: (0, i)),                  # embed weight half (bf16)
                pl.BlockSpec((4, NUM_CLASSES, FC_HALF), lambda i: (0, 0, i)),  # classifier half (f32)
            ],
            out_specs=pl.BlockSpec((1, N, NUM_CLASSES), lambda i: (i, 0, 0)),
        ),
        compiler_params=pltpu.CompilerParams(dimension_semantics=("parallel",)),
    )(xp, w_e, wc_g)


# ------------------------------------ glue (plain JAX) ------------------------------------
def pooled_patchify(patches):
    # Stack the 4 NCHW quadrants, cut stride-32 patches with (c, kh, kw) inner ordering, and
    # average the HO*HO patch rows of each (quadrant, image): AvgPool2d(3) commuted in front of
    # the linear patch embed.  One small XLA fusion; the kernel only re-reads 8x3072 bf16.
    x = jnp.stack(patches, axis=0)                        # (4, N, C, H, W)
    q, n, c, _, _ = x.shape
    x = x.reshape(q, n, c, HO, PATCH, HO, PATCH)
    x = x.transpose(0, 1, 3, 5, 2, 4, 6)                  # (q, n, ho, wo, c, kh, kw)
    x = x.reshape(q, n, HO * HO, c * PATCH * PATCH)
    return x.mean(axis=2).reshape(q * n, c * PATCH * PATCH)   # (GROUPS, K)


def quadrant_forward(p1, p2, p3, p4, params):
    w_e, b_e, w_c, b_c = params
    xp = pooled_patchify((p1, p2, p3, p4)).astype(jnp.bfloat16)        # (8, 3072) bf16
    # Lane-dense classifier regrouping: wc_g[q, o, c] == w_c[q*FEAT_C + c, o].
    wc_g = w_c.reshape(4, FEAT_C, NUM_CLASSES).transpose(0, 2, 1)
    # Fold the embed bias into the logit bias (exact in f32 while the trunk is linear).
    b_eff = b_c + jnp.tile(b_e, (1, 4)) @ w_c                          # (1, NUM_CLASSES)
    partial = fused_forward_call(xp, w_e.astype(jnp.bfloat16), wc_g)   # (2, N, NUM_CLASSES)
    return partial.sum(axis=0) + b_eff


def reference_forward(p1, p2, p3, p4, params):
    # Pure-JAX reference in the module's original op order: embed every patch, add b_e, pool,
    # concat over quadrants (torch.cat(dim=1)), classify — with the same bf16 embed operands.
    w_e, b_e, w_c, b_c = params
    x = jnp.stack((p1, p2, p3, p4), axis=0)
    q, n, c, _, _ = x.shape
    x = x.reshape(q, n, c, HO, PATCH, HO, PATCH).transpose(0, 1, 3, 5, 2, 4, 6)
    x = x.reshape(q * n * HO * HO, c * PATCH * PATCH).astype(jnp.bfloat16)
    feat = jnp.dot(x, w_e.astype(jnp.bfloat16), preferred_element_type=jnp.float32) + b_e
    feat = feat.reshape(4, N, HO * HO, FEAT_C)
    pooled = feat.mean(axis=2)                                            # (4, N, FEAT_C)
    pooled_cat = jnp.concatenate([pooled[i] for i in range(4)], axis=-1)  # (N, NUM_FTRS)
    return jnp.dot(pooled_cat, w_c) + b_c


def init_params(key):
    k1, k2, k3, k4 = jax.random.split(key, 4)
    w_e = jax.random.normal(k1, (K, FEAT_C), jnp.float32) * 0.02
    b_e = jax.random.normal(k2, (1, FEAT_C), jnp.float32) * 0.01
    w_c = jax.random.normal(k3, (NUM_FTRS, NUM_CLASSES), jnp.float32) * 0.02
    b_c = jax.random.normal(k4, (1, NUM_CLASSES), jnp.float32) * 0.01
    return w_e, b_e, w_c, b_c


if __name__ == "__main__":
    key = jax.random.PRNGKey(0)
    kp, kx = jax.random.split(key)
    params = init_params(kp)
    kxs = jax.random.split(kx, 4)
    p1, p2, p3, p4 = (jax.random.normal(k, (N, CIN, IMG, IMG), jnp.float32) for k in kxs)

    fwd = jax.jit(quadrant_forward)
    out = jax.block_until_ready(fwd(p1, p2, p3, p4, params))
    assert out.shape == (N, NUM_CLASSES) and out.dtype == jnp.float32

    ref = reference_forward(p1, p2, p3, p4, params)
    assert jnp.allclose(out, ref, rtol=1e-1, atol=1e-1)
    print("KERNEL_OK")
</pallas_src>

<mosaic_0001>
module attributes {stable_mosaic.version = 11 : i64} {
  func.func @_quadrant_kernel(%arg0: i32, %arg1: memref<8x3072xbf16, #tpu.memory_space<vmem>>, %arg2: memref<3072x256xbf16, #tpu.memory_space<vmem>>, %arg3: memref<4x6x256xf32, #tpu.memory_space<vmem>>, %arg4: memref<1x2x6xf32, #tpu.memory_space<vmem>>) attributes {dimension_semantics = [#tpu.dimension_semantics<parallel>], iteration_bounds = array<i64: 2>, scalar_prefetch = 0 : i64, scratch_operands = 0 : i64, tpu.core_type = #tpu.core_type<tc>, window_params = [{pipeline_mode = #tpu.pipeline_mode<synchronous>, transform_indices = @transform_0, window_bounds = array<i64: 8, 3072>}, {transform_indices = @transform_1, window_bounds = array<i64: 3072, 256>}, {transform_indices = @transform_2, window_bounds = array<i64: 4, 6, 256>}, {transform_indices = @transform_3, window_bounds = array<i64: 1, 2, 6>}]} {
    %c0 = arith.constant 0 : index
    %c0_0 = arith.constant 0 : index
    %0 = vector.load %arg1[%c0, %c0_0] : memref<8x3072xbf16, #tpu.memory_space<vmem>>, vector<8x3072xbf16>
    %c0_1 = arith.constant 0 : index
    %c0_2 = arith.constant 0 : index
    %1 = vector.load %arg2[%c0_1, %c0_2] : memref<3072x256xbf16, #tpu.memory_space<vmem>>, vector<3072x256xbf16>
    %cst = arith.constant dense<0.000000e+00> : vector<8x256xf32>
    %2 = tpu.matmul %0, %1, %cst {dimension_numbers = #tpu.dot_dimension_numbers<[1], [0], [0], [1], [0, 0, 1, 1], [], []>} : vector<8x3072xbf16>, vector<3072x256xbf16>, vector<8x256xf32> -> vector<8x256xf32>
    %cst_3 = arith.constant 0.000000e+00 : f32
    %3 = vector.broadcast %cst_3 : f32 to vector<2x6xf32>
    %4 = vector.extract_strided_slice %2 {offsets = [0, 0], sizes = [2, 256], strides = [1, 1]} : vector<8x256xf32> to vector<2x256xf32>
    %c0_4 = arith.constant 0 : index
    %c0_5 = arith.constant 0 : index
    %c0_6 = arith.constant 0 : index
    %5 = vector.load %arg3[%c0_4, %c0_5, %c0_6] : memref<4x6x256xf32, #tpu.memory_space<vmem>>, vector<1x6x256xf32>
    %6 = vector.shape_cast %5 : vector<1x6x256xf32> to vector<6x256xf32>
    %cst_7 = arith.constant dense<0.000000e+00> : vector<2x6xf32>
    %7 = tpu.matmul %4, %6, %cst_7 {dimension_numbers = #tpu.dot_dimension_numbers<[1], [1], [0], [0], [0, 0, 1, 0], [], []>} : vector<2x256xf32>, vector<6x256xf32>, vector<2x6xf32> -> vector<2x6xf32>
    %8 = arith.addf %3, %7 : vector<2x6xf32>
    %9 = vector.extract_strided_slice %2 {offsets = [2, 0], sizes = [2, 256], strides = [1, 1]} : vector<8x256xf32> to vector<2x256xf32>
    %c1 = arith.constant 1 : index
    %c0_8 = arith.constant 0 : index
    %c0_9 = arith.constant 0 : index
    %10 = vector.load %arg3[%c1, %c0_8, %c0_9] : memref<4x6x256xf32, #tpu.memory_space<vmem>>, vector<1x6x256xf32>
    %11 = vector.shape_cast %10 : vector<1x6x256xf32> to vector<6x256xf32>
    %cst_10 = arith.constant dense<0.000000e+00> : vector<2x6xf32>
    %12 = tpu.matmul %9, %11, %cst_10 {dimension_numbers = #tpu.dot_dimension_numbers<[1], [1], [0], [0], [0, 0, 1, 0], [], []>} : vector<2x256xf32>, vector<6x256xf32>, vector<2x6xf32> -> vector<2x6xf32>
    %13 = arith.addf %8, %12 : vector<2x6xf32>
    %14 = vector.extract_strided_slice %2 {offsets = [4, 0], sizes = [2, 256], strides = [1, 1]} : vector<8x256xf32> to vector<2x256xf32>
    %c2 = arith.constant 2 : index
    %c0_11 = arith.constant 0 : index
    %c0_12 = arith.constant 0 : index
    %15 = vector.load %arg3[%c2, %c0_11, %c0_12] : memref<4x6x256xf32, #tpu.memory_space<vmem>>, vector<1x6x256xf32>
    %16 = vector.shape_cast %15 : vector<1x6x256xf32> to vector<6x256xf32>
    %cst_13 = arith.constant dense<0.000000e+00> : vector<2x6xf32>
    %17 = tpu.matmul %14, %16, %cst_13 {dimension_numbers = #tpu.dot_dimension_numbers<[1], [1], [0], [0], [0, 0, 1, 0], [], []>} : vector<2x256xf32>, vector<6x256xf32>, vector<2x6xf32> -> vector<2x6xf32>
    %18 = arith.addf %13, %17 : vector<2x6xf32>
    %19 = vector.extract_strided_slice %2 {offsets = [6, 0], sizes = [2, 256], strides = [1, 1]} : vector<8x256xf32> to vector<2x256xf32>
    %c3 = arith.constant 3 : index
    %c0_14 = arith.constant 0 : index
    %c0_15 = arith.constant 0 : index
    %20 = vector.load %arg3[%c3, %c0_14, %c0_15] : memref<4x6x256xf32, #tpu.memory_space<vmem>>, vector<1x6x256xf32>
    %21 = vector.shape_cast %20 : vector<1x6x256xf32> to vector<6x256xf32>
    %cst_16 = arith.constant dense<0.000000e+00> : vector<2x6xf32>
    %22 = tpu.matmul %19, %21, %cst_16 {dimension_numbers = #tpu.dot_dimension_numbers<[1], [1], [0], [0], [0, 0, 1, 0], [], []>} : vector<2x256xf32>, vector<6x256xf32>, vector<2x6xf32> -> vector<2x6xf32>
    %23 = arith.addf %18, %22 : vector<2x6xf32>
    %24 = vector.shape_cast %23 : vector<2x6xf32> to vector<1x2x6xf32>
    %c0_17 = arith.constant 0 : index
    %c0_18 = arith.constant 0 : index
    %c0_19 = arith.constant 0 : index
    %25 = vector.load %arg4[%c0_17, %c0_18, %c0_19] : memref<1x2x6xf32, #tpu.memory_space<vmem>>, vector<1x2x6xf32>
    tpu.vector_store %arg4[%c0_17, %c0_18, %c0_19], %24 {strides = array<i32>} : memref<1x2x6xf32, #tpu.memory_space<vmem>>, vector<1x2x6xf32>,
    return
  }
  func.func @transform_0(%arg0: i32) -> (i32, i32) {
    %c0_i32 = arith.constant 0 : i32
    %c0_i32_0 = arith.constant 0 : i32
    %c0_i32_1 = arith.constant 0 : i32
    return %c0_i32, %c0_i32_0 : i32, i32
  }
  func.func @transform_1(%arg0: i32) -> (i32, i32) {
    %c0_i32 = arith.constant 0 : i32
    %c0_i32_0 = arith.constant 0 : i32
    return %c0_i32, %arg0 : i32, i32
  }
  func.func @transform_2(%arg0: i32) -> (i32, i32, i32) {
    %c0_i32 = arith.constant 0 : i32
    %c0_i32_0 = arith.constant 0 : i32
    %c0_i32_1 = arith.constant 0 : i32
    return %c0_i32, %c0_i32_0, %arg0 : i32, i32, i32
  }
  func.func @transform_3(%arg0: i32) -> (i32, i32, i32) {
    %c0_i32 = arith.constant 0 : i32
    %c0_i32_0 = arith.constant 0 : i32
    %c0_i32_1 = arith.constant 0 : i32
    return %arg0, %c0_i32, %c0_i32_0 : i32, i32, i32
  }
}

</mosaic_0001>

<bundles_post_ra>
// kernel: quadrant_forward.1
= control target key start
LH: loop header
LB: loop body
LE: loop exit
PB: predicated region body
PF: predicated region fallthrough
CT: control target
= control target key end

     0   :  { %s6217_s12 = smov 0   ;;  %s6219_s13 = smov 0   ;;  %s7564_s0 = inlined_call_operand.vmem [shape: bf16[8,3072], index: 0, kind: input, shape index: {}]   ;;  %s7565_s1 = inlined_call_operand.vmem [shape: bf16[3072,512], index: 1, kind: input, shape index: {}]   ;;  %s7566_s2 = inlined_call_operand.vmem [shape: f32[4,6,512], index: 2, kind: input, shape index: {}]   ;;  %s7567_s3 = inlined_call_operand.vmem [shape: f32[2,2,6], index: 3, kind: output, shape index: {}]  }
   0x1   :  { %s6221_s14 = smov 0  }
   0x2 LB: > { %s5070_s15 = sadd.s32 4294967295, %s6195_s14   ;;  %s6234_s16 = sadd.s32 1, %s6195_s14   ;;  %s6195_s14 = sphi %s6221_s14, %s7571_s14   ;;  %s6191_s13 = sphi %s6219_s13, %s7570_s13   ;;  %s6187_s12 = sphi %s6217_s12, %s7569_s12  }
   0x3   : > { %s38_s17 = ssub.s32 %s6195_s14, %s6234_s16  ;;  %s41_s18 = sadd.s32 1, %s6191_s13 }
   0x4   : > { %p39_p0 = scmp.eq.s32.totalorder %s38_s17, 0  ;;  %p48_p1 = scmp.ne.s32.totalorder %s6191_s13, %s6187_s12 }
   0x5   : > { %p49_p2 = scmp.eq.s32.totalorder %s6195_s14, 0  ;;  %p5073_p4 = scmp.ge.s32.totalorder %s6195_s14, 2 }
   0x6   : > { %s6243_s19 = scalar_select %p39_p0, %s6191_s13, %s41_s18  }
   0x7   : > { %p6245_p3 = por %p49_p2, %p48_p1  ;;  %129 = sbr.rel (%p5073_p4) target bundleno = 218 (0xda), region = 20 }
   0xe   : > { %132 = sbr.rel (!%p6245_p3) target bundleno = 210 (0xd2), region = 24  ;;  %s134_s21 = sand.u32 (%p6245_p3), 1, %s6191_s13  }
   0xf   : > { %s5498_s22 = sshll.u32 (%p6245_p3), %s6195_s14, 3  ;;  %s5547_s23 = smul.u32 (%p6245_p3), 3072, %s134_s21 }
  0x10   : > { %s6257_s26 = scalar_lea.vmem (%p6245_p3), %s7565_s1, %s5498_s22 }
  0x11   : > { %v933_v0 = vld [vmem:[%s6257_s26] sm:$0xff] (%p6245_p3)  ;;  %v935_v1 = vld [vmem:[%s6257_s26 + $0x10] sm:$0xff] (%p6245_p3)  ;;  %s6265_s27 = scalar_lea.vmem (%p6245_p3), [#allocation2], %s5547_s23 }
  0x12   : > { %v937_v2 = vld [vmem:[%s6257_s26 + $0x20] sm:$0xff] (%p6245_p3)  ;;  %v939_v3 = vld [vmem:[%s6257_s26 + $0x30] sm:$0xff] (%p6245_p3)  ;;  %934 = vst [vmem:[%s6265_s27] sm:$0xff] (%p6245_p3), %v933_v0  ;;  %936 = vst [vmem:[%s6265_s27 + $0x8] sm:$0xff] (%p6245_p3), %v935_v1 }
  0x13   : > { %v941_v4 = vld [vmem:[%s6257_s26 + $0x40] sm:$0xff] (%p6245_p3)  ;;  %v943_v5 = vld [vmem:[%s6257_s26 + $0x50] sm:$0xff] (%p6245_p3)  ;;  %938 = vst [vmem:[%s6265_s27 + $0x10] sm:$0xff] (%p6245_p3), %v937_v2  ;;  %940 = vst [vmem:[%s6265_s27 + $0x18] sm:$0xff] (%p6245_p3), %v939_v3 }
  0x14   : > { %942 = vst [vmem:[%s6265_s27 + $0x20] sm:$0xff] (%p6245_p3), %v941_v4  ;;  %944 = vst [vmem:[%s6265_s27 + $0x28] sm:$0xff] (%p6245_p3), %v943_v5  ;;  %v945_v6 = vld [vmem:[%s6257_s26 + $0x60] sm:$0xff] (%p6245_p3)  ;;  %v947_v7 = vld [vmem:[%s6257_s26 + $0x70] sm:$0xff] (%p6245_p3) }
  0x15   : > { %v949_v8 = vld [vmem:[%s6257_s26 + $0x80] sm:$0xff]  ;;  %946 = vst [vmem:[%s6265_s27 + $0x30] sm:$0xff] %v945_v6  ;;  %948 = vst [vmem:[%s6265_s27 + $0x38] sm:$0xff] %v947_v7  ;;  %v951_v9 = vld [vmem:[%s6257_s26 + $0x90] sm:$0xff] }
  0x16   : > { %950 = vst [vmem:[%s6265_s27 + $0x40] sm:$0xff] %v949_v8  ;;  %v953_v10 = vld [vmem:[%s6257_s26 + $0xa0] sm:$0xff]  ;;  %v955_v11 = vld [vmem:[%s6257_s26 + $0xb0] sm:$0xff]  ;;  %952 = vst [vmem:[%s6265_s27 + $0x48] sm:$0xff] %v951_v9 }
  0x17   : > { %954 = vst [vmem:[%s6265_s27 + $0x50] sm:$0xff] %v953_v10  ;;  %956 = vst [vmem:[%s6265_s27 + $0x58] sm:$0xff] %v955_v11  ;;  %v957_v12 = vld [vmem:[%s6257_s26 + $0xc0] sm:$0xff]  ;;  %v959_v13 = vld [vmem:[%s6257_s26 + $0xd0] sm:$0xff] }
  0x18   : > { %v961_v14 = vld [vmem:[%s6257_s26 + $0xe0] sm:$0xff]  ;;  %958 = vst [vmem:[%s6265_s27 + $0x60] sm:$0xff] %v957_v12  ;;  %960 = vst [vmem:[%s6265_s27 + $0x68] sm:$0xff] %v959_v13  ;;  %v963_v15 = vld [vmem:[%s6257_s26 + $0xf0] sm:$0xff] }
  0x19   : > { %962 = vst [vmem:[%s6265_s27 + $0x70] sm:$0xff] %v961_v14  ;;  %v965_v16 = vld [vmem:[%s6257_s26 + $0x100] sm:$0xff]  ;;  %v967_v17 = vld [vmem:[%s6257_s26 + $0x110] sm:$0xff]  ;;  %964 = vst [vmem:[%s6265_s27 + $0x78] sm:$0xff] %v963_v15 }
  0x1a   : > { %966 = vst [vmem:[%s6265_s27 + $0x80] sm:$0xff] %v965_v16  ;;  %968 = vst [vmem:[%s6265_s27 + $0x88] sm:$0xff] %v967_v17  ;;  %v969_v18 = vld [vmem:[%s6257_s26 + $0x120] sm:$0xff]  ;;  %v971_v19 = vld [vmem:[%s6257_s26 + $0x130] sm:$0xff] }
  0x1b   : > { %v973_v20 = vld [vmem:[%s6257_s26 + $0x140] sm:$0xff]  ;;  %970 = vst [vmem:[%s6265_s27 + $0x90] sm:$0xff] %v969_v18  ;;  %972 = vst [vmem:[%s6265_s27 + $0x98] sm:$0xff] %v971_v19  ;;  %v975_v21 = vld [vmem:[%s6257_s26 + $0x150] sm:$0xff] }
  0x1c   : > { %974 = vst [vmem:[%s6265_s27 + $0xa0] sm:$0xff] %v973_v20  ;;  %v977_v22 = vld [vmem:[%s6257_s26 + $0x160] sm:$0xff]  ;;  %v979_v23 = vld [vmem:[%s6257_s26 + $0x170] sm:$0xff]  ;;  %976 = vst [vmem:[%s6265_s27 + $0xa8] sm:$0xff] %v975_v21 }
  0x1d   : > { %978 = vst [vmem:[%s6265_s27 + $0xb0] sm:$0xff] %v977_v22  ;;  %980 = vst [vmem:[%s6265_s27 + $0xb8] sm:$0xff] %v979_v23  ;;  %v981_v24 = vld [vmem:[%s6257_s26 + $0x180] sm:$0xff]  ;;  %v983_v25 = vld [vmem:[%s6257_s26 + $0x190] sm:$0xff] }
  0x1e   : > { %v985_v26 = vld [vmem:[%s6257_s26 + $0x1a0] sm:$0xff]  ;;  %982 = vst [vmem:[%s6265_s27 + $0xc0] sm:$0xff] %v981_v24  ;;  %984 = vst [vmem:[%s6265_s27 + $0xc8] sm:$0xff] %v983_v25  ;;  %v987_v27 = vld [vmem:[%s6257_s26 + $0x1b0] sm:$0xff] }
  0x1f   : > { %986 = vst [vmem:[%s6265_s27 + $0xd0] sm:$0xff] %v985_v26  ;;  %v989_v28 = vld [vmem:[%s6257_s26 + $0x1c0] sm:$0xff]  ;;  %v991_v29 = vld [vmem:[%s6257_s26 + $0x1d0] sm:$0xff]  ;;  %988 = vst [vmem:[%s6265_s27 + $0xd8] sm:$0xff] %v987_v27 }
  0x20   : > { %990 = vst [vmem:[%s6265_s27 + $0xe0] sm:$0xff] %v989_v28  ;;  %992 = vst [vmem:[%s6265_s27 + $0xe8] sm:$0xff] %v991_v29  ;;  %v993_v30 = vld [vmem:[%s6257_s26 + $0x1e0] sm:$0xff]  ;;  %v995_v31 = vld [vmem:[%s6257_s26 + $0x1f0] sm:$0xff] }
  0x21   : > { %v997_v32 = vld [vmem:[%s6257_s26 + $0x200] sm:$0xff]  ;;  %994 = vst [vmem:[%s6265_s27 + $0xf0] sm:$0xff] %v993_v30  ;;  %996 = vst [vmem:[%s6265_s27 + $0xf8] sm:$0xff] %v995_v31  ;;  %v999_v33 = vld [vmem:[%s6257_s26 + $0x210] sm:$0xff] }
  0x22   : > { %998 = vst [vmem:[%s6265_s27 + $0x100] sm:$0xff] %v997_v32  ;;  %v1001_v34 = vld [vmem:[%s6257_s26 + $0x220] sm:$0xff]  ;;  %v1003_v35 = vld [vmem:[%s6257_s26 + $0x230] sm:$0xff]  ;;  %1000 = vst [vmem:[%s6265_s27 + $0x108] sm:$0xff] %v999_v33 }
  0x23   : > { %1002 = vst [vmem:[%s6265_s27 + $0x110] sm:$0xff] %v1001_v34  ;;  %1004 = vst [vmem:[%s6265_s27 + $0x118] sm:$0xff] %v1003_v35  ;;  %v1005_v36 = vld [vmem:[%s6257_s26 + $0x240] sm:$0xff]  ;;  %v1007_v37 = vld [vmem:[%s6257_s26 + $0x250] sm:$0xff] }
  0x24   : > { %v1009_v38 = vld [vmem:[%s6257_s26 + $0x260] sm:$0xff]  ;;  %1006 = vst [vmem:[%s6265_s27 + $0x120] sm:$0xff] %v1005_v36  ;;  %1008 = vst [vmem:[%s6265_s27 + $0x128] sm:$0xff] %v1007_v37  ;;  %v1011_v39 = vld [vmem:[%s6257_s26 + $0x270] sm:$0xff] }
  0x25   : > { %1010 = vst [vmem:[%s6265_s27 + $0x130] sm:$0xff] %v1009_v38  ;;  %v1013_v40 = vld [vmem:[%s6257_s26 + $0x280] sm:$0xff]  ;;  %v1015_v41 = vld [vmem:[%s6257_s26 + $0x290] sm:$0xff]  ;;  %1012 = vst [vmem:[%s6265_s27 + $0x138] sm:$0xff] %v1011_v39 }
  0x26   : > { %1014 = vst [vmem:[%s6265_s27 + $0x140] sm:$0xff] %v1013_v40  ;;  %1016 = vst [vmem:[%s6265_s27 + $0x148] sm:$0xff] %v1015_v41  ;;  %v1017_v42 = vld [vmem:[%s6257_s26 + $0x2a0] sm:$0xff]  ;;  %v1019_v43 = vld [vmem:[%s6257_s26 + $0x2b0] sm:$0xff] }
  0x27   : > { %v1021_v44 = vld [vmem:[%s6257_s26 + $0x2c0] sm:$0xff]  ;;  %1018 = vst [vmem:[%s6265_s27 + $0x150] sm:$0xff] %v1017_v42  ;;  %1020 = vst [vmem:[%s6265_s27 + $0x158] sm:$0xff] %v1019_v43  ;;  %v1023_v45 = vld [vmem:[%s6257_s26 + $0x2d0] sm:$0xff] }
  0x28   : > { %1022 = vst [vmem:[%s6265_s27 + $0x160] sm:$0xff] %v1021_v44  ;;  %v1025_v46 = vld [vmem:[%s6257_s26 + $0x2e0] sm:$0xff]  ;;  %v1027_v47 = vld [vmem:[%s6257_s26 + $0x2f0] sm:$0xff]  ;;  %1024 = vst [vmem:[%s6265_s27 + $0x168] sm:$0xff] %v1023_v45 }
  0x29   : > { %1026 = vst [vmem:[%s6265_s27 + $0x170] sm:$0xff] %v1025_v46  ;;  %1028 = vst [vmem:[%s6265_s27 + $0x178] sm:$0xff] %v1027_v47  ;;  %v1029_v48 = vld [vmem:[%s6257_s26 + $0x300] sm:$0xff]  ;;  %v1031_v49 = vld [vmem:[%s6257_s26 + $0x310] sm:$0xff] }
  0x2a   : > { %v1033_v50 = vld [vmem:[%s6257_s26 + $0x320] sm:$0xff]  ;;  %1030 = vst [vmem:[%s6265_s27 + $0x180] sm:$0xff] %v1029_v48  ;;  %1032 = vst [vmem:[%s6265_s27 + $0x188] sm:$0xff] %v1031_v49  ;;  %v1035_v51 = vld [vmem:[%s6257_s26 + $0x330] sm:$0xff] }
  0x2b   : > { %1034 = vst [vmem:[%s6265_s27 + $0x190] sm:$0xff] %v1033_v50  ;;  %v1037_v52 = vld [vmem:[%s6257_s26 + $0x340] sm:$0xff]  ;;  %v1039_v53 = vld [vmem:[%s6257_s26 + $0x350] sm:$0xff]  ;;  %1036 = vst [vmem:[%s6265_s27 + $0x198] sm:$0xff] %v1035_v51 }
  0x2c   : > { %1038 = vst [vmem:[%s6265_s27 + $0x1a0] sm:$0xff] %v1037_v52  ;;  %1040 = vst [vmem:[%s6265_s27 + $0x1a8] sm:$0xff] %v1039_v53  ;;  %v1041_v54 = vld [vmem:[%s6257_s26 + $0x360] sm:$0xff]  ;;  %v1043_v55 = vld [vmem:[%s6257_s26 + $0x370] sm:$0xff] }
  0x2d   : > { %v1045_v56 = vld [vmem:[%s6257_s26 + $0x380] sm:$0xff]  ;;  %1042 = vst [vmem:[%s6265_s27 + $0x1b0] sm:$0xff] %v1041_v54  ;;  %1044 = vst [vmem:[%s6265_s27 + $0x1b8] sm:$0xff] %v1043_v55  ;;  %v1047_v57 = vld [vmem:[%s6257_s26 + $0x390] sm:$0xff] }
  0x2e   : > { %1046 = vst [vmem:[%s6265_s27 + $0x1c0] sm:$0xff] %v1045_v56  ;;  %v1049_v58 = vld [vmem:[%s6257_s26 + $0x3a0] sm:$0xff]  ;;  %v1051_v59 = vld [vmem:[%s6257_s26 + $0x3b0] sm:$0xff]  ;;  %1048 = vst [vmem:[%s6265_s27 + $0x1c8] sm:$0xff] %v1047_v57 }
  0x2f   : > { %1050 = vst [vmem:[%s6265_s27 + $0x1d0] sm:$0xff] %v1049_v58  ;;  %1052 = vst [vmem:[%s6265_s27 + $0x1d8] sm:$0xff] %v1051_v59  ;;  %v1053_v60 = vld [vmem:[%s6257_s26 + $0x3c0] sm:$0xff]  ;;  %v1055_v61 = vld [vmem:[%s6257_s26 + $0x3d0] sm:$0xff] }
  0x30   : > { %v1057_v62 = vld [vmem:[%s6257_s26 + $0x3e0] sm:$0xff]  ;;  %1054 = vst [vmem:[%s6265_s27 + $0x1e0] sm:$0xff] %v1053_v60  ;;  %1056 = vst [vmem:[%s6265_s27 + $0x1e8] sm:$0xff] %v1055_v61  ;;  %v1059_v63 = vld [vmem:[%s6257_s26 + $0x3f0] sm:$0xff] }
  0x31   : > { %1058 = vst [vmem:[%s6265_s27 + $0x1f0] sm:$0xff] %v1057_v62  ;;  %v1061_v0 = vld [vmem:[%s6257_s26 + $0x400] sm:$0xff]  ;;  %v1063_v1 = vld [vmem:[%s6257_s26 + $0x410] sm:$0xff]  ;;  %1060 = vst [vmem:[%s6265_s27 + $0x1f8] sm:$0xff] %v1059_v63 }
  0x32   : > { %1062 = vst [vmem:[%s6265_s27 + $0x200] sm:$0xff] %v1061_v0  ;;  %1064 = vst [vmem:[%s6265_s27 + $0x208] sm:$0xff] %v1063_v1  ;;  %v1065_v2 = vld [vmem:[%s6257_s26 + $0x420] sm:$0xff]  ;;  %v1067_v3 = vld [vmem:[%s6257_s26 + $0x430] sm:$0xff] }
  0x33   : > { %v1069_v4 = vld [vmem:[%s6257_s26 + $0x440] sm:$0xff]  ;;  %1066 = vst [vmem:[%s6265_s27 + $0x210] sm:$0xff] %v1065_v2  ;;  %1068 = vst [vmem:[%s6265_s27 + $0x218] sm:$0xff] %v1067_v3  ;;  %v1071_v5 = vld [vmem:[%s6257_s26 + $0x450] sm:$0xff] }
  0x34   : > { %1070 = vst [vmem:[%s6265_s27 + $0x220] sm:$0xff] %v1069_v4  ;;  %v1073_v6 = vld [vmem:[%s6257_s26 + $0x460] sm:$0xff]  ;;  %v1075_v7 = vld [vmem:[%s6257_s26 + $0x470] sm:$0xff]  ;;  %1072 = vst [vmem:[%s6265_s27 + $0x228] sm:$0xff] %v1071_v5 }
  0x35   : > { %1074 = vst [vmem:[%s6265_s27 + $0x230] sm:$0xff] %v1073_v6  ;;  %1076 = vst [vmem:[%s6265_s27 + $0x238] sm:$0xff] %v1075_v7  ;;  %v1077_v8 = vld [vmem:[%s6257_s26 + $0x480] sm:$0xff]  ;;  %v1079_v9 = vld [vmem:[%s6257_s26 + $0x490] sm:$0xff] }
  0x36   : > { %v1081_v10 = vld [vmem:[%s6257_s26 + $0x4a0] sm:$0xff]  ;;  %1078 = vst [vmem:[%s6265_s27 + $0x240] sm:$0xff] %v1077_v8  ;;  %1080 = vst [vmem:[%s6265_s27 + $0x248] sm:$0xff] %v1079_v9  ;;  %v1083_v11 = vld [vmem:[%s6257_s26 + $0x4b0] sm:$0xff] }
  0x37   : > { %1082 = vst [vmem:[%s6265_s27 + $0x250] sm:$0xff] %v1081_v10  ;;  %v1085_v12 = vld [vmem:[%s6257_s26 + $0x4c0] sm:$0xff]  ;;  %v1087_v13 = vld [vmem:[%s6257_s26 + $0x4d0] sm:$0xff]  ;;  %1084 = vst [vmem:[%s6265_s27 + $0x258] sm:$0xff] %v1083_v11 }
  0x38   : > { %1086 = vst [vmem:[%s6265_s27 + $0x260] sm:$0xff] %v1085_v12  ;;  %1088 = vst [vmem:[%s6265_s27 + $0x268] sm:$0xff] %v1087_v13  ;;  %v1089_v14 = vld [vmem:[%s6257_s26 + $0x4e0] sm:$0xff]  ;;  %v1091_v15 = vld [vmem:[%s6257_s26 + $0x4f0] sm:$0xff] }
  0x39   : > { %v1093_v16 = vld [vmem:[%s6257_s26 + $0x500] sm:$0xff]  ;;  %1090 = vst [vmem:[%s6265_s27 + $0x270] sm:$0xff] %v1089_v14  ;;  %1092 = vst [vmem:[%s6265_s27 + $0x278] sm:$0xff] %v1091_v15  ;;  %v1095_v17 = vld [vmem:[%s6257_s26 + $0x510] sm:$0xff] }
  0x3a   : > { %1094 = vst [vmem:[%s6265_s27 + $0x280] sm:$0xff] %v1093_v16  ;;  %v1097_v18 = vld [vmem:[%s6257_s26 + $0x520] sm:$0xff]  ;;  %v1099_v19 = vld [vmem:[%s6257_s26 + $0x530] sm:$0xff]  ;;  %1096 = vst [vmem:[%s6265_s27 + $0x288] sm:$0xff] %v1095_v17 }
  0x3b   : > { %1098 = vst [vmem:[%s6265_s27 + $0x290] sm:$0xff] %v1097_v18  ;;  %1100 = vst [vmem:[%s6265_s27 + $0x298] sm:$0xff] %v1099_v19  ;;  %v1101_v20 = vld [vmem:[%s6257_s26 + $0x540] sm:$0xff]  ;;  %v1103_v21 = vld [vmem:[%s6257_s26 + $0x550] sm:$0xff] }
  0x3c   : > { %v1105_v22 = vld [vmem:[%s6257_s26 + $0x560] sm:$0xff]  ;;  %1102 = vst [vmem:[%s6265_s27 + $0x2a0] sm:$0xff] %v1101_v20  ;;  %1104 = vst [vmem:[%s6265_s27 + $0x2a8] sm:$0xff] %v1103_v21  ;;  %v1107_v23 = vld [vmem:[%s6257_s26 + $0x570] sm:$0xff] }
  0x3d   : > { %1106 = vst [vmem:[%s6265_s27 + $0x2b0] sm:$0xff] %v1105_v22  ;;  %v1109_v24 = vld [vmem:[%s6257_s26 + $0x580] sm:$0xff]  ;;  %v1111_v25 = vld [vmem:[%s6257_s26 + $0x590] sm:$0xff]  ;;  %1108 = vst [vmem:[%s6265_s27 + $0x2b8] sm:$0xff] %v1107_v23 }
  0x3e   : > { %1110 = vst [vmem:[%s6265_s27 + $0x2c0] sm:$0xff] %v1109_v24  ;;  %1112 = vst [vmem:[%s6265_s27 + $0x2c8] sm:$0xff] %v1111_v25  ;;  %v1113_v26 = vld [vmem:[%s6257_s26 + $0x5a0] sm:$0xff]  ;;  %v1115_v27 = vld [vmem:[%s6257_s26 + $0x5b0] sm:$0xff] }
  0x3f   : > { %v1117_v28 = vld [vmem:[%s6257_s26 + $0x5c0] sm:$0xff]  ;;  %1114 = vst [vmem:[%s6265_s27 + $0x2d0] sm:$0xff] %v1113_v26  ;;  %1116 = vst [vmem:[%s6265_s27 + $0x2d8] sm:$0xff] %v1115_v27  ;;  %v1119_v29 = vld [vmem:[%s6257_s26 + $0x5d0] sm:$0xff] }
  0x40   : > { %1118 = vst [vmem:[%s6265_s27 + $0x2e0] sm:$0xff] %v1117_v28  ;;  %v1121_v30 = vld [vmem:[%s6257_s26 + $0x5e0] sm:$0xff]  ;;  %v1123_v31 = vld [vmem:[%s6257_s26 + $0x5f0] sm:$0xff]  ;;  %1120 = vst [vmem:[%s6265_s27 + $0x2e8] sm:$0xff] %v1119_v29 }
  0x41   : > { %1122 = vst [vmem:[%s6265_s27 + $0x2f0] sm:$0xff] %v1121_v30  ;;  %1124 = vst [vmem:[%s6265_s27 + $0x2f8] sm:$0xff] %v1123_v31  ;;  %v1125_v32 = vld [vmem:[%s6257_s26 + $0x600] sm:$0xff]  ;;  %v1127_v33 = vld [vmem:[%s6257_s26 + $0x610] sm:$0xff] }
  0x42   : > { %v1129_v34 = vld [vmem:[%s6257_s26 + $0x620] sm:$0xff]  ;;  %1126 = vst [vmem:[%s6265_s27 + $0x300] sm:$0xff] %v1125_v32  ;;  %1128 = vst [vmem:[%s6265_s27 + $0x308] sm:$0xff] %v1127_v33  ;;  %v1131_v35 = vld [vmem:[%s6257_s26 + $0x630] sm:$0xff] }
  0x43   : > { %1130 = vst [vmem:[%s6265_s27 + $0x310] sm:$0xff] %v1129_v34  ;;  %v1133_v36 = vld [vmem:[%s6257_s26 + $0x640] sm:$0xff]  ;;  %v1135_v37 = vld [vmem:[%s6257_s26 + $0x650] sm:$0xff]  ;;  %1132 = vst [vmem:[%s6265_s27 + $0x318] sm:$0xff] %v1131_v35 }
  0x44   : > { %1134 = vst [vmem:[%s6265_s27 + $0x320] sm:$0xff] %v1133_v36  ;;  %1136 = vst [vmem:[%s6265_s27 + $0x328] sm:$0xff] %v1135_v37  ;;  %v1137_v38 = vld [vmem:[%s6257_s26 + $0x660] sm:$0xff]  ;;  %v1139_v39 = vld [vmem:[%s6257_s26 + $0x670] sm:$0xff] }
  0x45   : > { %v1141_v40 = vld [vmem:[%s6257_s26 + $0x680] sm:$0xff]  ;;  %1138 = vst [vmem:[%s6265_s27 + $0x330] sm:$0xff] %v1137_v38  ;;  %1140 = vst [vmem:[%s6265_s27 + $0x338] sm:$0xff] %v1139_v39  ;;  %v1143_v41 = vld [vmem:[%s6257_s26 + $0x690] sm:$0xff] }
  0x46   : > { %1142 = vst [vmem:[%s6265_s27 + $0x340] sm:$0xff] %v1141_v40  ;;  %v1145_v42 = vld [vmem:[%s6257_s26 + $0x6a0] sm:$0xff]  ;;  %v1147_v43 = vld [vmem:[%s6257_s26 + $0x6b0] sm:$0xff]  ;;  %1144 = vst [vmem:[%s6265_s27 + $0x348] sm:$0xff] %v1143_v41 }
  0x47   : > { %1146 = vst [vmem:[%s6265_s27 + $0x350] sm:$0xff] %v1145_v42  ;;  %1148 = vst [vmem:[%s6265_s27 + $0x358] sm:$0xff] %v1147_v43  ;;  %v1149_v44 = vld [vmem:[%s6257_s26 + $0x6c0] sm:$0xff]  ;;  %v1151_v45 = vld [vmem:[%s6257_s26 + $0x6d0] sm:$0xff] }
  0x48   : > { %v1153_v46 = vld [vmem:[%s6257_s26 + $0x6e0] sm:$0xff]  ;;  %1150 = vst [vmem:[%s6265_s27 + $0x360] sm:$0xff] %v1149_v44  ;;  %1152 = vst [vmem:[%s6265_s27 + $0x368] sm:$0xff] %v1151_v45  ;;  %v1155_v47 = vld [vmem:[%s6257_s26 + $0x6f0] sm:$0xff] }
  0x49   : > { %1154 = vst [vmem:[%s6265_s27 + $0x370] sm:$0xff] %v1153_v46  ;;  %v1157_v48 = vld [vmem:[%s6257_s26 + $0x700] sm:$0xff]  ;;  %v1159_v49 = vld [vmem:[%s6257_s26 + $0x710] sm:$0xff]  ;;  %1156 = vst [vmem:[%s6265_s27 + $0x378] sm:$0xff] %v1155_v47 }
  0x4a   : > { %1158 = vst [vmem:[%s6265_s27 + $0x380] sm:$0xff] %v1157_v48  ;;  %1160 = vst [vmem:[%s6265_s27 + $0x388] sm:$0xff] %v1159_v49  ;;  %v1161_v50 = vld [vmem:[%s6257_s26 + $0x720] sm:$0xff]  ;;  %v1163_v51 = vld [vmem:[%s6257_s26 + $0x730] sm:$0xff] }
  0x4b   : > { %v1165_v52 = vld [vmem:[%s6257_s26 + $0x740] sm:$0xff]  ;;  %1162 = vst [vmem:[%s6265_s27 + $0x390] sm:$0xff] %v1161_v50  ;;  %1164 = vst [vmem:[%s6265_s27 + $0x398] sm:$0xff] %v1163_v51  ;;  %v1167_v53 = vld [vmem:[%s6257_s26 + $0x750] sm:$0xff] }
  0x4c   : > { %1166 = vst [vmem:[%s6265_s27 + $0x3a0] sm:$0xff] %v1165_v52  ;;  %v1169_v54 = vld [vmem:[%s6257_s26 + $0x760] sm:$0xff]  ;;  %v1171_v55 = vld [vmem:[%s6257_s26 + $0x770] sm:$0xff]  ;;  %1168 = vst [vmem:[%s6265_s27 + $0x3a8] sm:$0xff] %v1167_v53 }
  0x4d   : > { %1170 = vst [vmem:[%s6265_s27 + $0x3b0] sm:$0xff] %v1169_v54  ;;  %1172 = vst [vmem:[%s6265_s27 + $0x3b8] sm:$0xff] %v1171_v55  ;;  %v1173_v56 = vld [vmem:[%s6257_s26 + $0x780] sm:$0xff]  ;;  %v1175_v57 = vld [vmem:[%s6257_s26 + $0x790] sm:$0xff] }
  0x4e   : > { %v1177_v58 = vld [vmem:[%s6257_s26 + $0x7a0] sm:$0xff]  ;;  %1174 = vst [vmem:[%s6265_s27 + $0x3c0] sm:$0xff] %v1173_v56  ;;  %1176 = vst [vmem:[%s6265_s27 + $0x3c8] sm:$0xff] %v1175_v57  ;;  %v1179_v59 = vld [vmem:[%s6257_s26 + $0x7b0] sm:$0xff] }
  0x4f   : > { %1178 = vst [vmem:[%s6265_s27 + $0x3d0] sm:$0xff] %v1177_v58  ;;  %v1181_v60 = vld [vmem:[%s6257_s26 + $0x7c0] sm:$0xff]  ;;  %v1183_v61 = vld [vmem:[%s6257_s26 + $0x7d0] sm:$0xff]  ;;  %1180 = vst [vmem:[%s6265_s27 + $0x3d8] sm:$0xff] %v1179_v59 }
  0x50   : > { %1182 = vst [vmem:[%s6265_s27 + $0x3e0] sm:$0xff] %v1181_v60  ;;  %1184 = vst [vmem:[%s6265_s27 + $0x3e8] sm:$0xff] %v1183_v61  ;;  %v1185_v62 = vld [vmem:[%s6257_s26 + $0x7e0] sm:$0xff]  ;;  %v1187_v63 = vld [vmem:[%s6257_s26 + $0x7f0] sm:$0xff] }
  0x51   : > { %v1189_v0 = vld [vmem:[%s6257_s26 + $0x800] sm:$0xff]  ;;  %1186 = vst [vmem:[%s6265_s27 + $0x3f0] sm:$0xff] %v1185_v62  ;;  %1188 = vst [vmem:[%s6265_s27 + $0x3f8] sm:$0xff] %v1187_v63  ;;  %v1191_v1 = vld [vmem:[%s6257_s26 + $0x810] sm:$0xff] }
  0x52   : > { %1190 = vst [vmem:[%s6265_s27 + $0x400] sm:$0xff] %v1189_v0  ;;  %v1193_v2 = vld [vmem:[%s6257_s26 + $0x820] sm:$0xff]  ;;  %v1195_v3 = vld [vmem:[%s6257_s26 + $0x830] sm:$0xff]  ;;  %1192 = vst [vmem:[%s6265_s27 + $0x408] sm:$0xff] %v1191_v1 }
  0x53   : > { %1194 = vst [vmem:[%s6265_s27 + $0x410] sm:$0xff] %v1193_v2  ;;  %1196 = vst [vmem:[%s6265_s27 + $0x418] sm:$0xff] %v1195_v3  ;;  %v1197_v4 = vld [vmem:[%s6257_s26 + $0x840] sm:$0xff]  ;;  %v1199_v5 = vld [vmem:[%s6257_s26 + $0x850] sm:$0xff] }
  0x54   : > { %v1201_v6 = vld [vmem:[%s6257_s26 + $0x860] sm:$0xff]  ;;  %1198 = vst [vmem:[%s6265_s27 + $0x420] sm:$0xff] %v1197_v4  ;;  %1200 = vst [vmem:[%s6265_s27 + $0x428] sm:$0xff] %v1199_v5  ;;  %v1203_v7 = vld [vmem:[%s6257_s26 + $0x870] sm:$0xff] }
  0x55   : > { %1202 = vst [vmem:[%s6265_s27 + $0x430] sm:$0xff] %v1201_v6  ;;  %v1205_v8 = vld [vmem:[%s6257_s26 + $0x880] sm:$0xff]  ;;  %v1207_v9 = vld [vmem:[%s6257_s26 + $0x890] sm:$0xff]  ;;  %1204 = vst [vmem:[%s6265_s27 + $0x438] sm:$0xff] %v1203_v7 }
  0x56   : > { %1206 = vst [vmem:[%s6265_s27 + $0x440] sm:$0xff] %v1205_v8  ;;  %1208 = vst [vmem:[%s6265_s27 + $0x448] sm:$0xff] %v1207_v9  ;;  %v1209_v10 = vld [vmem:[%s6257_s26 + $0x8a0] sm:$0xff]  ;;  %v1211_v11 = vld [vmem:[%s6257_s26 + $0x8b0] sm:$0xff] }
  0x57   : > { %v1213_v12 = vld [vmem:[%s6257_s26 + $0x8c0] sm:$0xff]  ;;  %1210 = vst [vmem:[%s6265_s27 + $0x450] sm:$0xff] %v1209_v10  ;;  %1212 = vst [vmem:[%s6265_s27 + $0x458] sm:$0xff] %v1211_v11  ;;  %v1215_v13 = vld [vmem:[%s6257_s26 + $0x8d0] sm:$0xff] }
  0x58   : > { %1214 = vst [vmem:[%s6265_s27 + $0x460] sm:$0xff] %v1213_v12  ;;  %v1217_v14 = vld [vmem:[%s6257_s26 + $0x8e0] sm:$0xff]  ;;  %v1219_v15 = vld [vmem:[%s6257_s26 + $0x8f0] sm:$0xff]  ;;  %1216 = vst [vmem:[%s6265_s27 + $0x468] sm:$0xff] %v1215_v13 }
  0x59   : > { %1218 = vst [vmem:[%s6265_s27 + $0x470] sm:$0xff] %v1217_v14  ;;  %1220 = vst [vmem:[%s6265_s27 + $0x478] sm:$0xff] %v1219_v15  ;;  %v1221_v16 = vld [vmem:[%s6257_s26 + $0x900] sm:$0xff]  ;;  %v1223_v17 = vld [vmem:[%s6257_s26 + $0x910] sm:$0xff] }
  0x5a   : > { %v1225_v18 = vld [vmem:[%s6257_s26 + $0x920] sm:$0xff]  ;;  %1222 = vst [vmem:[%s6265_s27 + $0x480] sm:$0xff] %v1221_v16  ;;  %1224 = vst [vmem:[%s6265_s27 + $0x488] sm:$0xff] %v1223_v17  ;;  %v1227_v19 = vld [vmem:[%s6257_s26 + $0x930] sm:$0xff] }
  0x5b   : > { %1226 = vst [vmem:[%s6265_s27 + $0x490] sm:$0xff] %v1225_v18  ;;  %v1229_v20 = vld [vmem:[%s6257_s26 + $0x940] sm:$0xff]  ;;  %v1231_v21 = vld [vmem:[%s6257_s26 + $0x950] sm:$0xff]  ;;  %1228 = vst [vmem:[%s6265_s27 + $0x498] sm:$0xff] %v1227_v19 }
  0x5c   : > { %1230 = vst [vmem:[%s6265_s27 + $0x4a0] sm:$0xff] %v1229_v20  ;;  %1232 = vst [vmem:[%s6265_s27 + $0x4a8] sm:$0xff] %v1231_v21  ;;  %v1233_v22 = vld [vmem:[%s6257_s26 + $0x960] sm:$0xff]  ;;  %v1235_v23 = vld [vmem:[%s6257_s26 + $0x970] sm:$0xff] }
  0x5d   : > { %v1237_v24 = vld [vmem:[%s6257_s26 + $0x980] sm:$0xff]  ;;  %1234 = vst [vmem:[%s6265_s27 + $0x4b0] sm:$0xff] %v1233_v22  ;;  %1236 = vst [vmem:[%s6265_s27 + $0x4b8] sm:$0xff] %v1235_v23  ;;  %v1239_v25 = vld [vmem:[%s6257_s26 + $0x990] sm:$0xff] }
  0x5e   : > { %1238 = vst [vmem:[%s6265_s27 + $0x4c0] sm:$0xff] %v1237_v24  ;;  %v1241_v26 = vld [vmem:[%s6257_s26 + $0x9a0] sm:$0xff]  ;;  %v1243_v27 = vld [vmem:[%s6257_s26 + $0x9b0] sm:$0xff]  ;;  %1240 = vst [vmem:[%s6265_s27 + $0x4c8] sm:$0xff] %v1239_v25 }
  0x5f   : > { %1242 = vst [vmem:[%s6265_s27 + $0x4d0] sm:$0xff] %v1241_v26  ;;  %1244 = vst [vmem:[%s6265_s27 + $0x4d8] sm:$0xff] %v1243_v27  ;;  %v1245_v28 = vld [vmem:[%s6257_s26 + $0x9c0] sm:$0xff]  ;;  %v1247_v29 = vld [vmem:[%s6257_s26 + $0x9d0] sm:$0xff] }
  0x60   : > { %v1249_v30 = vld [vmem:[%s6257_s26 + $0x9e0] sm:$0xff]  ;;  %1246 = vst [vmem:[%s6265_s27 + $0x4e0] sm:$0xff] %v1245_v28  ;;  %1248 = vst [vmem:[%s6265_s27 + $0x4e8] sm:$0xff] %v1247_v29  ;;  %v1251_v31 = vld [vmem:[%s6257_s26 + $0x9f0] sm:$0xff] }
  0x61   : > { %1250 = vst [vmem:[%s6265_s27 + $0x4f0] sm:$0xff] %v1249_v30  ;;  %v1253_v32 = vld [vmem:[%s6257_s26 + $0xa00] sm:$0xff]  ;;  %v1255_v33 = vld [vmem:[%s6257_s26 + $0xa10] sm:$0xff]  ;;  %1252 = vst [vmem:[%s6265_s27 + $0x4f8] sm:$0xff] %v1251_v31 }
  0x62   : > { %1254 = vst [vmem:[%s6265_s27 + $0x500] sm:$0xff] %v1253_v32  ;;  %1256 = vst [vmem:[%s6265_s27 + $0x508] sm:$0xff] %v1255_v33  ;;  %v1257_v34 = vld [vmem:[%s6257_s26 + $0xa20] sm:$0xff]  ;;  %v1259_v35 = vld [vmem:[%s6257_s26 + $0xa30] sm:$0xff] }
  0x63   : > { %v1261_v36 = vld [vmem:[%s6257_s26 + $0xa40] sm:$0xff]  ;;  %1258 = vst [vmem:[%s6265_s27 + $0x510] sm:$0xff] %v1257_v34  ;;  %1260 = vst [vmem:[%s6265_s27 + $0x518] sm:$0xff] %v1259_v35  ;;  %v1263_v37 = vld [vmem:[%s6257_s26 + $0xa50] sm:$0xff] }
  0x64   : > { %1262 = vst [vmem:[%s6265_s27 + $0x520] sm:$0xff] %v1261_v36  ;;  %v1265_v38 = vld [vmem:[%s6257_s26 + $0xa60] sm:$0xff]  ;;  %v1267_v39 = vld [vmem:[%s6257_s26 + $0xa70] sm:$0xff]  ;;  %1264 = vst [vmem:[%s6265_s27 + $0x528] sm:$0xff] %v1263_v37 }
  0x65   : > { %1266 = vst [vmem:[%s6265_s27 + $0x530] sm:$0xff] %v1265_v38  ;;  %1268 = vst [vmem:[%s6265_s27 + $0x538] sm:$0xff] %v1267_v39  ;;  %v1269_v40 = vld [vmem:[%s6257_s26 + $0xa80] sm:$0xff]  ;;  %v1271_v41 = vld [vmem:[%s6257_s26 + $0xa90] sm:$0xff] }
  0x66   : > { %v1273_v42 = vld [vmem:[%s6257_s26 + $0xaa0] sm:$0xff]  ;;  %1270 = vst [vmem:[%s6265_s27 + $0x540] sm:$0xff] %v1269_v40  ;;  %1272 = vst [vmem:[%s6265_s27 + $0x548] sm:$0xff] %v1271_v41  ;;  %v1275_v43 = vld [vmem:[%s6257_s26 + $0xab0] sm:$0xff] }
  0x67   : > { %1274 = vst [vmem:[%s6265_s27 + $0x550] sm:$0xff] %v1273_v42  ;;  %v1277_v44 = vld [vmem:[%s6257_s26 + $0xac0] sm:$0xff]  ;;  %v1279_v45 = vld [vmem:[%s6257_s26 + $0xad0] sm:$0xff]  ;;  %1276 = vst [vmem:[%s6265_s27 + $0x558] sm:$0xff] %v1275_v43 }
  0x68   : > { %1278 = vst [vmem:[%s6265_s27 + $0x560] sm:$0xff] %v1277_v44  ;;  %1280 = vst [vmem:[%s6265_s27 + $0x568] sm:$0xff] %v1279_v45  ;;  %v1281_v46 = vld [vmem:[%s6257_s26 + $0xae0] sm:$0xff]  ;;  %v1283_v47 = vld [vmem:[%s6257_s26 + $0xaf0] sm:$0xff] }
  0x69   : > { %v1285_v48 = vld [vmem:[%s6257_s26 + $0xb00] sm:$0xff]  ;;  %1282 = vst [vmem:[%s6265_s27 + $0x570] sm:$0xff] %v1281_v46  ;;  %1284 = vst [vmem:[%s6265_s27 + $0x578] sm:$0xff] %v1283_v47  ;;  %v1287_v49 = vld [vmem:[%s6257_s26 + $0xb10] sm:$0xff] }
  0x6a   : > { %1286 = vst [vmem:[%s6265_s27 + $0x580] sm:$0xff] %v1285_v48  ;;  %v1289_v50 = vld [vmem:[%s6257_s26 + $0xb20] sm:$0xff]  ;;  %v1291_v51 = vld [vmem:[%s6257_s26 + $0xb30] sm:$0xff]  ;;  %1288 = vst [vmem:[%s6265_s27 + $0x588] sm:$0xff] %v1287_v49 }
  0x6b   : > { %1290 = vst [vmem:[%s6265_s27 + $0x590] sm:$0xff] %v1289_v50  ;;  %1292 = vst [vmem:[%s6265_s27 + $0x598] sm:$0xff] %v1291_v51  ;;  %v1293_v52 = vld [vmem:[%s6257_s26 + $0xb40] sm:$0xff]  ;;  %v1295_v53 = vld [vmem:[%s6257_s26 + $0xb50] sm:$0xff] }
  0x6c   : > { %v1297_v54 = vld [vmem:[%s6257_s26 + $0xb60] sm:$0xff]  ;;  %1294 = vst [vmem:[%s6265_s27 + $0x5a0] sm:$0xff] %v1293_v52  ;;  %1296 = vst [vmem:[%s6265_s27 + $0x5a8] sm:$0xff] %v1295_v53  ;;  %v1299_v55 = vld [vmem:[%s6257_s26 + $0xb70] sm:$0xff] }
  0x6d   : > { %1298 = vst [vmem:[%s6265_s27 + $0x5b0] sm:$0xff] %v1297_v54  ;;  %v1301_v56 = vld [vmem:[%s6257_s26 + $0xb80] sm:$0xff]  ;;  %v1303_v57 = vld [vmem:[%s6257_s26 + $0xb90] sm:$0xff]  ;;  %1300 = vst [vmem:[%s6265_s27 + $0x5b8] sm:$0xff] %v1299_v55 }
  0x6e   : > { %1302 = vst [vmem:[%s6265_s27 + $0x5c0] sm:$0xff] %v1301_v56  ;;  %1304 = vst [vmem:[%s6265_s27 + $0x5c8] sm:$0xff] %v1303_v57  ;;  %v1305_v58 = vld [vmem:[%s6257_s26 + $0xba0] sm:$0xff]  ;;  %v1307_v59 = vld [vmem:[%s6257_s26 + $0xbb0] sm:$0xff] }
  0x6f   : > { %v1309_v60 = vld [vmem:[%s6257_s26 + $0xbc0] sm:$0xff]  ;;  %1306 = vst [vmem:[%s6265_s27 + $0x5d0] sm:$0xff] %v1305_v58  ;;  %1308 = vst [vmem:[%s6265_s27 + $0x5d8] sm:$0xff] %v1307_v59  ;;  %v1311_v61 = vld [vmem:[%s6257_s26 + $0xbd0] sm:$0xff] }
  0x70   : > { %1310 = vst [vmem:[%s6265_s27 + $0x5e0] sm:$0xff] %v1309_v60  ;;  %v1313_v62 = vld [vmem:[%s6257_s26 + $0xbe0] sm:$0xff]  ;;  %v1315_v63 = vld [vmem:[%s6257_s26 + $0xbf0] sm:$0xff]  ;;  %1312 = vst [vmem:[%s6265_s27 + $0x5e8] sm:$0xff] %v1311_v61 }
  0x71   : > { %1314 = vst [vmem:[%s6265_s27 + $0x5f0] sm:$0xff] %v1313_v62  ;;  %1316 = vst [vmem:[%s6265_s27 + $0x5f8] sm:$0xff] %v1315_v63  ;;  %v1317_v0 = vld [vmem:[%s6257_s26 + $0xc00] sm:$0xff]  ;;  %v1319_v1 = vld [vmem:[%s6257_s26 + $0xc10] sm:$0xff] }
  0x72   : > { %v1321_v2 = vld [vmem:[%s6257_s26 + $0xc20] sm:$0xff]  ;;  %1318 = vst [vmem:[%s6265_s27 + $0x600] sm:$0xff] %v1317_v0  ;;  %1320 = vst [vmem:[%s6265_s27 + $0x608] sm:$0xff] %v1319_v1  ;;  %v1323_v3 = vld [vmem:[%s6257_s26 + $0xc30] sm:$0xff] }
  0x73   : > { %1322 = vst [vmem:[%s6265_s27 + $0x610] sm:$0xff] %v1321_v2  ;;  %v1325_v4 = vld [vmem:[%s6257_s26 + $0xc40] sm:$0xff]  ;;  %v1327_v5 = vld [vmem:[%s6257_s26 + $0xc50] sm:$0xff]  ;;  %1324 = vst [vmem:[%s6265_s27 + $0x618] sm:$0xff] %v1323_v3 }
  0x74   : > { %1326 = vst [vmem:[%s6265_s27 + $0x620] sm:$0xff] %v1325_v4  ;;  %1328 = vst [vmem:[%s6265_s27 + $0x628] sm:$0xff] %v1327_v5  ;;  %v1329_v6 = vld [vmem:[%s6257_s26 + $0xc60] sm:$0xff]  ;;  %v1331_v7 = vld [vmem:[%s6257_s26 + $0xc70] sm:$0xff] }
  0x75   : > { %v1333_v8 = vld [vmem:[%s6257_s26 + $0xc80] sm:$0xff]  ;;  %1330 = vst [vmem:[%s6265_s27 + $0x630] sm:$0xff] %v1329_v6  ;;  %1332 = vst [vmem:[%s6265_s27 + $0x638] sm:$0xff] %v1331_v7  ;;  %v1335_v9 = vld [vmem:[%s6257_s26 + $0xc90] sm:$0xff] }
  0x76   : > { %1334 = vst [vmem:[%s6265_s27 + $0x640] sm:$0xff] %v1333_v8  ;;  %v1337_v10 = vld [vmem:[%s6257_s26 + $0xca0] sm:$0xff]  ;;  %v1339_v11 = vld [vmem:[%s6257_s26 + $0xcb0] sm:$0xff]  ;;  %1336 = vst [vmem:[%s6265_s27 + $0x648] sm:$0xff] %v1335_v9 }
  0x77   : > { %1338 = vst [vmem:[%s6265_s27 + $0x650] sm:$0xff] %v1337_v10  ;;  %1340 = vst [vmem:[%s6265_s27 + $0x658] sm:$0xff] %v1339_v11  ;;  %v1341_v12 = vld [vmem:[%s6257_s26 + $0xcc0] sm:$0xff]  ;;  %v1343_v13 = vld [vmem:[%s6257_s26 + $0xcd0] sm:$0xff] }
  0x78   : > { %v1345_v14 = vld [vmem:[%s6257_s26 + $0xce0] sm:$0xff]  ;;  %1342 = vst [vmem:[%s6265_s27 + $0x660] sm:$0xff] %v1341_v12  ;;  %1344 = vst [vmem:[%s6265_s27 + $0x668] sm:$0xff] %v1343_v13  ;;  %v1347_v15 = vld [vmem:[%s6257_s26 + $0xcf0] sm:$0xff] }
  0x79   : > { %1346 = vst [vmem:[%s6265_s27 + $0x670] sm:$0xff] %v1345_v14  ;;  %v1349_v16 = vld [vmem:[%s6257_s26 + $0xd00] sm:$0xff]  ;;  %v1351_v17 = vld [vmem:[%s6257_s26 + $0xd10] sm:$0xff]  ;;  %1348 = vst [vmem:[%s6265_s27 + $0x678] sm:$0xff] %v1347_v15 }
  0x7a   : > { %1350 = vst [vmem:[%s6265_s27 + $0x680] sm:$0xff] %v1349_v16  ;;  %1352 = vst [vmem:[%s6265_s27 + $0x688] sm:$0xff] %v1351_v17  ;;  %v1353_v18 = vld [vmem:[%s6257_s26 + $0xd20] sm:$0xff]  ;;  %v1355_v19 = vld [vmem:[%s6257_s26 + $0xd30] sm:$0xff] }
  0x7b   : > { %v1357_v20 = vld [vmem:[%s6257_s26 + $0xd40] sm:$0xff]  ;;  %1354 = vst [vmem:[%s6265_s27 + $0x690] sm:$0xff] %v1353_v18  ;;  %1356 = vst [vmem:[%s6265_s27 + $0x698] sm:$0xff] %v1355_v19  ;;  %v1359_v21 = vld [vmem:[%s6257_s26 + $0xd50] sm:$0xff] }
  0x7c   : > { %1358 = vst [vmem:[%s6265_s27 + $0x6a0] sm:$0xff] %v1357_v20  ;;  %v1361_v22 = vld [vmem:[%s6257_s26 + $0xd60] sm:$0xff]  ;;  %v1363_v23 = vld [vmem:[%s6257_s26 + $0xd70] sm:$0xff]  ;;  %1360 = vst [vmem:[%s6265_s27 + $0x6a8] sm:$0xff] %v1359_v21 }
  0x7d   : > { %1362 = vst [vmem:[%s6265_s27 + $0x6b0] sm:$0xff] %v1361_v22  ;;  %1364 = vst [vmem:[%s6265_s27 + $0x6b8] sm:$0xff] %v1363_v23  ;;  %v1365_v24 = vld [vmem:[%s6257_s26 + $0xd80] sm:$0xff]  ;;  %v1367_v25 = vld [vmem:[%s6257_s26 + $0xd90] sm:$0xff] }
  0x7e   : > { %v1369_v26 = vld [vmem:[%s6257_s26 + $0xda0] sm:$0xff]  ;;  %1366 = vst [vmem:[%s6265_s27 + $0x6c0] sm:$0xff] %v1365_v24  ;;  %1368 = vst [vmem:[%s6265_s27 + $0x6c8] sm:$0xff] %v1367_v25  ;;  %v1371_v27 = vld [vmem:[%s6257_s26 + $0xdb0] sm:$0xff] }
  0x7f   : > { %1370 = vst [vmem:[%s6265_s27 + $0x6d0] sm:$0xff] %v1369_v26  ;;  %v1373_v28 = vld [vmem:[%s6257_s26 + $0xdc0] sm:$0xff]  ;;  %v1375_v29 = vld [vmem:[%s6257_s26 + $0xdd0] sm:$0xff]  ;;  %1372 = vst [vmem:[%s6265_s27 + $0x6d8] sm:$0xff] %v1371_v27 }
  0x80   : > { %1374 = vst [vmem:[%s6265_s27 + $0x6e0] sm:$0xff] %v1373_v28  ;;  %1376 = vst [vmem:[%s6265_s27 + $0x6e8] sm:$0xff] %v1375_v29  ;;  %v1377_v30 = vld [vmem:[%s6257_s26 + $0xde0] sm:$0xff]  ;;  %v1379_v31 = vld [vmem:[%s6257_s26 + $0xdf0] sm:$0xff] }
  0x81   : > { %v1381_v32 = vld [vmem:[%s6257_s26 + $0xe00] sm:$0xff]  ;;  %1378 = vst [vmem:[%s6265_s27 + $0x6f0] sm:$0xff] %v1377_v30  ;;  %1380 = vst [vmem:[%s6265_s27 + $0x6f8] sm:$0xff] %v1379_v31  ;;  %v1383_v33 = vld [vmem:[%s6257_s26 + $0xe10] sm:$0xff] }
  0x82   : > { %1382 = vst [vmem:[%s6265_s27 + $0x700] sm:$0xff] %v1381_v32  ;;  %v1385_v34 = vld [vmem:[%s6257_s26 + $0xe20] sm:$0xff]  ;;  %v1387_v35 = vld [vmem:[%s6257_s26 + $0xe30] sm:$0xff]  ;;  %1384 = vst [vmem:[%s6265_s27 + $0x708] sm:$0xff] %v1383_v33 }
  0x83   : > { %1386 = vst [vmem:[%s6265_s27 + $0x710] sm:$0xff] %v1385_v34  ;;  %1388 = vst [vmem:[%s6265_s27 + $0x718] sm:$0xff] %v1387_v35  ;;  %v1389_v36 = vld [vmem:[%s6257_s26 + $0xe40] sm:$0xff]  ;;  %v1391_v37 = vld [vmem:[%s6257_s26 + $0xe50] sm:$0xff] }
  0x84   : > { %v1393_v38 = vld [vmem:[%s6257_s26 + $0xe60] sm:$0xff]  ;;  %1390 = vst [vmem:[%s6265_s27 + $0x720] sm:$0xff] %v1389_v36  ;;  %1392 = vst [vmem:[%s6265_s27 + $0x728] sm:$0xff] %v1391_v37  ;;  %v1395_v39 = vld [vmem:[%s6257_s26 + $0xe70] sm:$0xff] }
  0x85   : > { %1394 = vst [vmem:[%s6265_s27 + $0x730] sm:$0xff] %v1393_v38  ;;  %v1397_v40 = vld [vmem:[%s6257_s26 + $0xe80] sm:$0xff]  ;;  %v1399_v41 = vld [vmem:[%s6257_s26 + $0xe90] sm:$0xff]  ;;  %1396 = vst [vmem:[%s6265_s27 + $0x738] sm:$0xff] %v1395_v39 }
  0x86   : > { %1398 = vst [vmem:[%s6265_s27 + $0x740] sm:$0xff] %v1397_v40  ;;  %1400 = vst [vmem:[%s6265_s27 + $0x748] sm:$0xff] %v1399_v41  ;;  %v1401_v42 = vld [vmem:[%s6257_s26 + $0xea0] sm:$0xff]  ;;  %v1403_v43 = vld [vmem:[%s6257_s26 + $0xeb0] sm:$0xff] }
  0x87   : > { %v1405_v44 = vld [vmem:[%s6257_s26 + $0xec0] sm:$0xff]  ;;  %1402 = vst [vmem:[%s6265_s27 + $0x750] sm:$0xff] %v1401_v42  ;;  %1404 = vst [vmem:[%s6265_s27 + $0x758] sm:$0xff] %v1403_v43  ;;  %v1407_v45 = vld [vmem:[%s6257_s26 + $0xed0] sm:$0xff] }
  0x88   : > { %1406 = vst [vmem:[%s6265_s27 + $0x760] sm:$0xff] %v1405_v44  ;;  %v1409_v46 = vld [vmem:[%s6257_s26 + $0xee0] sm:$0xff]  ;;  %v1411_v47 = vld [vmem:[%s6257_s26 + $0xef0] sm:$0xff]  ;;  %1408 = vst [vmem:[%s6265_s27 + $0x768] sm:$0xff] %v1407_v45 }
  0x89   : > { %1410 = vst [vmem:[%s6265_s27 + $0x770] sm:$0xff] %v1409_v46  ;;  %1412 = vst [vmem:[%s6265_s27 + $0x778] sm:$0xff] %v1411_v47  ;;  %v1413_v48 = vld [vmem:[%s6257_s26 + $0xf00] sm:$0xff]  ;;  %v1415_v49 = vld [vmem:[%s6257_s26 + $0xf10] sm:$0xff] }
  0x8a   : > { %v1417_v50 = vld [vmem:[%s6257_s26 + $0xf20] sm:$0xff]  ;;  %1414 = vst [vmem:[%s6265_s27 + $0x780] sm:$0xff] %v1413_v48  ;;  %1416 = vst [vmem:[%s6265_s27 + $0x788] sm:$0xff] %v1415_v49  ;;  %v1419_v51 = vld [vmem:[%s6257_s26 + $0xf30] sm:$0xff] }
  0x8b   : > { %1418 = vst [vmem:[%s6265_s27 + $0x790] sm:$0xff] %v1417_v50  ;;  %v1421_v52 = vld [vmem:[%s6257_s26 + $0xf40] sm:$0xff]  ;;  %v1423_v53 = vld [vmem:[%s6257_s26 + $0xf50] sm:$0xff]  ;;  %1420 = vst [vmem:[%s6265_s27 + $0x798] sm:$0xff] %v1419_v51 }
  0x8c   : > { %1422 = vst [vmem:[%s6265_s27 + $0x7a0] sm:$0xff] %v1421_v52  ;;  %1424 = vst [vmem:[%s6265_s27 + $0x7a8] sm:$0xff] %v1423_v53  ;;  %v1425_v54 = vld [vmem:[%s6257_s26 + $0xf60] sm:$0xff]  ;;  %v1427_v55 = vld [vmem:[%s6257_s26 + $0xf70] sm:$0xff] }
  0x8d   : > { %v1429_v56 = vld [vmem:[%s6257_s26 + $0xf80] sm:$0xff]  ;;  %1426 = vst [vmem:[%s6265_s27 + $0x7b0] sm:$0xff] %v1425_v54  ;;  %1428 = vst [vmem:[%s6265_s27 + $0x7b8] sm:$0xff] %v1427_v55  ;;  %v1431_v57 = vld [vmem:[%s6257_s26 + $0xf90] sm:$0xff] }
  0x8e   : > { %1430 = vst [vmem:[%s6265_s27 + $0x7c0] sm:$0xff] %v1429_v56  ;;  %v1433_v58 = vld [vmem:[%s6257_s26 + $0xfa0] sm:$0xff]  ;;  %v1435_v59 = vld [vmem:[%s6257_s26 + $0xfb0] sm:$0xff]  ;;  %1432 = vst [vmem:[%s6265_s27 + $0x7c8] sm:$0xff] %v1431_v57 }
  0x8f   : > { %1434 = vst [vmem:[%s6265_s27 + $0x7d0] sm:$0xff] %v1433_v58  ;;  %1436 = vst [vmem:[%s6265_s27 + $0x7d8] sm:$0xff] %v1435_v59  ;;  %v1437_v60 = vld [vmem:[%s6257_s26 + $0xfc0] sm:$0xff]  ;;  %v1439_v61 = vld [vmem:[%s6257_s26 + $0xfd0] sm:$0xff] }
  0x90   : > { %v1441_v62 = vld [vmem:[%s6257_s26 + $0xfe0] sm:$0xff]  ;;  %1438 = vst [vmem:[%s6265_s27 + $0x7e0] sm:$0xff] %v1437_v60  ;;  %1440 = vst [vmem:[%s6265_s27 + $0x7e8] sm:$0xff] %v1439_v61  ;;  %v1443_v63 = vld [vmem:[%s6257_s26 + $0xff0] sm:$0xff] }
  0x91   : > { %1442 = vst [vmem:[%s6265_s27 + $0x7f0] sm:$0xff] %v1441_v62  ;;  %v1445_v0 = vld [vmem:[%s6257_s26 + $0x1000] sm:$0xff]  ;;  %v1447_v1 = vld [vmem:[%s6257_s26 + $0x1010] sm:$0xff]  ;;  %1444 = vst [vmem:[%s6265_s27 + $0x7f8] sm:$0xff] %v1443_v63 }
  0x92   : > { %1446 = vst [vmem:[%s6265_s27 + $0x800] sm:$0xff] %v1445_v0  ;;  %1448 = vst [vmem:[%s6265_s27 + $0x808] sm:$0xff] %v1447_v1  ;;  %v1449_v2 = vld [vmem:[%s6257_s26 + $0x1020] sm:$0xff]  ;;  %v1451_v3 = vld [vmem:[%s6257_s26 + $0x1030] sm:$0xff] }
  0x93   : > { %v1453_v4 = vld [vmem:[%s6257_s26 + $0x1040] sm:$0xff]  ;;  %1450 = vst [vmem:[%s6265_s27 + $0x810] sm:$0xff] %v1449_v2  ;;  %1452 = vst [vmem:[%s6265_s27 + $0x818] sm:$0xff] %v1451_v3  ;;  %v1455_v5 = vld [vmem:[%s6257_s26 + $0x1050] sm:$0xff] }
  0x94   : > { %1454 = vst [vmem:[%s6265_s27 + $0x820] sm:$0xff] %v1453_v4  ;;  %v1457_v6 = vld [vmem:[%s6257_s26 + $0x1060] sm:$0xff]  ;;  %v1459_v7 = vld [vmem:[%s6257_s26 + $0x1070] sm:$0xff]  ;;  %1456 = vst [vmem:[%s6265_s27 + $0x828] sm:$0xff] %v1455_v5 }
  0x95   : > { %1458 = vst [vmem:[%s6265_s27 + $0x830] sm:$0xff] %v1457_v6  ;;  %1460 = vst [vmem:[%s6265_s27 + $0x838] sm:$0xff] %v1459_v7  ;;  %v1461_v8 = vld [vmem:[%s6257_s26 + $0x1080] sm:$0xff]  ;;  %v1463_v9 = vld [vmem:[%s6257_s26 + $0x1090] sm:$0xff] }
  0x96   : > { %v1465_v10 = vld [vmem:[%s6257_s26 + $0x10a0] sm:$0xff]  ;;  %1462 = vst [vmem:[%s6265_s27 + $0x840] sm:$0xff] %v1461_v8  ;;  %1464 = vst [vmem:[%s6265_s27 + $0x848] sm:$0xff] %v1463_v9  ;;  %v1467_v11 = vld [vmem:[%s6257_s26 + $0x10b0] sm:$0xff] }
  0x97   : > { %1466 = vst [vmem:[%s6265_s27 + $0x850] sm:$0xff] %v1465_v10  ;;  %v1469_v12 = vld [vmem:[%s6257_s26 + $0x10c0] sm:$0xff]  ;;  %v1471_v13 = vld [vmem:[%s6257_s26 + $0x10d0] sm:$0xff]  ;;  %1468 = vst [vmem:[%s6265_s27 + $0x858] sm:$0xff] %v1467_v11 }
  0x98   : > { %1470 = vst [vmem:[%s6265_s27 + $0x860] sm:$0xff] %v1469_v12  ;;  %1472 = vst [vmem:[%s6265_s27 + $0x868] sm:$0xff] %v1471_v13  ;;  %v1473_v14 = vld [vmem:[%s6257_s26 + $0x10e0] sm:$0xff]  ;;  %v1475_v15 = vld [vmem:[%s6257_s26 + $0x10f0] sm:$0xff] }
  0x99   : > { %v1477_v16 = vld [vmem:[%s6257_s26 + $0x1100] sm:$0xff]  ;;  %1474 = vst [vmem:[%s6265_s27 + $0x870] sm:$0xff] %v1473_v14  ;;  %1476 = vst [vmem:[%s6265_s27 + $0x878] sm:$0xff] %v1475_v15  ;;  %v1479_v17 = vld [vmem:[%s6257_s26 + $0x1110] sm:$0xff] }
  0x9a   : > { %1478 = vst [vmem:[%s6265_s27 + $0x880] sm:$0xff] %v1477_v16  ;;  %v1481_v18 = vld [vmem:[%s6257_s26 + $0x1120] sm:$0xff]  ;;  %v1483_v19 = vld [vmem:[%s6257_s26 + $0x1130] sm:$0xff]  ;;  %1480 = vst [vmem:[%s6265_s27 + $0x888] sm:$0xff] %v1479_v17 }
  0x9b   : > { %1482 = vst [vmem:[%s6265_s27 + $0x890] sm:$0xff] %v1481_v18  ;;  %1484 = vst [vmem:[%s6265_s27 + $0x898] sm:$0xff] %v1483_v19  ;;  %v1485_v20 = vld [vmem:[%s6257_s26 + $0x1140] sm:$0xff]  ;;  %v1487_v21 = vld [vmem:[%s6257_s26 + $0x1150] sm:$0xff] }
  0x9c   : > { %v1489_v22 = vld [vmem:[%s6257_s26 + $0x1160] sm:$0xff]  ;;  %1486 = vst [vmem:[%s6265_s27 + $0x8a0] sm:$0xff] %v1485_v20  ;;  %1488 = vst [vmem:[%s6265_s27 + $0x8a8] sm:$0xff] %v1487_v21  ;;  %v1491_v23 = vld [vmem:[%s6257_s26 + $0x1170] sm:$0xff] }
  0x9d   : > { %1490 = vst [vmem:[%s6265_s27 + $0x8b0] sm:$0xff] %v1489_v22  ;;  %v1493_v24 = vld [vmem:[%s6257_s26 + $0x1180] sm:$0xff]  ;;  %v1495_v25 = vld [vmem:[%s6257_s26 + $0x1190] sm:$0xff]  ;;  %1492 = vst [vmem:[%s6265_s27 + $0x8b8] sm:$0xff] %v1491_v23 }
  0x9e   : > { %1494 = vst [vmem:[%s6265_s27 + $0x8c0] sm:$0xff] %v1493_v24  ;;  %1496 = vst [vmem:[%s6265_s27 + $0x8c8] sm:$0xff] %v1495_v25  ;;  %v1497_v26 = vld [vmem:[%s6257_s26 + $0x11a0] sm:$0xff]  ;;  %v1499_v27 = vld [vmem:[%s6257_s26 + $0x11b0] sm:$0xff] }
  0x9f   : > { %v1501_v28 = vld [vmem:[%s6257_s26 + $0x11c0] sm:$0xff]  ;;  %1498 = vst [vmem:[%s6265_s27 + $0x8d0] sm:$0xff] %v1497_v26  ;;  %1500 = vst [vmem:[%s6265_s27 + $0x8d8] sm:$0xff] %v1499_v27  ;;  %v1503_v29 = vld [vmem:[%s6257_s26 + $0x11d0] sm:$0xff] }
  0xa0   : > { %1502 = vst [vmem:[%s6265_s27 + $0x8e0] sm:$0xff] %v1501_v28  ;;  %v1505_v30 = vld [vmem:[%s6257_s26 + $0x11e0] sm:$0xff]  ;;  %v1507_v31 = vld [vmem:[%s6257_s26 + $0x11f0] sm:$0xff]  ;;  %1504 = vst [vmem:[%s6265_s27 + $0x8e8] sm:$0xff] %v1503_v29 }
  0xa1   : > { %1506 = vst [vmem:[%s6265_s27 + $0x8f0] sm:$0xff] %v1505_v30  ;;  %1508 = vst [vmem:[%s6265_s27 + $0x8f8] sm:$0xff] %v1507_v31  ;;  %v1509_v32 = vld [vmem:[%s6257_s26 + $0x1200] sm:$0xff]  ;;  %v1511_v33 = vld [vmem:[%s6257_s26 + $0x1210] sm:$0xff] }
  0xa2   : > { %v1513_v34 = vld [vmem:[%s6257_s26 + $0x1220] sm:$0xff]  ;;  %1510 = vst [vmem:[%s6265_s27 + $0x900] sm:$0xff] %v1509_v32  ;;  %1512 = vst [vmem:[%s6265_s27 + $0x908] sm:$0xff] %v1511_v33  ;;  %v1515_v35 = vld [vmem:[%s6257_s26 + $0x1230] sm:$0xff] }
  0xa3   : > { %1514 = vst [vmem:[%s6265_s27 + $0x910] sm:$0xff] %v1513_v34  ;;  %v1517_v36 = vld [vmem:[%s6257_s26 + $0x1240] sm:$0xff]  ;;  %v1519_v37 = vld [vmem:[%s6257_s26 + $0x1250] sm:$0xff]  ;;  %1516 = vst [vmem:[%s6265_s27 + $0x918] sm:$0xff] %v1515_v35 }
  0xa4   : > { %1518 = vst [vmem:[%s6265_s27 + $0x920] sm:$0xff] %v1517_v36  ;;  %1520 = vst [vmem:[%s6265_s27 + $0x928] sm:$0xff] %v1519_v37  ;;  %v1521_v38 = vld [vmem:[%s6257_s26 + $0x1260] sm:$0xff]  ;;  %v1523_v39 = vld [vmem:[%s6257_s26 + $0x1270] sm:$0xff] }
  0xa5   : > { %v1525_v40 = vld [vmem:[%s6257_s26 + $0x1280] sm:$0xff]  ;;  %1522 = vst [vmem:[%s6265_s27 + $0x930] sm:$0xff] %v1521_v38  ;;  %1524 = vst [vmem:[%s6265_s27 + $0x938] sm:$0xff] %v1523_v39  ;;  %v1527_v41 = vld [vmem:[%s6257_s26 + $0x1290] sm:$0xff] }
  0xa6   : > { %1526 = vst [vmem:[%s6265_s27 + $0x940] sm:$0xff] %v1525_v40  ;;  %v1529_v42 = vld [vmem:[%s6257_s26 + $0x12a0] sm:$0xff]  ;;  %v1531_v43 = vld [vmem:[%s6257_s26 + $0x12b0] sm:$0xff]  ;;  %1528 = vst [vmem:[%s6265_s27 + $0x948] sm:$0xff] %v1527_v41 }
  0xa7   : > { %1530 = vst [vmem:[%s6265_s27 + $0x950] sm:$0xff] %v1529_v42  ;;  %1532 = vst [vmem:[%s6265_s27 + $0x958] sm:$0xff] %v1531_v43  ;;  %v1533_v44 = vld [vmem:[%s6257_s26 + $0x12c0] sm:$0xff]  ;;  %v1535_v45 = vld [vmem:[%s6257_s26 + $0x12d0] sm:$0xff] }
  0xa8   : > { %v1537_v46 = vld [vmem:[%s6257_s26 + $0x12e0] sm:$0xff]  ;;  %1534 = vst [vmem:[%s6265_s27 + $0x960] sm:$0xff] %v1533_v44  ;;  %1536 = vst [vmem:[%s6265_s27 + $0x968] sm:$0xff] %v1535_v45  ;;  %v1539_v47 = vld [vmem:[%s6257_s26 + $0x12f0] sm:$0xff] }
  0xa9   : > { %1538 = vst [vmem:[%s6265_s27 + $0x970] sm:$0xff] %v1537_v46  ;;  %v1541_v48 = vld [vmem:[%s6257_s26 + $0x1300] sm:$0xff]  ;;  %v1543_v49 = vld [vmem:[%s6257_s26 + $0x1310] sm:$0xff]  ;;  %1540 = vst [vmem:[%s6265_s27 + $0x978] sm:$0xff] %v1539_v47 }
  0xaa   : > { %1542 = vst [vmem:[%s6265_s27 + $0x980] sm:$0xff] %v1541_v48  ;;  %1544 = vst [vmem:[%s6265_s27 + $0x988] sm:$0xff] %v1543_v49  ;;  %v1545_v50 = vld [vmem:[%s6257_s26 + $0x1320] sm:$0xff]  ;;  %v1547_v51 = vld [vmem:[%s6257_s26 + $0x1330] sm:$0xff] }
  0xab   : > { %v1549_v52 = vld [vmem:[%s6257_s26 + $0x1340] sm:$0xff]  ;;  %1546 = vst [vmem:[%s6265_s27 + $0x990] sm:$0xff] %v1545_v50  ;;  %1548 = vst [vmem:[%s6265_s27 + $0x998] sm:$0xff] %v1547_v51  ;;  %v1551_v53 = vld [vmem:[%s6257_s26 + $0x1350] sm:$0xff] }
  0xac   : > { %1550 = vst [vmem:[%s6265_s27 + $0x9a0] sm:$0xff] %v1549_v52  ;;  %v1553_v54 = vld [vmem:[%s6257_s26 + $0x1360] sm:$0xff]  ;;  %v1555_v55 = vld [vmem:[%s6257_s26 + $0x1370] sm:$0xff]  ;;  %1552 = vst [vmem:[%s6265_s27 + $0x9a8] sm:$0xff] %v1551_v53 }
  0xad   : > { %1554 = vst [vmem:[%s6265_s27 + $0x9b0] sm:$0xff] %v1553_v54  ;;  %1556 = vst [vmem:[%s6265_s27 + $0x9b8] sm:$0xff] %v1555_v55  ;;  %v1557_v56 = vld [vmem:[%s6257_s26 + $0x1380] sm:$0xff]  ;;  %v1559_v57 = vld [vmem:[%s6257_s26 + $0x1390] sm:$0xff] }
  0xae   : > { %v1561_v58 = vld [vmem:[%s6257_s26 + $0x13a0] sm:$0xff]  ;;  %1558 = vst [vmem:[%s6265_s27 + $0x9c0] sm:$0xff] %v1557_v56  ;;  %1560 = vst [vmem:[%s6265_s27 + $0x9c8] sm:$0xff] %v1559_v57  ;;  %v1563_v59 = vld [vmem:[%s6257_s26 + $0x13b0] sm:$0xff] }
  0xaf   : > { %1562 = vst [vmem:[%s6265_s27 + $0x9d0] sm:$0xff] %v1561_v58  ;;  %v1565_v60 = vld [vmem:[%s6257_s26 + $0x13c0] sm:$0xff]  ;;  %v1567_v61 = vld [vmem:[%s6257_s26 + $0x13d0] sm:$0xff]  ;;  %1564 = vst [vmem:[%s6265_s27 + $0x9d8] sm:$0xff] %v1563_v59 }
  0xb0   : > { %1566 = vst [vmem:[%s6265_s27 + $0x9e0] sm:$0xff] %v1565_v60  ;;  %1568 = vst [vmem:[%s6265_s27 + $0x9e8] sm:$0xff] %v1567_v61  ;;  %v1569_v62 = vld [vmem:[%s6257_s26 + $0x13e0] sm:$0xff]  ;;  %v1571_v63 = vld [vmem:[%s6257_s26 + $0x13f0] sm:$0xff] }
  0xb1   : > { %v1573_v0 = vld [vmem:[%s6257_s26 + $0x1400] sm:$0xff]  ;;  %1570 = vst [vmem:[%s6265_s27 + $0x9f0] sm:$0xff] %v1569_v62  ;;  %1572 = vst [vmem:[%s6265_s27 + $0x9f8] sm:$0xff] %v1571_v63  ;;  %v1575_v1 = vld [vmem:[%s6257_s26 + $0x1410] sm:$0xff] }
  0xb2   : > { %1574 = vst [vmem:[%s6265_s27 + $0xa00] sm:$0xff] %v1573_v0  ;;  %v1577_v2 = vld [vmem:[%s6257_s26 + $0x1420] sm:$0xff]  ;;  %v1579_v3 = vld [vmem:[%s6257_s26 + $0x1430] sm:$0xff]  ;;  %1576 = vst [vmem:[%s6265_s27 + $0xa08] sm:$0xff] %v1575_v1 }
  0xb3   : > { %1578 = vst [vmem:[%s6265_s27 + $0xa10] sm:$0xff] %v1577_v2  ;;  %1580 = vst [vmem:[%s6265_s27 + $0xa18] sm:$0xff] %v1579_v3  ;;  %v1581_v4 = vld [vmem:[%s6257_s26 + $0x1440] sm:$0xff]  ;;  %v1583_v5 = vld [vmem:[%s6257_s26 + $0x1450] sm:$0xff] }
  0xb4   : > { %v1585_v6 = vld [vmem:[%s6257_s26 + $0x1460] sm:$0xff]  ;;  %1582 = vst [vmem:[%s6265_s27 + $0xa20] sm:$0xff] %v1581_v4  ;;  %1584 = vst [vmem:[%s6265_s27 + $0xa28] sm:$0xff] %v1583_v5  ;;  %v1587_v7 = vld [vmem:[%s6257_s26 + $0x1470] sm:$0xff] }
  0xb5   : > { %1586 = vst [vmem:[%s6265_s27 + $0xa30] sm:$0xff] %v1585_v6  ;;  %v1589_v8 = vld [vmem:[%s6257_s26 + $0x1480] sm:$0xff]  ;;  %v1591_v9 = vld [vmem:[%s6257_s26 + $0x1490] sm:$0xff]  ;;  %1588 = vst [vmem:[%s6265_s27 + $0xa38] sm:$0xff] %v1587_v7 }
  0xb6   : > { %1590 = vst [vmem:[%s6265_s27 + $0xa40] sm:$0xff] %v1589_v8  ;;  %1592 = vst [vmem:[%s6265_s27 + $0xa48] sm:$0xff] %v1591_v9  ;;  %v1593_v10 = vld [vmem:[%s6257_s26 + $0x14a0] sm:$0xff]  ;;  %v1595_v11 = vld [vmem:[%s6257_s26 + $0x14b0] sm:$0xff] }
  0xb7   : > { %v1597_v12 = vld [vmem:[%s6257_s26 + $0x14c0] sm:$0xff]  ;;  %1594 = vst [vmem:[%s6265_s27 + $0xa50] sm:$0xff] %v1593_v10  ;;  %1596 = vst [vmem:[%s6265_s27 + $0xa58] sm:$0xff] %v1595_v11  ;;  %v1599_v13 = vld [vmem:[%s6257_s26 + $0x14d0] sm:$0xff] }
  0xb8   : > { %1598 = vst [vmem:[%s6265_s27 + $0xa60] sm:$0xff] %v1597_v12  ;;  %v1601_v14 = vld [vmem:[%s6257_s26 + $0x14e0] sm:$0xff]  ;;  %v1603_v15 = vld [vmem:[%s6257_s26 + $0x14f0] sm:$0xff]  ;;  %1600 = vst [vmem:[%s6265_s27 + $0xa68] sm:$0xff] %v1599_v13 }
  0xb9   : > { %1602 = vst [vmem:[%s6265_s27 + $0xa70] sm:$0xff] %v1601_v14  ;;  %1604 = vst [vmem:[%s6265_s27 + $0xa78] sm:$0xff] %v1603_v15  ;;  %v1605_v16 = vld [vmem:[%s6257_s26 + $0x1500] sm:$0xff]  ;;  %v1607_v17 = vld [vmem:[%s6257_s26 + $0x1510] sm:$0xff] }
  0xba   : > { %v1609_v18 = vld [vmem:[%s6257_s26 + $0x1520] sm:$0xff]  ;;  %1606 = vst [vmem:[%s6265_s27 + $0xa80] sm:$0xff] %v1605_v16  ;;  %1608 = vst [vmem:[%s6265_s27 + $0xa88] sm:$0xff] %v1607_v17  ;;  %v1611_v19 = vld [vmem:[%s6257_s26 + $0x1530] sm:$0xff] }
  0xbb   : > { %1610 = vst [vmem:[%s6265_s27 + $0xa90] sm:$0xff] %v1609_v18  ;;  %v1613_v20 = vld [vmem:[%s6257_s26 + $0x1540] sm:$0xff]  ;;  %v1615_v21 = vld [vmem:[%s6257_s26 + $0x1550] sm:$0xff]  ;;  %1612 = vst [vmem:[%s6265_s27 + $0xa98] sm:$0xff] %v1611_v19 }
  0xbc   : > { %1614 = vst [vmem:[%s6265_s27 + $0xaa0] sm:$0xff] %v1613_v20  ;;  %1616 = vst [vmem:[%s6265_s27 + $0xaa8] sm:$0xff] %v1615_v21  ;;  %v1617_v22 = vld [vmem:[%s6257_s26 + $0x1560] sm:$0xff]  ;;  %v1619_v23 = vld [vmem:[%s6257_s26 + $0x1570] sm:$0xff] }
  0xbd   : > { %v1621_v24 = vld [vmem:[%s6257_s26 + $0x1580] sm:$0xff]  ;;  %1618 = vst [vmem:[%s6265_s27 + $0xab0] sm:$0xff] %v1617_v22  ;;  %1620 = vst [vmem:[%s6265_s27 + $0xab8] sm:$0xff] %v1619_v23  ;;  %v1623_v25 = vld [vmem:[%s6257_s26 + $0x1590] sm:$0xff] }
  0xbe   : > { %1622 = vst [vmem:[%s6265_s27 + $0xac0] sm:$0xff] %v1621_v24  ;;  %v1625_v26 = vld [vmem:[%s6257_s26 + $0x15a0] sm:$0xff]  ;;  %v1627_v27 = vld [vmem:[%s6257_s26 + $0x15b0] sm:$0xff]  ;;  %1624 = vst [vmem:[%s6265_s27 + $0xac8] sm:$0xff] %v1623_v25 }
  0xbf   : > { %1626 = vst [vmem:[%s6265_s27 + $0xad0] sm:$0xff] %v1625_v26  ;;  %1628 = vst [vmem:[%s6265_s27 + $0xad8] sm:$0xff] %v1627_v27  ;;  %v1629_v28 = vld [vmem:[%s6257_s26 + $0x15c0] sm:$0xff]  ;;  %v1631_v29 = vld [vmem:[%s6257_s26 + $0x15d0] sm:$0xff] }
  0xc0   : > { %v1633_v30 = vld [vmem:[%s6257_s26 + $0x15e0] sm:$0xff]  ;;  %1630 = vst [vmem:[%s6265_s27 + $0xae0] sm:$0xff] %v1629_v28  ;;  %1632 = vst [vmem:[%s6265_s27 + $0xae8] sm:$0xff] %v1631_v29  ;;  %v1635_v31 = vld [vmem:[%s6257_s26 + $0x15f0] sm:$0xff] }
  0xc1   : > { %1634 = vst [vmem:[%s6265_s27 + $0xaf0] sm:$0xff] %v1633_v30  ;;  %v1637_v32 = vld [vmem:[%s6257_s26 + $0x1600] sm:$0xff]  ;;  %v1639_v33 = vld [vmem:[%s6257_s26 + $0x1610] sm:$0xff]  ;;  %1636 = vst [vmem:[%s6265_s27 + $0xaf8] sm:$0xff] %v1635_v31 }
  0xc2   : > { %1638 = vst [vmem:[%s6265_s27 + $0xb00] sm:$0xff] %v1637_v32  ;;  %1640 = vst [vmem:[%s6265_s27 + $0xb08] sm:$0xff] %v1639_v33  ;;  %v1641_v34 = vld [vmem:[%s6257_s26 + $0x1620] sm:$0xff]  ;;  %v1643_v35 = vld [vmem:[%s6257_s26 + $0x1630] sm:$0xff] }
  0xc3   : > { %v1645_v36 = vld [vmem:[%s6257_s26 + $0x1640] sm:$0xff]  ;;  %1642 = vst [vmem:[%s6265_s27 + $0xb10] sm:$0xff] %v1641_v34  ;;  %1644 = vst [vmem:[%s6265_s27 + $0xb18] sm:$0xff] %v1643_v35  ;;  %v1647_v37 = vld [vmem:[%s6257_s26 + $0x1650] sm:$0xff] }
  0xc4   : > { %1646 = vst [vmem:[%s6265_s27 + $0xb20] sm:$0xff] %v1645_v36  ;;  %v1649_v38 = vld [vmem:[%s6257_s26 + $0x1660] sm:$0xff]  ;;  %v1651_v39 = vld [vmem:[%s6257_s26 + $0x1670] sm:$0xff]  ;;  %1648 = vst [vmem:[%s6265_s27 + $0xb28] sm:$0xff] %v1647_v37 }
  0xc5   : > { %1650 = vst [vmem:[%s6265_s27 + $0xb30] sm:$0xff] %v1649_v38  ;;  %1652 = vst [vmem:[%s6265_s27 + $0xb38] sm:$0xff] %v1651_v39  ;;  %v1653_v40 = vld [vmem:[%s6257_s26 + $0x1680] sm:$0xff]  ;;  %v1655_v41 = vld [vmem:[%s6257_s26 + $0x1690] sm:$0xff] }
  0xc6   : > { %v1657_v42 = vld [vmem:[%s6257_s26 + $0x16a0] sm:$0xff]  ;;  %1654 = vst [vmem:[%s6265_s27 + $0xb40] sm:$0xff] %v1653_v40  ;;  %1656 = vst [vmem:[%s6265_s27 + $0xb48] sm:$0xff] %v1655_v41  ;;  %v1659_v43 = vld [vmem:[%s6257_s26 + $0x16b0] sm:$0xff] }
  0xc7   : > { %1658 = vst [vmem:[%s6265_s27 + $0xb50] sm:$0xff] %v1657_v42  ;;  %v1661_v44 = vld [vmem:[%s6257_s26 + $0x16c0] sm:$0xff]  ;;  %v1663_v45 = vld [vmem:[%s6257_s26 + $0x16d0] sm:$0xff]  ;;  %1660 = vst [vmem:[%s6265_s27 + $0xb58] sm:$0xff] %v1659_v43 }
  0xc8   : > { %1662 = vst [vmem:[%s6265_s27 + $0xb60] sm:$0xff] %v1661_v44  ;;  %1664 = vst [vmem:[%s6265_s27 + $0xb68] sm:$0xff] %v1663_v45  ;;  %v1665_v46 = vld [vmem:[%s6257_s26 + $0x16e0] sm:$0xff]  ;;  %v1667_v47 = vld [vmem:[%s6257_s26 + $0x16f0] sm:$0xff] }
  0xc9   : > { %v1669_v48 = vld [vmem:[%s6257_s26 + $0x1700] sm:$0xff]  ;;  %1666 = vst [vmem:[%s6265_s27 + $0xb70] sm:$0xff] %v1665_v46  ;;  %1668 = vst [vmem:[%s6265_s27 + $0xb78] sm:$0xff] %v1667_v47  ;;  %v1671_v49 = vld [vmem:[%s6257_s26 + $0x1710] sm:$0xff] }
  0xca   : > { %1670 = vst [vmem:[%s6265_s27 + $0xb80] sm:$0xff] %v1669_v48  ;;  %v1673_v50 = vld [vmem:[%s6257_s26 + $0x1720] sm:$0xff]  ;;  %v1675_v51 = vld [vmem:[%s6257_s26 + $0x1730] sm:$0xff]  ;;  %1672 = vst [vmem:[%s6265_s27 + $0xb88] sm:$0xff] %v1671_v49 }
  0xcb   : > { %1674 = vst [vmem:[%s6265_s27 + $0xb90] sm:$0xff] %v1673_v50  ;;  %1676 = vst [vmem:[%s6265_s27 + $0xb98] sm:$0xff] %v1675_v51  ;;  %v1677_v52 = vld [vmem:[%s6257_s26 + $0x1740] sm:$0xff]  ;;  %v1679_v53 = vld [vmem:[%s6257_s26 + $0x1750] sm:$0xff] }
  0xcc   : > { %v1681_v54 = vld [vmem:[%s6257_s26 + $0x1760] sm:$0xff]  ;;  %1678 = vst [vmem:[%s6265_s27 + $0xba0] sm:$0xff] %v1677_v52  ;;  %1680 = vst [vmem:[%s6265_s27 + $0xba8] sm:$0xff] %v1679_v53  ;;  %v1683_v55 = vld [vmem:[%s6257_s26 + $0x1770] sm:$0xff] }
  0xcd   : > { %1682 = vst [vmem:[%s6265_s27 + $0xbb0] sm:$0xff] %v1681_v54  ;;  %v1685_v56 = vld [vmem:[%s6257_s26 + $0x1780] sm:$0xff]  ;;  %v1687_v57 = vld [vmem:[%s6257_s26 + $0x1790] sm:$0xff]  ;;  %1684 = vst [vmem:[%s6265_s27 + $0xbb8] sm:$0xff] %v1683_v55 }
  0xce   : > { %1686 = vst [vmem:[%s6265_s27 + $0xbc0] sm:$0xff] %v1685_v56  ;;  %1688 = vst [vmem:[%s6265_s27 + $0xbc8] sm:$0xff] %v1687_v57  ;;  %v1689_v58 = vld [vmem:[%s6257_s26 + $0x17a0] sm:$0xff]  ;;  %v1691_v59 = vld [vmem:[%s6257_s26 + $0x17b0] sm:$0xff] }
  0xcf   : > { %v1693_v60 = vld [vmem:[%s6257_s26 + $0x17c0] sm:$0xff]  ;;  %1690 = vst [vmem:[%s6265_s27 + $0xbd0] sm:$0xff] %v1689_v58  ;;  %1692 = vst [vmem:[%s6265_s27 + $0xbd8] sm:$0xff] %v1691_v59  ;;  %v1695_v61 = vld [vmem:[%s6257_s26 + $0x17d0] sm:$0xff] }
  0xd0   : > { %1694 = vst [vmem:[%s6265_s27 + $0xbe0] sm:$0xff] %v1693_v60  ;;  %v1697_v62 = vld [vmem:[%s6257_s26 + $0x17e0] sm:$0xff]  ;;  %v1699_v63 = vld [vmem:[%s6257_s26 + $0x17f0] sm:$0xff]  ;;  %1696 = vst [vmem:[%s6265_s27 + $0xbe8] sm:$0xff] %v1695_v61 }
  0xd1   : > { %1698 = vst [vmem:[%s6265_s27 + $0xbf0] sm:$0xff] %v1697_v62  ;;  %1700 = vst [vmem:[%s6265_s27 + $0xbf8] sm:$0xff] %v1699_v63 }
  0xd2 PF: > { %1706 = sbr.rel (!%p6245_p3) target bundleno = 218 (0xda), region = 62  ;;  %s1708_s28 = sand.u32 (%p6245_p3), 1, %s6191_s13  }
  0xd3   : > { %s5499_s29 = sshll.u32 (%p6245_p3), %s6195_s14, 4  ;;  %s5076_s30 = sshll.u32 (%p6245_p3), %s1708_s28, 6 }
  0xd4   : > { %s1713_s6 = scalar_lea.vmem (%p6245_p3), %s7566_s2, %s5499_s29  ;;  %s1710_s7 = scalar_lea.vmem (%p6245_p3), [#allocation3], %s5076_s30 }
  0xd5   : > { %v1726_v0 = vld [vmem:[%s1713_s6] sm:$0xff] (%p6245_p3)  ;;  %v1728_v1 = vld [vmem:[%s1713_s6 + $0x8] sm:$0xff] (%p6245_p3) }
  0xd6   : > { %v1730_v2 = vld [vmem:[%s1713_s6 + $0x20] sm:$0xff] (%p6245_p3)  ;;  %1727 = vst [vmem:[%s1710_s7] sm:$0xff] (%p6245_p3), %v1726_v0  ;;  %1729 = vst [vmem:[%s1710_s7 + $0x8] sm:$0xff] (%p6245_p3), %v1728_v1  ;;  %v1732_v3 = vld [vmem:[%s1713_s6 + $0x28] sm:$0xff] (%p6245_p3) }
  0xd7   : > { %1731 = vst [vmem:[%s1710_s7 + $0x10] sm:$0xff] (%p6245_p3), %v1730_v2  ;;  %v1734_v4 = vld [vmem:[%s1713_s6 + $0x40] sm:$0xff] (%p6245_p3)  ;;  %v1736_v5 = vld [vmem:[%s1713_s6 + $0x48] sm:$0xff] (%p6245_p3)  ;;  %1733 = vst [vmem:[%s1710_s7 + $0x18] sm:$0xff] (%p6245_p3), %v1732_v3 }
  0xd8   : > { %1735 = vst [vmem:[%s1710_s7 + $0x20] sm:$0xff] (%p6245_p3), %v1734_v4  ;;  %1737 = vst [vmem:[%s1710_s7 + $0x28] sm:$0xff] (%p6245_p3), %v1736_v5  ;;  %v1738_v6 = vld [vmem:[%s1713_s6 + $0x60] sm:$0xff] (%p6245_p3)  ;;  %v1740_v7 = vld [vmem:[%s1713_s6 + $0x68] sm:$0xff] (%p6245_p3) }
  0xd9   : > { %1739 = vst [vmem:[%s1710_s7 + $0x30] sm:$0xff] %v1738_v6  ;;  %1741 = vst [vmem:[%s1710_s7 + $0x38] sm:$0xff] %v1740_v7 }
  0xda PF: > { %p5079_p5 = scmp.ge.s32.totalorder %s6195_s14, 1  ;;  %p1746_p6 = scmp.lt.s32.totalorder %s6195_s14, 3 }
  0xdc   : > { %p1747_p7 = pnand %p5079_p5, %p1746_p6 }
  0xdd   : > { %s1753_s8 = sand.u32 (!%p1747_p7), 1, %s6187_s12   ;;  %v7042_v8 = vld [vmem:[%s7564_s0] sm:$0xff] (!%p1747_p7)  ;;  %v7047_v9 = vld [vmem:[%s7564_s0 + $0x30] sm:$0xff] (!%p1747_p7)  ;;  %p1788_p8 = scmp.lt.s32.totalorder (!%p1747_p7), %s5070_s15, 1  ;;  %vm4991_vm0 = vcmask (!%p1747_p7), 41984  }
  0xde   : > { %1750 = sbr.rel (%p1747_p7) target bundleno = 1053 (0x41d), region = 85  ;;  %v5083_v10 = vcombine.high (!%p1747_p7), %v7042_v8, %v7042_v8  ;;  %v5095_v11 = vcombine.high (!%p1747_p7), %v7047_v9, %v7047_v9  ;;  %s5080_s22 = sshll.u32 (!%p1747_p7), %s1753_s8, 6 }
  0xdf   : > { %s5548_s18 = smul.u32 (!%p1747_p7), 3072, %s1753_s8  ;;  %s7533_s23 = scalar_lea.vmem (!%p1747_p7), [#allocation3], %s5080_s22 }
  0xe0   : > { %4224 = vmatprep.mubr.bf16.mxu1 (!%p1747_p7), %v5083_v10  ;;  %4470 = vmatprep.mubr.bf16.mxu0 (!%p1747_p7), %v5095_v11 }
  0xe1   : > { %s7055_s20 = scalar_lea.vmem (!%p1747_p7), [#allocation2], %s5548_s18 }
  0xe2   : > { %v5573_v12 = vld [vmem:[%s7055_s20 + $0x4] ss:$8 sps:$4 sm:$0xff] (!%p1747_p7)   ;;  %v5577_v14 = vld [vmem:[%s7055_s20] ss:$8 sps:$4 sm:$0xff] (!%p1747_p7)   ;;  %v5579_v16 = vld [vmem:[%s7055_s20 + $0x14] ss:$8 sps:$4 sm:$0xff] (!%p1747_p7)  }
  0xe3   : > { %v5575_v13 = vld [vmem:[%s7055_s20 + $0x604] ss:$8 sps:$4 sm:$0xff] (!%p1747_p7)   ;;  %4192 = vmatprep.subr.bf16.mxu1 (!%p1747_p7), %v5573_v12  ;;  %v5578_v15 = vld [vmem:[%s7055_s20 + $0x600] ss:$8 sps:$4 sm:$0xff] (!%p1747_p7)   ;;  %v5581_v17 = vld [vmem:[%s7055_s20 + $0x614] ss:$8 sps:$4 sm:$0xff] (!%p1747_p7)  }
  0xe4   : > { %4438 = vmatprep.subr.bf16.mxu0 (!%p1747_p7), %v5575_v13  ;;  %4193 = vmatpush1.bf16.msra.mxu1 (!%p1747_p7), %v5577_v14  ;;  %v5583_v18 = vld [vmem:[%s7055_s20 + $0x10] ss:$8 sps:$4 sm:$0xff] (!%p1747_p7)   ;;  %v5585_v20 = vld [vmem:[%s7055_s20 + $0x24] ss:$8 sps:$4 sm:$0xff] (!%p1747_p7)   ;;  %v5589_v22 = vld [vmem:[%s7055_s20 + $0x20] ss:$8 sps:$4 sm:$0xff] (!%p1747_p7)  }
  0xe5   : > { %4439 = vmatpush1.bf16.msra.mxu0 %v5578_v15  ;;  %4194 = vmatprep.subr.bf16.mxu1 %v5579_v16  ;;  %v5584_v19 = vld [vmem:[%s7055_s20 + $0x610] ss:$8 sps:$4 sm:$0xff]   ;;  %v5587_v21 = vld [vmem:[%s7055_s20 + $0x624] ss:$8 sps:$4 sm:$0xff]   ;;  %v5590_v23 = vld [vmem:[%s7055_s20 + $0x620] ss:$8 sps:$4 sm:$0xff]   ;;  %v5082_v16 = vcombine.low %v7042_v8, %v7042_v8 }
  0xe6   : > { %4440 = vmatprep.subr.bf16.mxu0 %v5581_v17  ;;  %v5591_v24 = vld [vmem:[%s7055_s20 + $0x34] ss:$8 sps:$4 sm:$0xff]   ;;  %v5595_v26 = vld [vmem:[%s7055_s20 + $0x30] ss:$8 sps:$4 sm:$0xff]   ;;  %v5597_v28 = vld [vmem:[%s7055_s20 + $0x44] ss:$8 sps:$4 sm:$0xff]  }
  0xe7   : > { %v5593_v25 = vld [vmem:[%s7055_s20 + $0x634] ss:$8 sps:$4 sm:$0xff]   ;;  %v5596_v27 = vld [vmem:[%s7055_s20 + $0x630] ss:$8 sps:$4 sm:$0xff]   ;;  %v5599_v29 = vld [vmem:[%s7055_s20 + $0x644] ss:$8 sps:$4 sm:$0xff]  }
  0xe8   : > { %4195 = vmatpush1.bf16.msra.mxu1 %v5583_v18  ;;  %v5601_v30 = vld [vmem:[%s7055_s20 + $0x40] ss:$8 sps:$4 sm:$0xff]   ;;  %v5603_v32 = vld [vmem:[%s7055_s20 + $0x54] ss:$8 sps:$4 sm:$0xff]   ;;  %v5607_v34 = vld [vmem:[%s7055_s20 + $0x50] ss:$8 sps:$4 sm:$0xff]   ;;  %v5094_v18 = vcombine.low %v7047_v9, %v7047_v9 }
  0xe9   : > { %4441 = vmatpush1.bf16.msra.mxu0 %v5584_v19  ;;  %4196 = vmatprep.subr.bf16.mxu1 %v5585_v20  ;;  %v5602_v31 = vld [vmem:[%s7055_s20 + $0x640] ss:$8 sps:$4 sm:$0xff]   ;;  %v5605_v33 = vld [vmem:[%s7055_s20 + $0x654] ss:$8 sps:$4 sm:$0xff]   ;;  %v5608_v35 = vld [vmem:[%s7055_s20 + $0x650] ss:$8 sps:$4 sm:$0xff]  }
  0xea   : > { %4442 = vmatprep.subr.bf16.mxu0 %v5587_v21  ;;  %v5609_v36 = vld [vmem:[%s7055_s20 + $0x64] ss:$8 sps:$4 sm:$0xff]   ;;  %v5613_v38 = vld [vmem:[%s7055_s20 + $0x60] ss:$8 sps:$4 sm:$0xff]   ;;  %v5615_v40 = vld [vmem:[%s7055_s20 + $0x74] ss:$8 sps:$4 sm:$0xff]  }
  0xeb   : > { %v5611_v37 = vld [vmem:[%s7055_s20 + $0x664] ss:$8 sps:$4 sm:$0xff]   ;;  %v5614_v39 = vld [vmem:[%s7055_s20 + $0x660] ss:$8 sps:$4 sm:$0xff]   ;;  %v5617_v41 = vld [vmem:[%s7055_s20 + $0x674] ss:$8 sps:$4 sm:$0xff]  }
  0xec   : > { %4197 = vmatpush1.bf16.msra.mxu1 %v5589_v22  ;;  %v5619_v42 = vld [vmem:[%s7055_s20 + $0x70] ss:$8 sps:$4 sm:$0xff]   ;;  %v5621_v44 = vld [vmem:[%s7055_s20 + $0x84] ss:$8 sps:$4 sm:$0xff]   ;;  %v5625_v46 = vld [vmem:[%s7055_s20 + $0x80] ss:$8 sps:$4 sm:$0xff]  }
  0xed   : > { %4443 = vmatpush1.bf16.msra.mxu0 %v5590_v23  ;;  %4198 = vmatprep.subr.bf16.mxu1 %v5591_v24  ;;  %v5620_v43 = vld [vmem:[%s7055_s20 + $0x670] ss:$8 sps:$4 sm:$0xff]   ;;  %v5623_v45 = vld [vmem:[%s7055_s20 + $0x684] ss:$8 sps:$4 sm:$0xff]   ;;  %v5626_v47 = vld [vmem:[%s7055_s20 + $0x680] ss:$8 sps:$4 sm:$0xff]  }
  0xee   : > { %4444 = vmatprep.subr.bf16.mxu0 %v5593_v25  ;;  %v5627_v48 = vld [vmem:[%s7055_s20 + $0x94] ss:$8 sps:$4 sm:$0xff]   ;;  %v5631_v50 = vld [vmem:[%s7055_s20 + $0x90] ss:$8 sps:$4 sm:$0xff]   ;;  %v5633_v52 = vld [vmem:[%s7055_s20 + $0xa4] ss:$8 sps:$4 sm:$0xff]  }
  0xef   : > { %v5629_v49 = vld [vmem:[%s7055_s20 + $0x694] ss:$8 sps:$4 sm:$0xff]   ;;  %v5632_v51 = vld [vmem:[%s7055_s20 + $0x690] ss:$8 sps:$4 sm:$0xff]   ;;  %v5635_v53 = vld [vmem:[%s7055_s20 + $0x6a4] ss:$8 sps:$4 sm:$0xff]  }
  0xf0   : > { %4199 = vmatpush1.bf16.msra.mxu1 %v5595_v26  ;;  %v5637_v54 = vld [vmem:[%s7055_s20 + $0xa0] ss:$8 sps:$4 sm:$0xff]   ;;  %v5639_v56 = vld [vmem:[%s7055_s20 + $0xb4] ss:$8 sps:$4 sm:$0xff]   ;;  %v5643_v58 = vld [vmem:[%s7055_s20 + $0xb0] ss:$8 sps:$4 sm:$0xff]  }
  0xf1   : > { %4445 = vmatpush1.bf16.msra.mxu0 %v5596_v27  ;;  %4200 = vmatprep.subr.bf16.mxu1 %v5597_v28  ;;  %v5638_v55 = vld [vmem:[%s7055_s20 + $0x6a0] ss:$8 sps:$4 sm:$0xff]   ;;  %v5641_v57 = vld [vmem:[%s7055_s20 + $0x6b4] ss:$8 sps:$4 sm:$0xff]   ;;  %v5644_v59 = vld [vmem:[%s7055_s20 + $0x6b0] ss:$8 sps:$4 sm:$0xff]  }
  0xf2   : > { %4446 = vmatprep.subr.bf16.mxu0 %v5599_v29  ;;  %v5645_v60 = vld [vmem:[%s7055_s20 + $0xc4] ss:$8 sps:$4 sm:$0xff]   ;;  %v5649_v62 = vld [vmem:[%s7055_s20 + $0xc0] ss:$8 sps:$4 sm:$0xff]   ;;  %v5651_v0 = vld [vmem:[%s7055_s20 + $0xd4] ss:$8 sps:$4 sm:$0xff]  }
  0xf3   : > { %v5647_v61 = vld [vmem:[%s7055_s20 + $0x6c4] ss:$8 sps:$4 sm:$0xff]   ;;  %v5650_v63 = vld [vmem:[%s7055_s20 + $0x6c0] ss:$8 sps:$4 sm:$0xff]   ;;  %v5653_v1 = vld [vmem:[%s7055_s20 + $0x6d4] ss:$8 sps:$4 sm:$0xff]  }
  0xf4   : > { %4201 = vmatpush1.bf16.msra.mxu1 %v5601_v30  ;;  %v5655_v2 = vld [vmem:[%s7055_s20 + $0xd0] ss:$8 sps:$4 sm:$0xff]   ;;  %v5657_v4 = vld [vmem:[%s7055_s20 + $0xe4] ss:$8 sps:$4 sm:$0xff]   ;;  %v5661_v6 = vld [vmem:[%s7055_s20 + $0xe0] ss:$8 sps:$4 sm:$0xff]  }
  0xf5   : > { %4447 = vmatpush1.bf16.msra.mxu0 %v5602_v31  ;;  %4202 = vmatprep.subr.bf16.mxu1 %v5603_v32  ;;  %v5656_v3 = vld [vmem:[%s7055_s20 + $0x6d0] ss:$8 sps:$4 sm:$0xff]   ;;  %v5659_v5 = vld [vmem:[%s7055_s20 + $0x6e4] ss:$8 sps:$4 sm:$0xff]   ;;  %v5662_v7 = vld [vmem:[%s7055_s20 + $0x6e0] ss:$8 sps:$4 sm:$0xff]  }
  0xf6   : > { %4448 = vmatprep.subr.bf16.mxu0 %v5605_v33  ;;  %v5663_v10 = vld [vmem:[%s7055_s20 + $0xf4] ss:$8 sps:$4 sm:$0xff]   ;;  %v5667_v12 = vld [vmem:[%s7055_s20 + $0xf0] ss:$8 sps:$4 sm:$0xff]   ;;  %v5673_v14 = vld [vmem:[%s7055_s20 + $0x104] ss:$8 sps:$4 sm:$0xff]  }
  0xf7   : > { %v5665_v11 = vld [vmem:[%s7055_s20 + $0x6f4] ss:$8 sps:$4 sm:$0xff]   ;;  %v5668_v13 = vld [vmem:[%s7055_s20 + $0x6f0] ss:$8 sps:$4 sm:$0xff]   ;;  %v5678_v15 = vld [vmem:[%s7055_s20 + $0x704] ss:$8 sps:$4 sm:$0xff]  }
  0xf8   : > { %4203 = vmatpush1.bf16.msra.mxu1 %v5607_v34  ;;  %v5671_v17 = vld [vmem:[%s7055_s20 + $0x100] ss:$8 sps:$4 sm:$0xff]   ;;  %v5681_v20 = vld [vmem:[%s7055_s20 + $0x114] ss:$8 sps:$4 sm:$0xff]   ;;  %v5679_v8 = vld [vmem:[%s7055_s20 + $0x110] ss:$8 sps:$4 sm:$0xff]  }
  0xf9   : > { %4449 = vmatpush1.bf16.msra.mxu0 %v5608_v35  ;;  %4204 = vmatprep.subr.bf16.mxu1 %v5609_v36  ;;  %v5676_v19 = vld [vmem:[%s7055_s20 + $0x700] ss:$8 sps:$4 sm:$0xff]   ;;  %v5684_v21 = vld [vmem:[%s7055_s20 + $0x714] ss:$8 sps:$4 sm:$0xff]   ;;  %v5682_v22 = vld [vmem:[%s7055_s20 + $0x710] ss:$8 sps:$4 sm:$0xff]  }
  0xfa   : > { %4450 = vmatprep.subr.bf16.mxu0 %v5611_v37  ;;  %v5687_v9 = vld [vmem:[%s7055_s20 + $0x124] ss:$8 sps:$4 sm:$0xff]   ;;  %v5685_v24 = vld [vmem:[%s7055_s20 + $0x120] ss:$8 sps:$4 sm:$0xff]   ;;  %v5693_v26 = vld [vmem:[%s7055_s20 + $0x134] ss:$8 sps:$4 sm:$0xff]  }
  0xfb   : > { %v5690_v23 = vld [vmem:[%s7055_s20 + $0x724] ss:$8 sps:$4 sm:$0xff]   ;;  %v5688_v25 = vld [vmem:[%s7055_s20 + $0x720] ss:$8 sps:$4 sm:$0xff]   ;;  %v5696_v27 = vld [vmem:[%s7055_s20 + $0x734] ss:$8 sps:$4 sm:$0xff]  }
  0xfc   : > { %4205 = vmatpush1.bf16.msra.mxu1 %v5613_v38  ;;  %v5691_v28 = vld [vmem:[%s7055_s20 + $0x130] ss:$8 sps:$4 sm:$0xff]   ;;  %v5699_v30 = vld [vmem:[%s7055_s20 + $0x144] ss:$8 sps:$4 sm:$0xff]   ;;  %v5697_v32 = vld [vmem:[%s7055_s20 + $0x140] ss:$8 sps:$4 sm:$0xff]  }
  0xfd   : > { %4451 = vmatpush1.bf16.msra.mxu0 %v5614_v39  ;;  %4206 = vmatprep.subr.bf16.mxu1 %v5615_v40  ;;  %v5694_v29 = vld [vmem:[%s7055_s20 + $0x730] ss:$8 sps:$4 sm:$0xff]   ;;  %v5702_v31 = vld [vmem:[%s7055_s20 + $0x744] ss:$8 sps:$4 sm:$0xff]   ;;  %v5700_v33 = vld [vmem:[%s7055_s20 + $0x740] ss:$8 sps:$4 sm:$0xff]  }
  0xfe   : > { %4452 = vmatprep.subr.bf16.mxu0 %v5617_v41  ;;  %v5705_v34 = vld [vmem:[%s7055_s20 + $0x154] ss:$8 sps:$4 sm:$0xff]   ;;  %v5703_v36 = vld [vmem:[%s7055_s20 + $0x150] ss:$8 sps:$4 sm:$0xff]   ;;  %v5711_v38 = vld [vmem:[%s7055_s20 + $0x164] ss:$8 sps:$4 sm:$0xff]  }
  0xff   : > { %v5708_v35 = vld [vmem:[%s7055_s20 + $0x754] ss:$8 sps:$4 sm:$0xff]   ;;  %v5706_v37 = vld [vmem:[%s7055_s20 + $0x750] ss:$8 sps:$4 sm:$0xff]   ;;  %v5714_v39 = vld [vmem:[%s7055_s20 + $0x764] ss:$8 sps:$4 sm:$0xff]  }
 0x100   : > { %4207 = vmatpush1.bf16.msra.mxu1 %v5619_v42  ;;  %v7154_v40 = vld [vmem:[%s7564_s0 + $0x8] sm:$0xff]  ;;  %v7161_v42 = vld [vmem:[%s7564_s0 + $0x38] sm:$0xff]  ;;  %s7573_s15 = smov (!%p1788_p8, %s5070_s15), 1 }
 0x101   : > { %4453 = vmatpush1.bf16.msra.mxu0 %v5620_v43  ;;  %4208 = vmatprep.subr.bf16.mxu1 %v5621_v44  ;;  %v5085_v41 = vcombine.high %v7154_v40, %v7154_v40  ;;  %v5709_v43 = vld [vmem:[%s7055_s20 + $0x160] ss:$8 sps:$4 sm:$0xff]   ;;  %s5081_s12 = sshll.u32 %s7573_s15, 1 }
 0x102   : > { %4454 = vmatprep.subr.bf16.mxu0 %v5623_v45  ;;  %v5712_v44 = vld [vmem:[%s7055_s20 + $0x760] ss:$8 sps:$4 sm:$0xff]   ;;  %v5097_v45 = vcombine.high %v7161_v42, %v7161_v42  ;;  %s1791_s24 = scalar_lea.vmem %s7567_s3, %s5081_s12 }
 0x104   : > { %4209 = vmatpush1.bf16.msra.mxu1 %v5625_v46  ;;  %v5717_v46 = vld [vmem:[%s7055_s20 + $0x174] ss:$8 sps:$4 sm:$0xff]  }
 0x105   : > { %4455 = vmatpush1.bf16.msra.mxu0 %v5626_v47  ;;  %4210 = vmatprep.subr.bf16.mxu1 %v5627_v48  ;;  %v5720_v47 = vld [vmem:[%s7055_s20 + $0x774] ss:$8 sps:$4 sm:$0xff]   ;;  %v5715_v48 = vld [vmem:[%s7055_s20 + $0x170] ss:$8 sps:$4 sm:$0xff]  }
 0x106   : > { %4456 = vmatprep.subr.bf16.mxu0 %v5629_v49  ;;  %v5718_v49 = vld [vmem:[%s7055_s20 + $0x770] ss:$8 sps:$4 sm:$0xff]  }
 0x108   : > { %4211 = vmatpush1.bf16.msra.mxu1 %v5631_v50  ;;  %v5723_v50 = vld [vmem:[%s7055_s20 + $0x184] ss:$8 sps:$4 sm:$0xff]  }
 0x109   : > { %4457 = vmatpush1.bf16.msra.mxu0 %v5632_v51  ;;  %4212 = vmatprep.subr.bf16.mxu1 %v5633_v52  ;;  %v5726_v51 = vld [vmem:[%s7055_s20 + $0x784] ss:$8 sps:$4 sm:$0xff]   ;;  %v5721_v52 = vld [vmem:[%s7055_s20 + $0x180] ss:$8 sps:$4 sm:$0xff]  }
 0x10a   : > { %4458 = vmatprep.subr.bf16.mxu0 %v5635_v53  ;;  %v5724_v53 = vld [vmem:[%s7055_s20 + $0x780] ss:$8 sps:$4 sm:$0xff]  }
 0x10c   : > { %4213 = vmatpush1.bf16.msra.mxu1 %v5637_v54  ;;  %v5729_v54 = vld [vmem:[%s7055_s20 + $0x194] ss:$8 sps:$4 sm:$0xff]  }
 0x10d   : > { %4459 = vmatpush1.bf16.msra.mxu0 %v5638_v55  ;;  %4214 = vmatprep.subr.bf16.mxu1 %v5639_v56  ;;  %v5732_v55 = vld [vmem:[%s7055_s20 + $0x794] ss:$8 sps:$4 sm:$0xff]   ;;  %v5727_v56 = vld [vmem:[%s7055_s20 + $0x190] ss:$8 sps:$4 sm:$0xff]  }
 0x10e   : > { %4460 = vmatprep.subr.bf16.mxu0 %v5641_v57  ;;  %v5730_v57 = vld [vmem:[%s7055_s20 + $0x790] ss:$8 sps:$4 sm:$0xff]  }
 0x110   : > { %4215 = vmatpush1.bf16.msra.mxu1 %v5643_v58  ;;  %v5735_v58 = vld [vmem:[%s7055_s20 + $0x1a4] ss:$8 sps:$4 sm:$0xff]  }
 0x111   : > { %4461 = vmatpush1.bf16.msra.mxu0 %v5644_v59  ;;  %4216 = vmatprep.subr.bf16.mxu1 %v5645_v60  ;;  %v5738_v59 = vld [vmem:[%s7055_s20 + $0x7a4] ss:$8 sps:$4 sm:$0xff]   ;;  %v5733_v60 = vld [vmem:[%s7055_s20 + $0x1a0] ss:$8 sps:$4 sm:$0xff]  }
 0x112   : > { %4462 = vmatprep.subr.bf16.mxu0 %v5647_v61  ;;  %v5736_v61 = vld [vmem:[%s7055_s20 + $0x7a0] ss:$8 sps:$4 sm:$0xff]  }
 0x114   : > { %4217 = vmatpush1.bf16.msra.mxu1 %v5649_v62  ;;  %v5741_v62 = vld [vmem:[%s7055_s20 + $0x1b4] ss:$8 sps:$4 sm:$0xff]  }
 0x115   : > { %4463 = vmatpush1.bf16.msra.mxu0 %v5650_v63  ;;  %4218 = vmatprep.subr.bf16.mxu1 %v5651_v0  ;;  %v5744_v63 = vld [vmem:[%s7055_s20 + $0x7b4] ss:$8 sps:$4 sm:$0xff]   ;;  %v5739_v0 = vld [vmem:[%s7055_s20 + $0x1b0] ss:$8 sps:$4 sm:$0xff]  }
 0x116   : > { %4464 = vmatprep.subr.bf16.mxu0 %v5653_v1  ;;  %v5742_v1 = vld [vmem:[%s7055_s20 + $0x7b0] ss:$8 sps:$4 sm:$0xff]  }
 0x118   : > { %4219 = vmatpush1.bf16.msra.mxu1 %v5655_v2  ;;  %v5747_v2 = vld [vmem:[%s7055_s20 + $0x1c4] ss:$8 sps:$4 sm:$0xff]  }
 0x119   : > { %4465 = vmatpush1.bf16.msra.mxu0 %v5656_v3  ;;  %4220 = vmatprep.subr.bf16.mxu1 %v5657_v4  ;;  %v5750_v3 = vld [vmem:[%s7055_s20 + $0x7c4] ss:$8 sps:$4 sm:$0xff]   ;;  %v5745_v4 = vld [vmem:[%s7055_s20 + $0x1c0] ss:$8 sps:$4 sm:$0xff]  }
 0x11a   : > { %4466 = vmatprep.subr.bf16.mxu0 %v5659_v5  ;;  %v5748_v5 = vld [vmem:[%s7055_s20 + $0x7c0] ss:$8 sps:$4 sm:$0xff]  }
 0x11c   : > { %4221 = vmatpush1.bf16.msra.mxu1 %v5661_v6  ;;  %v5753_v6 = vld [vmem:[%s7055_s20 + $0x1d4] ss:$8 sps:$4 sm:$0xff]  }
 0x11d   : > { %4467 = vmatpush1.bf16.msra.mxu0 %v5662_v7  ;;  %4222 = vmatprep.subr.bf16.mxu1 %v5663_v10  ;;  %v5756_v7 = vld [vmem:[%s7055_s20 + $0x7d4] ss:$8 sps:$4 sm:$0xff]   ;;  %v5751_v10 = vld [vmem:[%s7055_s20 + $0x1d0] ss:$8 sps:$4 sm:$0xff]  }
 0x11e   : > { %4468 = vmatprep.subr.bf16.mxu0 %v5665_v11  ;;  %v5754_v11 = vld [vmem:[%s7055_s20 + $0x7d0] ss:$8 sps:$4 sm:$0xff]  }
 0x120   : > { %4223 = vmatpush1.bf16.msra.mxu1 %v5667_v12  ;;  %v5759_v12 = vld [vmem:[%s7055_s20 + $0x1e4] ss:$8 sps:$4 sm:$0xff]  }
 0x121   : > { %4469 = vmatpush1.bf16.msra.mxu0 %v5668_v13  ;;  %4233 = vmatprep.subr.bf16.mxu1 %v5673_v14  ;;  %v5762_v13 = vld [vmem:[%s7055_s20 + $0x7e4] ss:$8 sps:$4 sm:$0xff]   ;;  %v5757_v14 = vld [vmem:[%s7055_s20 + $0x1e0] ss:$8 sps:$4 sm:$0xff]  }
 0x122   : > { %4479 = vmatprep.subr.bf16.mxu0 %v5678_v15  ;;  %v5760_v15 = vld [vmem:[%s7055_s20 + $0x7e0] ss:$8 sps:$4 sm:$0xff]  }
 0x123   : > { %4225 = vmatmul.mubr.bf16.vlgmr.msra.gmra.mrb[0].mxu1 %v5082_v16  ;;  %v5765_v16 = vld [vmem:[%s7055_s20 + $0x1f4] ss:$8 sps:$4 sm:$0xff]  }
 0x124   : > { %4471 = vmatmul.mubr.bf16.vlgmr.msra.gmra.mrb[0].mxu0 %v5094_v18  ;;  %4234 = vmatpush1.bf16.msra.mxu1 %v5671_v17  ;;  %v5768_v17 = vld [vmem:[%s7055_s20 + $0x7f4] ss:$8 sps:$4 sm:$0xff]   ;;  %v5763_v18 = vld [vmem:[%s7055_s20 + $0x1f0] ss:$8 sps:$4 sm:$0xff]  }
 0x125   : > { %4480 = vmatpush1.bf16.msra.mxu0 %v5676_v19  ;;  %4235 = vmatprep.subr.bf16.mxu1 %v5681_v20  ;;  %v5766_v19 = vld [vmem:[%s7055_s20 + $0x7f0] ss:$8 sps:$4 sm:$0xff]   ;;  %v5773_v20 = vld [vmem:[%s7055_s20 + $0x204] ss:$8 sps:$4 sm:$0xff]  }
 0x126   : > { %4481 = vmatprep.subr.bf16.mxu0 %v5684_v21  ;;  %4265 = vmatprep.mubr.bf16.mxu1 %v5085_v41  ;;  %v5778_v21 = vld [vmem:[%s7055_s20 + $0x804] ss:$8 sps:$4 sm:$0xff]  }
 0x127   : > { %4511 = vmatprep.mubr.bf16.mxu0 %v5097_v45  ;;  %v5802_v41 = vld [vmem:[%s7055_s20 + $0x844] ss:$8 sps:$4 sm:$0xff]   ;;  %v5808_v45 = vld [vmem:[%s7055_s20 + $0x854] ss:$8 sps:$4 sm:$0xff]  }
 0x128   : > { %4236 = vmatpush1.bf16.msra.mxu1 %v5679_v8  ;;  %v5084_v8 = vcombine.low %v7154_v40, %v7154_v40  ;;  %v5799_v40 = vld [vmem:[%s7055_s20 + $0x244] ss:$8 sps:$4 sm:$0xff]  }
 0x129   : > { %4482 = vmatpush1.bf16.msra.mxu0 %v5682_v22  ;;  %4237 = vmatprep.subr.bf16.mxu1 %v5687_v9  ;;  %v5771_v22 = vld [vmem:[%s7055_s20 + $0x200] ss:$8 sps:$4 sm:$0xff]   ;;  %v5096_v9 = vcombine.low %v7161_v42, %v7161_v42 }
 0x12a   : > { %4483 = vmatprep.subr.bf16.mxu0 %v5690_v23  ;;  %v5776_v23 = vld [vmem:[%s7055_s20 + $0x800] ss:$8 sps:$4 sm:$0xff]  }
 0x12b   : > { %v5797_v42 = vld [vmem:[%s7055_s20 + $0x240] ss:$8 sps:$4 sm:$0xff]  }
 0x12c   : > { %4238 = vmatpush1.bf16.msra.mxu1 %v5685_v24  ;;  %v5781_v24 = vld [vmem:[%s7055_s20 + $0x214] ss:$8 sps:$4 sm:$0xff]  }
 0x12d   : > { %4484 = vmatpush1.bf16.msra.mxu0 %v5688_v25  ;;  %4239 = vmatprep.subr.bf16.mxu1 %v5693_v26  ;;  %v7215_v25 = vld [vmem:[%s7564_s0 + $0x10] sm:$0xff] }
 0x12e   : > { %4485 = vmatprep.subr.bf16.mxu0 %v5696_v27  ;;  %v5784_v26 = vld [vmem:[%s7055_s20 + $0x814] ss:$8 sps:$4 sm:$0xff]   ;;  %v5087_v27 = vcombine.high %v7215_v25, %v7215_v25 }
 0x130   : > { %4240 = vmatpush1.bf16.msra.mxu1 %v5691_v28  ;;  %v7223_v28 = vld [vmem:[%s7564_s0 + $0x40] sm:$0xff] }
 0x131   : > { %4486 = vmatpush1.bf16.msra.mxu0 %v5694_v29  ;;  %4241 = vmatprep.subr.bf16.mxu1 %v5699_v30  ;;  %v5779_v29 = vld [vmem:[%s7055_s20 + $0x210] ss:$8 sps:$4 sm:$0xff]  }
 0x132   : > { %4487 = vmatprep.subr.bf16.mxu0 %v5702_v31  ;;  %v5782_v30 = vld [vmem:[%s7055_s20 + $0x810] ss:$8 sps:$4 sm:$0xff]   ;;  %v5099_v31 = vcombine.high %v7223_v28, %v7223_v28 }
 0x134   : > { %4242 = vmatpush1.bf16.msra.mxu1 %v5697_v32  ;;  %v5787_v32 = vld [vmem:[%s7055_s20 + $0x224] ss:$8 sps:$4 sm:$0xff]  }
 0x135   : > { %4488 = vmatpush1.bf16.msra.mxu0 %v5700_v33  ;;  %4243 = vmatprep.subr.bf16.mxu1 %v5705_v34  ;;  %v5790_v33 = vld [vmem:[%s7055_s20 + $0x824] ss:$8 sps:$4 sm:$0xff]   ;;  %v5785_v34 = vld [vmem:[%s7055_s20 + $0x220] ss:$8 sps:$4 sm:$0xff]  }
 0x136   : > { %4489 = vmatprep.subr.bf16.mxu0 %v5708_v35  ;;  %v5788_v35 = vld [vmem:[%s7055_s20 + $0x820] ss:$8 sps:$4 sm:$0xff]  }
 0x138   : > { %4244 = vmatpush1.bf16.msra.mxu1 %v5703_v36  ;;  %v5793_v36 = vld [vmem:[%s7055_s20 + $0x234] ss:$8 sps:$4 sm:$0xff]  }
 0x139   : > { %4490 = vmatpush1.bf16.msra.mxu0 %v5706_v37  ;;  %4245 = vmatprep.subr.bf16.mxu1 %v5711_v38  ;;  %v5796_v37 = vld [vmem:[%s7055_s20 + $0x834] ss:$8 sps:$4 sm:$0xff]   ;;  %v5791_v38 = vld [vmem:[%s7055_s20 + $0x230] ss:$8 sps:$4 sm:$0xff]  }
 0x13a   : > { %4491 = vmatprep.subr.bf16.mxu0 %v5714_v39  ;;  %v5794_v39 = vld [vmem:[%s7055_s20 + $0x830] ss:$8 sps:$4 sm:$0xff]  }
 0x13c   : > { %4246 = vmatpush1.bf16.msra.mxu1 %v5709_v43  ;;  %v5800_v43 = vld [vmem:[%s7055_s20 + $0x840] ss:$8 sps:$4 sm:$0xff]  }
 0x13d   : > { %4492 = vmatpush1.bf16.msra.mxu0 %v5712_v44  ;;  %4247 = vmatprep.subr.bf16.mxu1 %v5717_v46  ;;  %v5805_v44 = vld [vmem:[%s7055_s20 + $0x254] ss:$8 sps:$4 sm:$0xff]   ;;  %v5803_v46 = vld [vmem:[%s7055_s20 + $0x250] ss:$8 sps:$4 sm:$0xff]  }
 0x13e   : > { %4493 = vmatprep.subr.bf16.mxu0 %v5720_v47  ;;  %v5806_v47 = vld [vmem:[%s7055_s20 + $0x850] ss:$8 sps:$4 sm:$0xff]  }
 0x140   : > { %4248 = vmatpush1.bf16.msra.mxu1 %v5715_v48  ;;  %v5811_v48 = vld [vmem:[%s7055_s20 + $0x264] ss:$8 sps:$4 sm:$0xff]  }
 0x141   : > { %4494 = vmatpush1.bf16.msra.mxu0 %v5718_v49  ;;  %4249 = vmatprep.subr.bf16.mxu1 %v5723_v50  ;;  %v5814_v49 = vld [vmem:[%s7055_s20 + $0x864] ss:$8 sps:$4 sm:$0xff]   ;;  %v5809_v50 = vld [vmem:[%s7055_s20 + $0x260] ss:$8 sps:$4 sm:$0xff]  }
 0x142   : > { %4495 = vmatprep.subr.bf16.mxu0 %v5726_v51  ;;  %v5812_v51 = vld [vmem:[%s7055_s20 + $0x860] ss:$8 sps:$4 sm:$0xff]  }
 0x144   : > { %4250 = vmatpush1.bf16.msra.mxu1 %v5721_v52  ;;  %v5817_v52 = vld [vmem:[%s7055_s20 + $0x274] ss:$8 sps:$4 sm:$0xff]  }
 0x145   : > { %4496 = vmatpush1.bf16.msra.mxu0 %v5724_v53  ;;  %4251 = vmatprep.subr.bf16.mxu1 %v5729_v54  ;;  %v5820_v53 = vld [vmem:[%s7055_s20 + $0x874] ss:$8 sps:$4 sm:$0xff]   ;;  %v5815_v54 = vld [vmem:[%s7055_s20 + $0x270] ss:$8 sps:$4 sm:$0xff]  }
 0x146   : > { %4497 = vmatprep.subr.bf16.mxu0 %v5732_v55  ;;  %v5818_v55 = vld [vmem:[%s7055_s20 + $0x870] ss:$8 sps:$4 sm:$0xff]  }
 0x148   : > { %4252 = vmatpush1.bf16.msra.mxu1 %v5727_v56  ;;  %v5823_v56 = vld [vmem:[%s7055_s20 + $0x284] ss:$8 sps:$4 sm:$0xff]  }
 0x149   : > { %4498 = vmatpush1.bf16.msra.mxu0 %v5730_v57  ;;  %4253 = vmatprep.subr.bf16.mxu1 %v5735_v58  ;;  %v5826_v57 = vld [vmem:[%s7055_s20 + $0x884] ss:$8 sps:$4 sm:$0xff]   ;;  %v5821_v58 = vld [vmem:[%s7055_s20 + $0x280] ss:$8 sps:$4 sm:$0xff]  }
 0x14a   : > { %4499 = vmatprep.subr.bf16.mxu0 %v5738_v59  ;;  %v5824_v59 = vld [vmem:[%s7055_s20 + $0x880] ss:$8 sps:$4 sm:$0xff]  }
 0x14c   : > { %4254 = vmatpush1.bf16.msra.mxu1 %v5733_v60  ;;  %v5829_v60 = vld [vmem:[%s7055_s20 + $0x294] ss:$8 sps:$4 sm:$0xff]  }
 0x14d   : > { %4500 = vmatpush1.bf16.msra.mxu0 %v5736_v61  ;;  %4255 = vmatprep.subr.bf16.mxu1 %v5741_v62  ;;  %v5832_v61 = vld [vmem:[%s7055_s20 + $0x894] ss:$8 sps:$4 sm:$0xff]   ;;  %v5827_v62 = vld [vmem:[%s7055_s20 + $0x290] ss:$8 sps:$4 sm:$0xff]  }
 0x14e   : > { %4501 = vmatprep.subr.bf16.mxu0 %v5744_v63  ;;  %v5830_v63 = vld [vmem:[%s7055_s20 + $0x890] ss:$8 sps:$4 sm:$0xff]  }
 0x150   : > { %4256 = vmatpush1.bf16.msra.mxu1 %v5739_v0  ;;  %v5835_v0 = vld [vmem:[%s7055_s20 + $0x2a4] ss:$8 sps:$4 sm:$0xff]  }
 0x151   : > { %4502 = vmatpush1.bf16.msra.mxu0 %v5742_v1  ;;  %4257 = vmatprep.subr.bf16.mxu1 %v5747_v2  ;;  %v5838_v1 = vld [vmem:[%s7055_s20 + $0x8a4] ss:$8 sps:$4 sm:$0xff]   ;;  %v5833_v2 = vld [vmem:[%s7055_s20 + $0x2a0] ss:$8 sps:$4 sm:$0xff]  }
 0x152   : > { %4503 = vmatprep.subr.bf16.mxu0 %v5750_v3  ;;  %v5836_v3 = vld [vmem:[%s7055_s20 + $0x8a0] ss:$8 sps:$4 sm:$0xff]  }
 0x154   : > { %4258 = vmatpush1.bf16.msra.mxu1 %v5745_v4  ;;  %v5841_v4 = vld [vmem:[%s7055_s20 + $0x2b4] ss:$8 sps:$4 sm:$0xff]  }
 0x155   : > { %4504 = vmatpush1.bf16.msra.mxu0 %v5748_v5  ;;  %4259 = vmatprep.subr.bf16.mxu1 %v5753_v6  ;;  %v5844_v5 = vld [vmem:[%s7055_s20 + $0x8b4] ss:$8 sps:$4 sm:$0xff]   ;;  %v5839_v6 = vld [vmem:[%s7055_s20 + $0x2b0] ss:$8 sps:$4 sm:$0xff]  }
 0x156   : > { %4505 = vmatprep.subr.bf16.mxu0 %v5756_v7  ;;  %v5842_v7 = vld [vmem:[%s7055_s20 + $0x8b0] ss:$8 sps:$4 sm:$0xff]  }
 0x158   : > { %4260 = vmatpush1.bf16.msra.mxu1 %v5751_v10  ;;  %v5847_v10 = vld [vmem:[%s7055_s20 + $0x2c4] ss:$8 sps:$4 sm:$0xff]  }
 0x159   : > { %4506 = vmatpush1.bf16.msra.mxu0 %v5754_v11  ;;  %4261 = vmatprep.subr.bf16.mxu1 %v5759_v12  ;;  %v5850_v11 = vld [vmem:[%s7055_s20 + $0x8c4] ss:$8 sps:$4 sm:$0xff]   ;;  %v5845_v12 = vld [vmem:[%s7055_s20 + $0x2c0] ss:$8 sps:$4 sm:$0xff]  }
 0x15a   : > { %4507 = vmatprep.subr.bf16.mxu0 %v5762_v13  ;;  %v5848_v13 = vld [vmem:[%s7055_s20 + $0x8c0] ss:$8 sps:$4 sm:$0xff]  }
 0x15c   : > { %4262 = vmatpush1.bf16.msra.mxu1 %v5757_v14  ;;  %v5853_v14 = vld [vmem:[%s7055_s20 + $0x2d4] ss:$8 sps:$4 sm:$0xff]  }
 0x15d   : > { %4508 = vmatpush1.bf16.msra.mxu0 %v5760_v15  ;;  %4263 = vmatprep.subr.bf16.mxu1 %v5765_v16  ;;  %v5856_v15 = vld [vmem:[%s7055_s20 + $0x8d4] ss:$8 sps:$4 sm:$0xff]   ;;  %v5851_v16 = vld [vmem:[%s7055_s20 + $0x2d0] ss:$8 sps:$4 sm:$0xff]  }
 0x15e   : > { %4509 = vmatprep.subr.bf16.mxu0 %v5768_v17  ;;  %v5854_v17 = vld [vmem:[%s7055_s20 + $0x8d0] ss:$8 sps:$4 sm:$0xff]  }
 0x160   : > { %4264 = vmatpush1.bf16.msra.mxu1 %v5763_v18  ;;  %v5859_v18 = vld [vmem:[%s7055_s20 + $0x2e4] ss:$8 sps:$4 sm:$0xff]  }
 0x161   : > { %4510 = vmatpush1.bf16.msra.mxu0 %v5766_v19  ;;  %4274 = vmatprep.subr.bf16.mxu1 %v5773_v20  ;;  %v5862_v19 = vld [vmem:[%s7055_s20 + $0x8e4] ss:$8 sps:$4 sm:$0xff]   ;;  %v5857_v20 = vld [vmem:[%s7055_s20 + $0x2e0] ss:$8 sps:$4 sm:$0xff]  }
 0x162   : > { %4520 = vmatprep.subr.bf16.mxu0 %v5778_v21  ;;  %v5860_v21 = vld [vmem:[%s7055_s20 + $0x8e0] ss:$8 sps:$4 sm:$0xff]  }
 0x163   : > { %4266 = vmatmul.mubr.bf16.vlgmr.msra.gmra.mrb[0].mxu1 %v5084_v8  ;;  %v5865_v8 = vld [vmem:[%s7055_s20 + $0x2f4] ss:$8 sps:$4 sm:$0xff]  }
 0x164   : > { %4512 = vmatmul.mubr.bf16.vlgmr.msra.gmra.mrb[0].mxu0 %v5096_v9  ;;  %4275 = vmatpush1.bf16.msra.mxu1 %v5771_v22  ;;  %v5868_v22 = vld [vmem:[%s7055_s20 + $0x8f4] ss:$8 sps:$4 sm:$0xff]   ;;  %v5863_v9 = vld [vmem:[%s7055_s20 + $0x2f0] ss:$8 sps:$4 sm:$0xff]  }
 0x165   : > { %4521 = vmatpush1.bf16.msra.mxu0 %v5776_v23  ;;  %4276 = vmatprep.subr.bf16.mxu1 %v5781_v24  ;;  %v5866_v23 = vld [vmem:[%s7055_s20 + $0x8f0] ss:$8 sps:$4 sm:$0xff]   ;;  %v5873_v24 = vld [vmem:[%s7055_s20 + $0x304] ss:$8 sps:$4 sm:$0xff]  }
 0x166   : > { %4522 = vmatprep.subr.bf16.mxu0 %v5784_v26  ;;  %4306 = vmatprep.mubr.bf16.mxu1 %v5087_v27  ;;  %v5878_v26 = vld [vmem:[%s7055_s20 + $0x904] ss:$8 sps:$4 sm:$0xff]   ;;  %v7290_v27 = vld [vmem:[%s7564_s0 + $0x18] sm:$0xff] }
 0x167   : > { %4552 = vmatprep.mubr.bf16.mxu0 %v5099_v31  ;;  %v7299_v31 = vld [vmem:[%s7564_s0 + $0x48] sm:$0xff] }
 0x168   : > { %4277 = vmatpush1.bf16.msra.mxu1 %v5779_v29  ;;  %v5086_v29 = vcombine.low %v7215_v25, %v7215_v25  ;;  %v5884_v25 = vld [vmem:[%s7055_s20 + $0x914] ss:$8 sps:$4 sm:$0xff]  }
 0x169   : > { %4523 = vmatpush1.bf16.msra.mxu0 %v5782_v30  ;;  %4278 = vmatprep.subr.bf16.mxu1 %v5787_v32  ;;  %v5098_v30 = vcombine.low %v7223_v28, %v7223_v28  ;;  %v5871_v32 = vld [vmem:[%s7055_s20 + $0x300] ss:$8 sps:$4 sm:$0xff]   ;;  %v5089_v28 = vcombine.high %v7290_v27, %v7290_v27 }
 0x16a   : > { %4524 = vmatprep.subr.bf16.mxu0 %v5790_v33  ;;  %v5876_v33 = vld [vmem:[%s7055_s20 + $0x900] ss:$8 sps:$4 sm:$0xff]  }
 0x16c   : > { %4279 = vmatpush1.bf16.msra.mxu1 %v5785_v34  ;;  %v5881_v34 = vld [vmem:[%s7055_s20 + $0x314] ss:$8 sps:$4 sm:$0xff]  }
 0x16d   : > { %4525 = vmatpush1.bf16.msra.mxu0 %v5788_v35  ;;  %4280 = vmatprep.subr.bf16.mxu1 %v5793_v36  ;;  %v5101_v35 = vcombine.high %v7299_v31, %v7299_v31  ;;  %v5879_v36 = vld [vmem:[%s7055_s20 + $0x310] ss:$8 sps:$4 sm:$0xff]  }
 0x16e   : > { %4526 = vmatprep.subr.bf16.mxu0 %v5796_v37  ;;  %v5882_v37 = vld [vmem:[%s7055_s20 + $0x910] ss:$8 sps:$4 sm:$0xff]  }
 0x170   : > { %4281 = vmatpush1.bf16.msra.mxu1 %v5791_v38  ;;  %v5887_v38 = vld [vmem:[%s7055_s20 + $0x324] ss:$8 sps:$4 sm:$0xff]  }
 0x171   : > { %4527 = vmatpush1.bf16.msra.mxu0 %v5794_v39  ;;  %4282 = vmatprep.subr.bf16.mxu1 %v5799_v40  ;;  %v5890_v39 = vld [vmem:[%s7055_s20 + $0x924] ss:$8 sps:$4 sm:$0xff]   ;;  %v5885_v40 = vld [vmem:[%s7055_s20 + $0x320] ss:$8 sps:$4 sm:$0xff]  }
 0x172   : > { %4528 = vmatprep.subr.bf16.mxu0 %v5802_v41  ;;  %v5888_v41 = vld [vmem:[%s7055_s20 + $0x920] ss:$8 sps:$4 sm:$0xff]  }
 0x174   : > { %4283 = vmatpush1.bf16.msra.mxu1 %v5797_v42  ;;  %v5893_v42 = vld [vmem:[%s7055_s20 + $0x334] ss:$8 sps:$4 sm:$0xff]  }
 0x175   : > { %4529 = vmatpush1.bf16.msra.mxu0 %v5800_v43  ;;  %4284 = vmatprep.subr.bf16.mxu1 %v5805_v44  ;;  %v5896_v43 = vld [vmem:[%s7055_s20 + $0x934] ss:$8 sps:$4 sm:$0xff]   ;;  %v5891_v44 = vld [vmem:[%s7055_s20 + $0x330] ss:$8 sps:$4 sm:$0xff]  }
 0x176   : > { %4530 = vmatprep.subr.bf16.mxu0 %v5808_v45  ;;  %v5894_v45 = vld [vmem:[%s7055_s20 + $0x930] ss:$8 sps:$4 sm:$0xff]  }
 0x178   : > { %4285 = vmatpush1.bf16.msra.mxu1 %v5803_v46  ;;  %v5899_v46 = vld [vmem:[%s7055_s20 + $0x344] ss:$8 sps:$4 sm:$0xff]  }
 0x179   : > { %4531 = vmatpush1.bf16.msra.mxu0 %v5806_v47  ;;  %4286 = vmatprep.subr.bf16.mxu1 %v5811_v48  ;;  %v5902_v47 = vld [vmem:[%s7055_s20 + $0x944] ss:$8 sps:$4 sm:$0xff]   ;;  %v5897_v48 = vld [vmem:[%s7055_s20 + $0x340] ss:$8 sps:$4 sm:$0xff]  }
 0x17a   : > { %4532 = vmatprep.subr.bf16.mxu0 %v5814_v49  ;;  %v5900_v49 = vld [vmem:[%s7055_s20 + $0x940] ss:$8 sps:$4 sm:$0xff]  }
 0x17c   : > { %4287 = vmatpush1.bf16.msra.mxu1 %v5809_v50  ;;  %v5905_v50 = vld [vmem:[%s7055_s20 + $0x354] ss:$8 sps:$4 sm:$0xff]  }
 0x17d   : > { %4533 = vmatpush1.bf16.msra.mxu0 %v5812_v51  ;;  %4288 = vmatprep.subr.bf16.mxu1 %v5817_v52  ;;  %v5908_v51 = vld [vmem:[%s7055_s20 + $0x954] ss:$8 sps:$4 sm:$0xff]   ;;  %v5903_v52 = vld [vmem:[%s7055_s20 + $0x350] ss:$8 sps:$4 sm:$0xff]  }
 0x17e   : > { %4534 = vmatprep.subr.bf16.mxu0 %v5820_v53  ;;  %v5906_v53 = vld [vmem:[%s7055_s20 + $0x950] ss:$8 sps:$4 sm:$0xff]  }
 0x180   : > { %4289 = vmatpush1.bf16.msra.mxu1 %v5815_v54  ;;  %v5911_v54 = vld [vmem:[%s7055_s20 + $0x364] ss:$8 sps:$4 sm:$0xff]  }
 0x181   : > { %4535 = vmatpush1.bf16.msra.mxu0 %v5818_v55  ;;  %4290 = vmatprep.subr.bf16.mxu1 %v5823_v56  ;;  %v5914_v55 = vld [vmem:[%s7055_s20 + $0x964] ss:$8 sps:$4 sm:$0xff]   ;;  %v5909_v56 = vld [vmem:[%s7055_s20 + $0x360] ss:$8 sps:$4 sm:$0xff]  }
 0x182   : > { %4536 = vmatprep.subr.bf16.mxu0 %v5826_v57  ;;  %v5912_v57 = vld [vmem:[%s7055_s20 + $0x960] ss:$8 sps:$4 sm:$0xff]  }
 0x184   : > { %4291 = vmatpush1.bf16.msra.mxu1 %v5821_v58  ;;  %v5917_v58 = vld [vmem:[%s7055_s20 + $0x374] ss:$8 sps:$4 sm:$0xff]  }
 0x185   : > { %4537 = vmatpush1.bf16.msra.mxu0 %v5824_v59  ;;  %4292 = vmatprep.subr.bf16.mxu1 %v5829_v60  ;;  %v5920_v59 = vld [vmem:[%s7055_s20 + $0x974] ss:$8 sps:$4 sm:$0xff]   ;;  %v5915_v60 = vld [vmem:[%s7055_s20 + $0x370] ss:$8 sps:$4 sm:$0xff]  }
 0x186   : > { %4538 = vmatprep.subr.bf16.mxu0 %v5832_v61  ;;  %v5918_v61 = vld [vmem:[%s7055_s20 + $0x970] ss:$8 sps:$4 sm:$0xff]  }
 0x188   : > { %4293 = vmatpush1.bf16.msra.mxu1 %v5827_v62  ;;  %v5923_v62 = vld [vmem:[%s7055_s20 + $0x384] ss:$8 sps:$4 sm:$0xff]  }
 0x189   : > { %4539 = vmatpush1.bf16.msra.mxu0 %v5830_v63  ;;  %4294 = vmatprep.subr.bf16.mxu1 %v5835_v0  ;;  %v5926_v63 = vld [vmem:[%s7055_s20 + $0x984] ss:$8 sps:$4 sm:$0xff]   ;;  %v5921_v0 = vld [vmem:[%s7055_s20 + $0x380] ss:$8 sps:$4 sm:$0xff]  }
 0x18a   : > { %4540 = vmatprep.subr.bf16.mxu0 %v5838_v1  ;;  %v5924_v1 = vld [vmem:[%s7055_s20 + $0x980] ss:$8 sps:$4 sm:$0xff]  }
 0x18c   : > { %4295 = vmatpush1.bf16.msra.mxu1 %v5833_v2  ;;  %v5929_v2 = vld [vmem:[%s7055_s20 + $0x394] ss:$8 sps:$4 sm:$0xff]  }
 0x18d   : > { %4541 = vmatpush1.bf16.msra.mxu0 %v5836_v3  ;;  %4296 = vmatprep.subr.bf16.mxu1 %v5841_v4  ;;  %v5932_v3 = vld [vmem:[%s7055_s20 + $0x994] ss:$8 sps:$4 sm:$0xff]   ;;  %v5927_v4 = vld [vmem:[%s7055_s20 + $0x390] ss:$8 sps:$4 sm:$0xff]  }
 0x18e   : > { %4542 = vmatprep.subr.bf16.mxu0 %v5844_v5  ;;  %v5930_v5 = vld [vmem:[%s7055_s20 + $0x990] ss:$8 sps:$4 sm:$0xff]  }
 0x190   : > { %4297 = vmatpush1.bf16.msra.mxu1 %v5839_v6  ;;  %v5935_v6 = vld [vmem:[%s7055_s20 + $0x3a4] ss:$8 sps:$4 sm:$0xff]  }
 0x191   : > { %4543 = vmatpush1.bf16.msra.mxu0 %v5842_v7  ;;  %4298 = vmatprep.subr.bf16.mxu1 %v5847_v10  ;;  %v5938_v7 = vld [vmem:[%s7055_s20 + $0x9a4] ss:$8 sps:$4 sm:$0xff]   ;;  %v5933_v10 = vld [vmem:[%s7055_s20 + $0x3a0] ss:$8 sps:$4 sm:$0xff]  }
 0x192   : > { %4544 = vmatprep.subr.bf16.mxu0 %v5850_v11  ;;  %v5936_v11 = vld [vmem:[%s7055_s20 + $0x9a0] ss:$8 sps:$4 sm:$0xff]  }
 0x194   : > { %4299 = vmatpush1.bf16.msra.mxu1 %v5845_v12  ;;  %v5941_v12 = vld [vmem:[%s7055_s20 + $0x3b4] ss:$8 sps:$4 sm:$0xff]  }
 0x195   : > { %4545 = vmatpush1.bf16.msra.mxu0 %v5848_v13  ;;  %4300 = vmatprep.subr.bf16.mxu1 %v5853_v14  ;;  %v5944_v13 = vld [vmem:[%s7055_s20 + $0x9b4] ss:$8 sps:$4 sm:$0xff]   ;;  %v5939_v14 = vld [vmem:[%s7055_s20 + $0x3b0] ss:$8 sps:$4 sm:$0xff]  }
 0x196   : > { %4546 = vmatprep.subr.bf16.mxu0 %v5856_v15  ;;  %v5942_v15 = vld [vmem:[%s7055_s20 + $0x9b0] ss:$8 sps:$4 sm:$0xff]  }
 0x198   : > { %4301 = vmatpush1.bf16.msra.mxu1 %v5851_v16  ;;  %v5947_v16 = vld [vmem:[%s7055_s20 + $0x3c4] ss:$8 sps:$4 sm:$0xff]  }
 0x199   : > { %4547 = vmatpush1.bf16.msra.mxu0 %v5854_v17  ;;  %4302 = vmatprep.subr.bf16.mxu1 %v5859_v18  ;;  %v5950_v17 = vld [vmem:[%s7055_s20 + $0x9c4] ss:$8 sps:$4 sm:$0xff]   ;;  %v5945_v18 = vld [vmem:[%s7055_s20 + $0x3c0] ss:$8 sps:$4 sm:$0xff]  }
 0x19a   : > { %4548 = vmatprep.subr.bf16.mxu0 %v5862_v19  ;;  %v5948_v19 = vld [vmem:[%s7055_s20 + $0x9c0] ss:$8 sps:$4 sm:$0xff]  }
 0x19c   : > { %4303 = vmatpush1.bf16.msra.mxu1 %v5857_v20  ;;  %v5953_v20 = vld [vmem:[%s7055_s20 + $0x3d4] ss:$8 sps:$4 sm:$0xff]  }
 0x19d   : > { %4549 = vmatpush1.bf16.msra.mxu0 %v5860_v21  ;;  %4304 = vmatprep.subr.bf16.mxu1 %v5865_v8  ;;  %v5956_v21 = vld [vmem:[%s7055_s20 + $0x9d4] ss:$8 sps:$4 sm:$0xff]   ;;  %v5951_v8 = vld [vmem:[%s7055_s20 + $0x3d0] ss:$8 sps:$4 sm:$0xff]  }
 0x19e   : > { %4550 = vmatprep.subr.bf16.mxu0 %v5868_v22  ;;  %v5954_v22 = vld [vmem:[%s7055_s20 + $0x9d0] ss:$8 sps:$4 sm:$0xff]  }
 0x1a0   : > { %4305 = vmatpush1.bf16.msra.mxu1 %v5863_v9  ;;  %v5959_v9 = vld [vmem:[%s7055_s20 + $0x3e4] ss:$8 sps:$4 sm:$0xff]  }
 0x1a1   : > { %4551 = vmatpush1.bf16.msra.mxu0 %v5866_v23  ;;  %4315 = vmatprep.subr.bf16.mxu1 %v5873_v24  ;;  %v5962_v23 = vld [vmem:[%s7055_s20 + $0x9e4] ss:$8 sps:$4 sm:$0xff]   ;;  %v5957_v24 = vld [vmem:[%s7055_s20 + $0x3e0] ss:$8 sps:$4 sm:$0xff]  }
 0x1a2   : > { %4561 = vmatprep.subr.bf16.mxu0 %v5878_v26  ;;  %v5960_v26 = vld [vmem:[%s7055_s20 + $0x9e0] ss:$8 sps:$4 sm:$0xff]  }
 0x1a3   : > { %4307 = vmatmul.mubr.bf16.vlgmr.msra.gmra.mrb[0].mxu1 %v5086_v29  ;;  %v5965_v29 = vld [vmem:[%s7055_s20 + $0x3f4] ss:$8 sps:$4 sm:$0xff]  }
 0x1a4   : > { %4553 = vmatmul.mubr.bf16.vlgmr.msra.gmra.mrb[0].mxu0 %v5098_v30  ;;  %4316 = vmatpush1.bf16.msra.mxu1 %v5871_v32  ;;  %v5968_v30 = vld [vmem:[%s7055_s20 + $0x9f4] ss:$8 sps:$4 sm:$0xff]   ;;  %v5963_v32 = vld [vmem:[%s7055_s20 + $0x3f0] ss:$8 sps:$4 sm:$0xff]  }
 0x1a5   : > { %4562 = vmatpush1.bf16.msra.mxu0 %v5876_v33  ;;  %4317 = vmatprep.subr.bf16.mxu1 %v5881_v34  ;;  %v5966_v33 = vld [vmem:[%s7055_s20 + $0x9f0] ss:$8 sps:$4 sm:$0xff]   ;;  %v5973_v34 = vld [vmem:[%s7055_s20 + $0x404] ss:$8 sps:$4 sm:$0xff]  }
 0x1a6   : > { %4563 = vmatprep.subr.bf16.mxu0 %v5884_v25  ;;  %4347 = vmatprep.mubr.bf16.mxu1 %v5089_v28  ;;  %v5978_v25 = vld [vmem:[%s7055_s20 + $0xa04] ss:$8 sps:$4 sm:$0xff]   ;;  %v5971_v28 = vld [vmem:[%s7055_s20 + $0x400] ss:$8 sps:$4 sm:$0xff]  }
 0x1a7   : > { %4593 = vmatprep.mubr.bf16.mxu0 %v5101_v35  ;;  %v5976_v35 = vld [vmem:[%s7055_s20 + $0xa00] ss:$8 sps:$4 sm:$0xff]  }
 0x1a8   : > { %4318 = vmatpush1.bf16.msra.mxu1 %v5879_v36  ;;  %v5088_v36 = vcombine.low %v7290_v27, %v7290_v27  ;;  %v5981_v27 = vld [vmem:[%s7055_s20 + $0x414] ss:$8 sps:$4 sm:$0xff]  }
 0x1a9   : > { %4564 = vmatpush1.bf16.msra.mxu0 %v5882_v37  ;;  %4319 = vmatprep.subr.bf16.mxu1 %v5887_v38  ;;  %v5100_v37 = vcombine.low %v7299_v31, %v7299_v31  ;;  %v7378_v38 = vld [vmem:[%s7564_s0 + $0x20] sm:$0xff] }
 0x1aa   : > { %4565 = vmatprep.subr.bf16.mxu0 %v5890_v39  ;;  %v7383_v39 = vld [vmem:[%s7564_s0 + $0x50] sm:$0xff]  ;;  %v5091_v31 = vcombine.high %v7378_v38, %v7378_v38 }
 0x1ac   : > { %4320 = vmatpush1.bf16.msra.mxu1 %v5885_v40  ;;  %v5984_v40 = vld [vmem:[%s7055_s20 + $0xa14] ss:$8 sps:$4 sm:$0xff]  }
 0x1ad   : > { %4566 = vmatpush1.bf16.msra.mxu0 %v5888_v41  ;;  %4321 = vmatprep.subr.bf16.mxu1 %v5893_v42  ;;  %v5103_v41 = vcombine.high %v7383_v39, %v7383_v39  ;;  %v5979_v42 = vld [vmem:[%s7055_s20 + $0x410] ss:$8 sps:$4 sm:$0xff]  }
 0x1ae   : > { %4567 = vmatprep.subr.bf16.mxu0 %v5896_v43  ;;  %v5982_v43 = vld [vmem:[%s7055_s20 + $0xa10] ss:$8 sps:$4 sm:$0xff]  }
 0x1b0   : > { %4322 = vmatpush1.bf16.msra.mxu1 %v5891_v44  ;;  %v5987_v44 = vld [vmem:[%s7055_s20 + $0x424] ss:$8 sps:$4 sm:$0xff]  }
 0x1b1   : > { %4568 = vmatpush1.bf16.msra.mxu0 %v5894_v45  ;;  %4323 = vmatprep.subr.bf16.mxu1 %v5899_v46  ;;  %v5990_v45 = vld [vmem:[%s7055_s20 + $0xa24] ss:$8 sps:$4 sm:$0xff]   ;;  %v5985_v46 = vld [vmem:[%s7055_s20 + $0x420] ss:$8 sps:$4 sm:$0xff]  }
 0x1b2   : > { %4569 = vmatprep.subr.bf16.mxu0 %v5902_v47  ;;  %v5988_v47 = vld [vmem:[%s7055_s20 + $0xa20] ss:$8 sps:$4 sm:$0xff]  }
 0x1b4   : > { %4324 = vmatpush1.bf16.msra.mxu1 %v5897_v48  ;;  %v5993_v48 = vld [vmem:[%s7055_s20 + $0x434] ss:$8 sps:$4 sm:$0xff]  }
 0x1b5   : > { %4570 = vmatpush1.bf16.msra.mxu0 %v5900_v49  ;;  %4325 = vmatprep.subr.bf16.mxu1 %v5905_v50  ;;  %v5996_v49 = vld [vmem:[%s7055_s20 + $0xa34] ss:$8 sps:$4 sm:$0xff]   ;;  %v5991_v50 = vld [vmem:[%s7055_s20 + $0x430] ss:$8 sps:$4 sm:$0xff]  }
 0x1b6   : > { %4571 = vmatprep.subr.bf16.mxu0 %v5908_v51  ;;  %v5994_v51 = vld [vmem:[%s7055_s20 + $0xa30] ss:$8 sps:$4 sm:$0xff]  }
 0x1b8   : > { %4326 = vmatpush1.bf16.msra.mxu1 %v5903_v52  ;;  %v5999_v52 = vld [vmem:[%s7055_s20 + $0x444] ss:$8 sps:$4 sm:$0xff]  }
 0x1b9   : > { %4572 = vmatpush1.bf16.msra.mxu0 %v5906_v53  ;;  %4327 = vmatprep.subr.bf16.mxu1 %v5911_v54  ;;  %v6002_v53 = vld [vmem:[%s7055_s20 + $0xa44] ss:$8 sps:$4 sm:$0xff]   ;;  %v5997_v54 = vld [vmem:[%s7055_s20 + $0x440] ss:$8 sps:$4 sm:$0xff]  }
 0x1ba   : > { %4573 = vmatprep.subr.bf16.mxu0 %v5914_v55  ;;  %v6000_v55 = vld [vmem:[%s7055_s20 + $0xa40] ss:$8 sps:$4 sm:$0xff]  }
 0x1bc   : > { %4328 = vmatpush1.bf16.msra.mxu1 %v5909_v56  ;;  %v6005_v56 = vld [vmem:[%s7055_s20 + $0x454] ss:$8 sps:$4 sm:$0xff]  }
 0x1bd   : > { %4574 = vmatpush1.bf16.msra.mxu0 %v5912_v57  ;;  %4329 = vmatprep.subr.bf16.mxu1 %v5917_v58  ;;  %v6008_v57 = vld [vmem:[%s7055_s20 + $0xa54] ss:$8 sps:$4 sm:$0xff]   ;;  %v6003_v58 = vld [vmem:[%s7055_s20 + $0x450] ss:$8 sps:$4 sm:$0xff]  }
 0x1be   : > { %4575 = vmatprep.subr.bf16.mxu0 %v5920_v59  ;;  %v6006_v59 = vld [vmem:[%s7055_s20 + $0xa50] ss:$8 sps:$4 sm:$0xff]  }
 0x1c0   : > { %4330 = vmatpush1.bf16.msra.mxu1 %v5915_v60  ;;  %v6011_v60 = vld [vmem:[%s7055_s20 + $0x464] ss:$8 sps:$4 sm:$0xff]  }
 0x1c1   : > { %4576 = vmatpush1.bf16.msra.mxu0 %v5918_v61  ;;  %4331 = vmatprep.subr.bf16.mxu1 %v5923_v62  ;;  %v6014_v61 = vld [vmem:[%s7055_s20 + $0xa64] ss:$8 sps:$4 sm:$0xff]   ;;  %v6009_v62 = vld [vmem:[%s7055_s20 + $0x460] ss:$8 sps:$4 sm:$0xff]  }
 0x1c2   : > { %4577 = vmatprep.subr.bf16.mxu0 %v5926_v63  ;;  %v6012_v63 = vld [vmem:[%s7055_s20 + $0xa60] ss:$8 sps:$4 sm:$0xff]  }
 0x1c4   : > { %4332 = vmatpush1.bf16.msra.mxu1 %v5921_v0  ;;  %v6017_v0 = vld [vmem:[%s7055_s20 + $0x474] ss:$8 sps:$4 sm:$0xff]  }
 0x1c5   : > { %4578 = vmatpush1.bf16.msra.mxu0 %v5924_v1  ;;  %4333 = vmatprep.subr.bf16.mxu1 %v5929_v2  ;;  %v6020_v1 = vld [vmem:[%s7055_s20 + $0xa74] ss:$8 sps:$4 sm:$0xff]   ;;  %v6015_v2 = vld [vmem:[%s7055_s20 + $0x470] ss:$8 sps:$4 sm:$0xff]  }
 0x1c6   : > { %4579 = vmatprep.subr.bf16.mxu0 %v5932_v3  ;;  %v6018_v3 = vld [vmem:[%s7055_s20 + $0xa70] ss:$8 sps:$4 sm:$0xff]  }
 0x1c8   : > { %4334 = vmatpush1.bf16.msra.mxu1 %v5927_v4  ;;  %v6023_v4 = vld [vmem:[%s7055_s20 + $0x484] ss:$8 sps:$4 sm:$0xff]  }
 0x1c9   : > { %4580 = vmatpush1.bf16.msra.mxu0 %v5930_v5  ;;  %4335 = vmatprep.subr.bf16.mxu1 %v5935_v6  ;;  %v6026_v5 = vld [vmem:[%s7055_s20 + $0xa84] ss:$8 sps:$4 sm:$0xff]   ;;  %v6021_v6 = vld [vmem:[%s7055_s20 + $0x480] ss:$8 sps:$4 sm:$0xff]  }
 0x1ca   : > { %4581 = vmatprep.subr.bf16.mxu0 %v5938_v7  ;;  %v6024_v7 = vld [vmem:[%s7055_s20 + $0xa80] ss:$8 sps:$4 sm:$0xff]  }
 0x1cc   : > { %4336 = vmatpush1.bf16.msra.mxu1 %v5933_v10  ;;  %v6029_v10 = vld [vmem:[%s7055_s20 + $0x494] ss:$8 sps:$4 sm:$0xff]  }
 0x1cd   : > { %4582 = vmatpush1.bf16.msra.mxu0 %v5936_v11  ;;  %4337 = vmatprep.subr.bf16.mxu1 %v5941_v12  ;;  %v6032_v11 = vld [vmem:[%s7055_s20 + $0xa94] ss:$8 sps:$4 sm:$0xff]   ;;  %v6027_v12 = vld [vmem:[%s7055_s20 + $0x490] ss:$8 sps:$4 sm:$0xff]  }
 0x1ce   : > { %4583 = vmatprep.subr.bf16.mxu0 %v5944_v13  ;;  %v6030_v13 = vld [vmem:[%s7055_s20 + $0xa90] ss:$8 sps:$4 sm:$0xff]  }
 0x1d0   : > { %4338 = vmatpush1.bf16.msra.mxu1 %v5939_v14  ;;  %v6035_v14 = vld [vmem:[%s7055_s20 + $0x4a4] ss:$8 sps:$4 sm:$0xff]  }
 0x1d1   : > { %4584 = vmatpush1.bf16.msra.mxu0 %v5942_v15  ;;  %4339 = vmatprep.subr.bf16.mxu1 %v5947_v16  ;;  %v6038_v15 = vld [vmem:[%s7055_s20 + $0xaa4] ss:$8 sps:$4 sm:$0xff]   ;;  %v6033_v16 = vld [vmem:[%s7055_s20 + $0x4a0] ss:$8 sps:$4 sm:$0xff]  }
 0x1d2   : > { %4585 = vmatprep.subr.bf16.mxu0 %v5950_v17  ;;  %v6036_v17 = vld [vmem:[%s7055_s20 + $0xaa0] ss:$8 sps:$4 sm:$0xff]  }
 0x1d4   : > { %4340 = vmatpush1.bf16.msra.mxu1 %v5945_v18  ;;  %v6041_v18 = vld [vmem:[%s7055_s20 + $0x4b4] ss:$8 sps:$4 sm:$0xff]  }
 0x1d5   : > { %4586 = vmatpush1.bf16.msra.mxu0 %v5948_v19  ;;  %4341 = vmatprep.subr.bf16.mxu1 %v5953_v20  ;;  %v6044_v19 = vld [vmem:[%s7055_s20 + $0xab4] ss:$8 sps:$4 sm:$0xff]   ;;  %v6039_v20 = vld [vmem:[%s7055_s20 + $0x4b0] ss:$8 sps:$4 sm:$0xff]  }
 0x1d6   : > { %4587 = vmatprep.subr.bf16.mxu0 %v5956_v21  ;;  %v6042_v21 = vld [vmem:[%s7055_s20 + $0xab0] ss:$8 sps:$4 sm:$0xff]  }
 0x1d8   : > { %4342 = vmatpush1.bf16.msra.mxu1 %v5951_v8  ;;  %v6047_v8 = vld [vmem:[%s7055_s20 + $0x4c4] ss:$8 sps:$4 sm:$0xff]  }
 0x1d9   : > { %4588 = vmatpush1.bf16.msra.mxu0 %v5954_v22  ;;  %4343 = vmatprep.subr.bf16.mxu1 %v5959_v9  ;;  %v6050_v22 = vld [vmem:[%s7055_s20 + $0xac4] ss:$8 sps:$4 sm:$0xff]   ;;  %v6045_v9 = vld [vmem:[%s7055_s20 + $0x4c0] ss:$8 sps:$4 sm:$0xff]  }
 0x1da   : > { %4589 = vmatprep.subr.bf16.mxu0 %v5962_v23  ;;  %v6048_v23 = vld [vmem:[%s7055_s20 + $0xac0] ss:$8 sps:$4 sm:$0xff]  }
 0x1dc   : > { %4344 = vmatpush1.bf16.msra.mxu1 %v5957_v24  ;;  %v6053_v24 = vld [vmem:[%s7055_s20 + $0x4d4] ss:$8 sps:$4 sm:$0xff]  }
 0x1dd   : > { %4590 = vmatpush1.bf16.msra.mxu0 %v5960_v26  ;;  %4345 = vmatprep.subr.bf16.mxu1 %v5965_v29  ;;  %v6056_v26 = vld [vmem:[%s7055_s20 + $0xad4] ss:$8 sps:$4 sm:$0xff]   ;;  %v6051_v29 = vld [vmem:[%s7055_s20 + $0x4d0] ss:$8 sps:$4 sm:$0xff]  }
 0x1de   : > { %4591 = vmatprep.subr.bf16.mxu0 %v5968_v30  ;;  %v6054_v30 = vld [vmem:[%s7055_s20 + $0xad0] ss:$8 sps:$4 sm:$0xff]  }
 0x1e0   : > { %4346 = vmatpush1.bf16.msra.mxu1 %v5963_v32  ;;  %v6059_v32 = vld [vmem:[%s7055_s20 + $0x4e4] ss:$8 sps:$4 sm:$0xff]  }
 0x1e1   : > { %4592 = vmatpush1.bf16.msra.mxu0 %v5966_v33  ;;  %4356 = vmatprep.subr.bf16.mxu1 %v5973_v34  ;;  %v6062_v33 = vld [vmem:[%s7055_s20 + $0xae4] ss:$8 sps:$4 sm:$0xff]   ;;  %v6057_v34 = vld [vmem:[%s7055_s20 + $0x4e0] ss:$8 sps:$4 sm:$0xff]  }
 0x1e2   : > { %4602 = vmatprep.subr.bf16.mxu0 %v5978_v25  ;;  %v6060_v25 = vld [vmem:[%s7055_s20 + $0xae0] ss:$8 sps:$4 sm:$0xff]  }
 0x1e3   : > { %4348 = vmatmul.mubr.bf16.vlgmr.msra.gmra.mrb[0].mxu1 %v5088_v36  ;;  %v6063_v36 = vld [vmem:[%s7055_s20 + $0x4f0] ss:$8 sps:$4 sm:$0xff]  }
 0x1e4   : > { %4594 = vmatmul.mubr.bf16.vlgmr.msra.gmra.mrb[0].mxu0 %v5100_v37  ;;  %4357 = vmatpush1.bf16.msra.mxu1 %v5971_v28  ;;  %v6065_v28 = vld [vmem:[%s7055_s20 + $0x4f4] ss:$8 sps:$4 sm:$0xff]   ;;  %v6066_v37 = vld [vmem:[%s7055_s20 + $0xaf0] ss:$8 sps:$4 sm:$0xff]  }
 0x1e5   : > { %4603 = vmatpush1.bf16.msra.mxu0 %v5976_v35  ;;  %4358 = vmatprep.subr.bf16.mxu1 %v5981_v27  ;;  %v6068_v35 = vld [vmem:[%s7055_s20 + $0xaf4] ss:$8 sps:$4 sm:$0xff]   ;;  %v6073_v27 = vld [vmem:[%s7055_s20 + $0x504] ss:$8 sps:$4 sm:$0xff]  }
 0x1e6   : > { %4604 = vmatprep.subr.bf16.mxu0 %v5984_v40  ;;  %4388 = vmatprep.mubr.bf16.mxu1 %v5091_v31  ;;  %v6078_v40 = vld [vmem:[%s7055_s20 + $0xb04] ss:$8 sps:$4 sm:$0xff]   ;;  %v5090_v31 = vcombine.low %v7378_v38, %v7378_v38  ;;  %v6076_v38 = vld [vmem:[%s7055_s20 + $0xb00] ss:$8 sps:$4 sm:$0xff]  }
 0x1e7   : > { %4634 = vmatprep.mubr.bf16.mxu0 %v5103_v41  ;;  %v5102_v41 = vcombine.low %v7383_v39, %v7383_v39  ;;  %v6081_v39 = vld [vmem:[%s7055_s20 + $0x514] ss:$8 sps:$4 sm:$0xff]  }
 0x1e8   : > { %4359 = vmatpush1.bf16.msra.mxu1 %v5979_v42  ;;  %v7458_v42 = vld [vmem:[%s7564_s0 + $0x28] sm:$0xff] }
 0x1e9   : > { %4605 = vmatpush1.bf16.msra.mxu0 %v5982_v43  ;;  %4360 = vmatprep.subr.bf16.mxu1 %v5987_v44  ;;  %v7463_v43 = vld [vmem:[%s7564_s0 + $0x58] sm:$0xff]  ;;  %v6071_v44 = vld [vmem:[%s7055_s20 + $0x500] ss:$8 sps:$4 sm:$0xff]  }
 0x1ea   : > { %4606 = vmatprep.subr.bf16.mxu0 %v5990_v45  ;;  %v6084_v45 = vld [vmem:[%s7055_s20 + $0xb14] ss:$8 sps:$4 sm:$0xff]  }
 0x1ec   : > { %4361 = vmatpush1.bf16.msra.mxu1 %v5985_v46  ;;  %v5093_v46 = vcombine.high %v7458_v42, %v7458_v42 }
 0x1ed   : > { %4607 = vmatpush1.bf16.msra.mxu0 %v5988_v47  ;;  %4362 = vmatprep.subr.bf16.mxu1 %v5993_v48  ;;  %v5105_v47 = vcombine.high %v7463_v43, %v7463_v43  ;;  %v6079_v48 = vld [vmem:[%s7055_s20 + $0x510] ss:$8 sps:$4 sm:$0xff]  }
 0x1ee   : > { %4608 = vmatprep.subr.bf16.mxu0 %v5996_v49  ;;  %v6082_v49 = vld [vmem:[%s7055_s20 + $0xb10] ss:$8 sps:$4 sm:$0xff]  }
 0x1f0   : > { %4363 = vmatpush1.bf16.msra.mxu1 %v5991_v50  ;;  %v6087_v50 = vld [vmem:[%s7055_s20 + $0x524] ss:$8 sps:$4 sm:$0xff]  }
 0x1f1   : > { %4609 = vmatpush1.bf16.msra.mxu0 %v5994_v51  ;;  %4364 = vmatprep.subr.bf16.mxu1 %v5999_v52  ;;  %v6090_v51 = vld [vmem:[%s7055_s20 + $0xb24] ss:$8 sps:$4 sm:$0xff]   ;;  %v6085_v52 = vld [vmem:[%s7055_s20 + $0x520] ss:$8 sps:$4 sm:$0xff]  }
 0x1f2   : > { %4610 = vmatprep.subr.bf16.mxu0 %v6002_v53  ;;  %v6088_v53 = vld [vmem:[%s7055_s20 + $0xb20] ss:$8 sps:$4 sm:$0xff]  }
 0x1f4   : > { %4365 = vmatpush1.bf16.msra.mxu1 %v5997_v54  ;;  %v6093_v54 = vld [vmem:[%s7055_s20 + $0x534] ss:$8 sps:$4 sm:$0xff]  }
 0x1f5   : > { %4611 = vmatpush1.bf16.msra.mxu0 %v6000_v55  ;;  %4366 = vmatprep.subr.bf16.mxu1 %v6005_v56  ;;  %v6096_v55 = vld [vmem:[%s7055_s20 + $0xb34] ss:$8 sps:$4 sm:$0xff]   ;;  %v6091_v56 = vld [vmem:[%s7055_s20 + $0x530] ss:$8 sps:$4 sm:$0xff]  }
 0x1f6   : > { %4612 = vmatprep.subr.bf16.mxu0 %v6008_v57  ;;  %v6094_v57 = vld [vmem:[%s7055_s20 + $0xb30] ss:$8 sps:$4 sm:$0xff]  }
 0x1f8   : > { %4367 = vmatpush1.bf16.msra.mxu1 %v6003_v58  ;;  %v6099_v58 = vld [vmem:[%s7055_s20 + $0x544] ss:$8 sps:$4 sm:$0xff]  }
 0x1f9   : > { %4613 = vmatpush1.bf16.msra.mxu0 %v6006_v59  ;;  %4368 = vmatprep.subr.bf16.mxu1 %v6011_v60  ;;  %v6102_v59 = vld [vmem:[%s7055_s20 + $0xb44] ss:$8 sps:$4 sm:$0xff]   ;;  %v6097_v60 = vld [vmem:[%s7055_s20 + $0x540] ss:$8 sps:$4 sm:$0xff]  }
 0x1fa   : > { %4614 = vmatprep.subr.bf16.mxu0 %v6014_v61  ;;  %v6100_v61 = vld [vmem:[%s7055_s20 + $0xb40] ss:$8 sps:$4 sm:$0xff]  }
 0x1fc   : > { %4369 = vmatpush1.bf16.msra.mxu1 %v6009_v62  ;;  %v6105_v62 = vld [vmem:[%s7055_s20 + $0x554] ss:$8 sps:$4 sm:$0xff]  }
 0x1fd   : > { %4615 = vmatpush1.bf16.msra.mxu0 %v6012_v63  ;;  %4370 = vmatprep.subr.bf16.mxu1 %v6017_v0  ;;  %v6108_v63 = vld [vmem:[%s7055_s20 + $0xb54] ss:$8 sps:$4 sm:$0xff]   ;;  %v6103_v0 = vld [vmem:[%s7055_s20 + $0x550] ss:$8 sps:$4 sm:$0xff]  }
 0x1fe   : > { %4616 = vmatprep.subr.bf16.mxu0 %v6020_v1  ;;  %v6106_v1 = vld [vmem:[%s7055_s20 + $0xb50] ss:$8 sps:$4 sm:$0xff]  }
 0x200   : > { %4371 = vmatpush1.bf16.msra.mxu1 %v6015_v2  ;;  %v6111_v2 = vld [vmem:[%s7055_s20 + $0x564] ss:$8 sps:$4 sm:$0xff]  }
 0x201   : > { %4617 = vmatpush1.bf16.msra.mxu0 %v6018_v3  ;;  %4372 = vmatprep.subr.bf16.mxu1 %v6023_v4  ;;  %v6114_v3 = vld [vmem:[%s7055_s20 + $0xb64] ss:$8 sps:$4 sm:$0xff]   ;;  %v6109_v4 = vld [vmem:[%s7055_s20 + $0x560] ss:$8 sps:$4 sm:$0xff]  }
 0x202   : > { %4618 = vmatprep.subr.bf16.mxu0 %v6026_v5  ;;  %v6112_v5 = vld [vmem:[%s7055_s20 + $0xb60] ss:$8 sps:$4 sm:$0xff]  }
 0x204   : > { %4373 = vmatpush1.bf16.msra.mxu1 %v6021_v6  ;;  %v6117_v6 = vld [vmem:[%s7055_s20 + $0x574] ss:$8 sps:$4 sm:$0xff]  }
 0x205   : > { %4619 = vmatpush1.bf16.msra.mxu0 %v6024_v7  ;;  %4374 = vmatprep.subr.bf16.mxu1 %v6029_v10  ;;  %v6120_v7 = vld [vmem:[%s7055_s20 + $0xb74] ss:$8 sps:$4 sm:$0xff]   ;;  %v6115_v10 = vld [vmem:[%s7055_s20 + $0x570] ss:$8 sps:$4 sm:$0xff]  }
 0x206   : > { %4620 = vmatprep.subr.bf16.mxu0 %v6032_v11  ;;  %v6118_v11 = vld [vmem:[%s7055_s20 + $0xb70] ss:$8 sps:$4 sm:$0xff]  }
 0x208   : > { %4375 = vmatpush1.bf16.msra.mxu1 %v6027_v12  ;;  %v6123_v12 = vld [vmem:[%s7055_s20 + $0x584] ss:$8 sps:$4 sm:$0xff]  }
 0x209   : > { %4621 = vmatpush1.bf16.msra.mxu0 %v6030_v13  ;;  %4376 = vmatprep.subr.bf16.mxu1 %v6035_v14  ;;  %v6126_v13 = vld [vmem:[%s7055_s20 + $0xb84] ss:$8 sps:$4 sm:$0xff]   ;;  %v6121_v14 = vld [vmem:[%s7055_s20 + $0x580] ss:$8 sps:$4 sm:$0xff]  }
 0x20a   : > { %4622 = vmatprep.subr.bf16.mxu0 %v6038_v15  ;;  %v6124_v15 = vld [vmem:[%s7055_s20 + $0xb80] ss:$8 sps:$4 sm:$0xff]  }
 0x20c   : > { %4377 = vmatpush1.bf16.msra.mxu1 %v6033_v16  ;;  %v6129_v16 = vld [vmem:[%s7055_s20 + $0x594] ss:$8 sps:$4 sm:$0xff]  }
 0x20d   : > { %4623 = vmatpush1.bf16.msra.mxu0 %v6036_v17  ;;  %4378 = vmatprep.subr.bf16.mxu1 %v6041_v18  ;;  %v6132_v17 = vld [vmem:[%s7055_s20 + $0xb94] ss:$8 sps:$4 sm:$0xff]   ;;  %v6127_v18 = vld [vmem:[%s7055_s20 + $0x590] ss:$8 sps:$4 sm:$0xff]  }
 0x20e   : > { %4624 = vmatprep.subr.bf16.mxu0 %v6044_v19  ;;  %v6130_v19 = vld [vmem:[%s7055_s20 + $0xb90] ss:$8 sps:$4 sm:$0xff]  }
 0x210   : > { %4379 = vmatpush1.bf16.msra.mxu1 %v6039_v20  ;;  %v6135_v20 = vld [vmem:[%s7055_s20 + $0x5a4] ss:$8 sps:$4 sm:$0xff]  }
 0x211   : > { %4625 = vmatpush1.bf16.msra.mxu0 %v6042_v21  ;;  %4380 = vmatprep.subr.bf16.mxu1 %v6047_v8  ;;  %v6138_v21 = vld [vmem:[%s7055_s20 + $0xba4] ss:$8 sps:$4 sm:$0xff]   ;;  %v6133_v8 = vld [vmem:[%s7055_s20 + $0x5a0] ss:$8 sps:$4 sm:$0xff]  }
 0x212   : > { %4626 = vmatprep.subr.bf16.mxu0 %v6050_v22  ;;  %v6136_v22 = vld [vmem:[%s7055_s20 + $0xba0] ss:$8 sps:$4 sm:$0xff]  }
 0x214   : > { %4381 = vmatpush1.bf16.msra.mxu1 %v6045_v9  ;;  %v6141_v9 = vld [vmem:[%s7055_s20 + $0x5b4] ss:$8 sps:$4 sm:$0xff]  }
 0x215   : > { %4627 = vmatpush1.bf16.msra.mxu0 %v6048_v23  ;;  %4382 = vmatprep.subr.bf16.mxu1 %v6053_v24  ;;  %v6144_v23 = vld [vmem:[%s7055_s20 + $0xbb4] ss:$8 sps:$4 sm:$0xff]   ;;  %v6139_v24 = vld [vmem:[%s7055_s20 + $0x5b0] ss:$8 sps:$4 sm:$0xff]  }
 0x216   : > { %4628 = vmatprep.subr.bf16.mxu0 %v6056_v26  ;;  %v6142_v26 = vld [vmem:[%s7055_s20 + $0xbb0] ss:$8 sps:$4 sm:$0xff]  }
 0x218   : > { %4383 = vmatpush1.bf16.msra.mxu1 %v6051_v29  ;;  %v6147_v29 = vld [vmem:[%s7055_s20 + $0x5c4] ss:$8 sps:$4 sm:$0xff]  }
 0x219   : > { %4629 = vmatpush1.bf16.msra.mxu0 %v6054_v30  ;;  %4384 = vmatprep.subr.bf16.mxu1 %v6059_v32  ;;  %v6150_v30 = vld [vmem:[%s7055_s20 + $0xbc4] ss:$8 sps:$4 sm:$0xff]   ;;  %v6145_v32 = vld [vmem:[%s7055_s20 + $0x5c0] ss:$8 sps:$4 sm:$0xff]  }
 0x21a   : > { %4630 = vmatprep.subr.bf16.mxu0 %v6062_v33  ;;  %v6148_v33 = vld [vmem:[%s7055_s20 + $0xbc0] ss:$8 sps:$4 sm:$0xff]  }
 0x21c   : > { %4385 = vmatpush1.bf16.msra.mxu1 %v6057_v34  ;;  %v6153_v34 = vld [vmem:[%s7055_s20 + $0x5d4] ss:$8 sps:$4 sm:$0xff]  }
 0x21d   : > { %4631 = vmatpush1.bf16.msra.mxu0 %v6060_v25  ;;  %4386 = vmatprep.subr.bf16.mxu1 %v6065_v28  ;;  %v6156_v25 = vld [vmem:[%s7055_s20 + $0xbd4] ss:$8 sps:$4 sm:$0xff]   ;;  %v6151_v28 = vld [vmem:[%s7055_s20 + $0x5d0] ss:$8 sps:$4 sm:$0xff]  }
 0x21e   : > { %4632 = vmatprep.subr.bf16.mxu0 %v6068_v35  ;;  %v6154_v35 = vld [vmem:[%s7055_s20 + $0xbd0] ss:$8 sps:$4 sm:$0xff]  }
 0x220   : > { %4387 = vmatpush1.bf16.msra.mxu1 %v6063_v36  ;;  %v6159_v36 = vld [vmem:[%s7055_s20 + $0x5e4] ss:$8 sps:$4 sm:$0xff]  }
 0x221   : > { %4633 = vmatpush1.bf16.msra.mxu0 %v6066_v37  ;;  %4397 = vmatprep.subr.bf16.mxu1 %v6073_v27  ;;  %v6162_v37 = vld [vmem:[%s7055_s20 + $0xbe4] ss:$8 sps:$4 sm:$0xff]   ;;  %v6157_v27 = vld [vmem:[%s7055_s20 + $0x5e0] ss:$8 sps:$4 sm:$0xff]  }
 0x222   : > { %4643 = vmatprep.subr.bf16.mxu0 %v6078_v40  ;;  %v6160_v40 = vld [vmem:[%s7055_s20 + $0xbe0] ss:$8 sps:$4 sm:$0xff]  }
 0x223   : > { %4389 = vmatmul.mubr.bf16.vlgmr.msra.gmra.mrb[0].mxu1 %v5090_v31  ;;  %v6165_v31 = vld [vmem:[%s7055_s20 + $0x5f4] ss:$8 sps:$4 sm:$0xff]  }
 0x224   : > { %4635 = vmatmul.mubr.bf16.vlgmr.msra.gmra.mrb[0].mxu0 %v5102_v41  ;;  %4398 = vmatpush1.bf16.msra.mxu1 %v6071_v44  ;;  %v6168_v41 = vld [vmem:[%s7055_s20 + $0xbf4] ss:$8 sps:$4 sm:$0xff]   ;;  %v6163_v44 = vld [vmem:[%s7055_s20 + $0x5f0] ss:$8 sps:$4 sm:$0xff]  }
 0x225   : > { %4644 = vmatpush1.bf16.msra.mxu0 %v6076_v38  ;;  %4399 = vmatprep.subr.bf16.mxu1 %v6081_v39  ;;  %v6166_v38 = vld [vmem:[%s7055_s20 + $0xbf0] ss:$8 sps:$4 sm:$0xff]  }
 0x226   : > { %4645 = vmatprep.subr.bf16.mxu0 %v6084_v45  ;;  %4429 = vmatprep.mubr.bf16.mxu1 %v5093_v46  ;;  %v5491_v39 = vld [vmem:[%s7533_s23 + $0x18] sm:$0x3f]  ;;  %v5493_v45 = vld [vmem:[%s7533_s23 + $0x28] sm:$0x3f]  ;;  %v5092_v46 = vcombine.low %v7458_v42, %v7458_v42 }
 0x227   : > { %4675 = vmatprep.mubr.bf16.mxu0 %v5105_v47  ;;  %v5104_v47 = vcombine.low %v7463_v43, %v7463_v43 }
 0x228   : > { %4400 = vmatpush1.bf16.msra.mxu1 %v6079_v48  ;;  %v5490_v48 = vld [vmem:[%s7533_s23 + $0x10] sm:$0x3f] }
 0x229   : > { %4646 = vmatpush1.bf16.msra.mxu0 %v6082_v49  ;;  %4401 = vmatprep.subr.bf16.mxu1 %v6087_v50  ;;  %v5492_v49 = vld [vmem:[%s7533_s23 + $0x20] sm:$0x3f]  ;;  %v4685_v50 = vld [vmem:[%s7533_s23 + $0x8] sm:$0x3f] }
 0x22a   : > { %4647 = vmatprep.subr.bf16.mxu0 %v6090_v51  ;;  %v5495_v51 = vld [vmem:[%s7533_s23 + $0x38] sm:$0x3f] }
 0x22c   : > { %4402 = vmatpush1.bf16.msra.mxu1 %v6085_v52 }
 0x22d   : > { %4648 = vmatpush1.bf16.msra.mxu0 %v6088_v53  ;;  %4403 = vmatprep.subr.bf16.mxu1 %v6093_v54 }
 0x22e   : > { %4649 = vmatprep.subr.bf16.mxu0 %v6096_v55 }
 0x230   : > { %4404 = vmatpush1.bf16.msra.mxu1 %v6091_v56 }
 0x231   : > { %4650 = vmatpush1.bf16.msra.mxu0 %v6094_v57  ;;  %4405 = vmatprep.subr.bf16.mxu1 %v6099_v58 }
 0x232   : > { %4651 = vmatprep.subr.bf16.mxu0 %v6102_v59 }
 0x234   : > { %4406 = vmatpush1.bf16.msra.mxu1 %v6097_v60 }
 0x235   : > { %4652 = vmatpush1.bf16.msra.mxu0 %v6100_v61  ;;  %4407 = vmatprep.subr.bf16.mxu1 %v6105_v62 }
 0x236   : > { %4653 = vmatprep.subr.bf16.mxu0 %v6108_v63  ;;  %v4684_v63 = vld [vmem:[%s7533_s23] sm:$0x3f] }
 0x238   : > { %4408 = vmatpush1.bf16.msra.mxu1 %v6103_v0 }
 0x239   : > { %4654 = vmatpush1.bf16.msra.mxu0 %v6106_v1  ;;  %4409 = vmatprep.subr.bf16.mxu1 %v6111_v2  ;;  %v5494_v1 = vld [vmem:[%s7533_s23 + $0x30] sm:$0x3f] }
 0x23a   : > { %4655 = vmatprep.subr.bf16.mxu0 %v6114_v3 }
 0x23c   : > { %4410 = vmatpush1.bf16.msra.mxu1 %v6109_v4 }
 0x23d   : > { %4656 = vmatpush1.bf16.msra.mxu0 %v6112_v5  ;;  %4411 = vmatprep.subr.bf16.mxu1 %v6117_v6 }
 0x23e   : > { %4657 = vmatprep.subr.bf16.mxu0 %v6120_v7 }
 0x240   : > { %4412 = vmatpush1.bf16.msra.mxu1 %v6115_v10 }
 0x241   : > { %4658 = vmatpush1.bf16.msra.mxu0 %v6118_v11  ;;  %4413 = vmatprep.subr.bf16.mxu1 %v6123_v12 }
 0x242   : > { %4659 = vmatprep.subr.bf16.mxu0 %v6126_v13 }
 0x244   : > { %4414 = vmatpush1.bf16.msra.mxu1 %v6121_v14 }
 0x245   : > { %4660 = vmatpush1.bf16.msra.mxu0 %v6124_v15  ;;  %4415 = vmatprep.subr.bf16.mxu1 %v6129_v16 }
 0x246   : > { %4661 = vmatprep.subr.bf16.mxu0 %v6132_v17 }
 0x248   : > { %4416 = vmatpush1.bf16.msra.mxu1 %v6127_v18 }
 0x249   : > { %4662 = vmatpush1.bf16.msra.mxu0 %v6130_v19  ;;  %4417 = vmatprep.subr.bf16.mxu1 %v6135_v20 }
 0x24a   : > { %4663 = vmatprep.subr.bf16.mxu0 %v6138_v21 }
 0x24c   : > { %4418 = vmatpush1.bf16.msra.mxu1 %v6133_v8 }
 0x24d   : > { %4664 = vmatpush1.bf16.msra.mxu0 %v6136_v22  ;;  %4419 = vmatprep.subr.bf16.mxu1 %v6141_v9 }
 0x24e   : > { %4665 = vmatprep.subr.bf16.mxu0 %v6144_v23 }
 0x250   : > { %4420 = vmatpush1.bf16.msra.mxu1 %v6139_v24 }
 0x251   : > { %4666 = vmatpush1.bf16.msra.mxu0 %v6142_v26  ;;  %4421 = vmatprep.subr.bf16.mxu1 %v6147_v29 }
 0x252   : > { %4667 = vmatprep.subr.bf16.mxu0 %v6150_v30 }
 0x254   : > { %4422 = vmatpush1.bf16.msra.mxu1 %v6145_v32 }
 0x255   : > { %4668 = vmatpush1.bf16.msra.mxu0 %v6148_v33  ;;  %4423 = vmatprep.subr.bf16.mxu1 %v6153_v34 }
 0x256   : > { %4669 = vmatprep.subr.bf16.mxu0 %v6156_v25 }
 0x258   : > { %4424 = vmatpush1.bf16.msra.mxu1 %v6151_v28 }
 0x259   : > { %4670 = vmatpush1.bf16.msra.mxu0 %v6154_v35  ;;  %4425 = vmatprep.subr.bf16.mxu1 %v6159_v36 }
 0x25a   : > { %4671 = vmatprep.subr.bf16.mxu0 %v6162_v37 }
 0x25c   : > { %4426 = vmatpush1.bf16.msra.mxu1 %v6157_v27 }
 0x25d   : > { %4672 = vmatpush1.bf16.msra.mxu0 %v6160_v40  ;;  %4427 = vmatprep.subr.bf16.mxu1 %v6165_v31 }
 0x25e   : > { %4673 = vmatprep.subr.bf16.mxu0 %v6168_v41 }
 0x260   : > { %4428 = vmatpush1.bf16.msra.mxu1 %v6163_v44 }
 0x261   : > { %4674 = vmatpush1.bf16.msra.mxu0 %v6166_v38  ;;  %4842 = vmatprep.subr.mxu1 %v5493_v45 }
 0x262   : > { %4695 = vmatprep.subr.mxu0 %v5491_v39 }
 0x263   : > { %4430 = vmatmul.mubr.bf16.vlgmr.msra.gmra.mrb[0].mxu1 %v5092_v46 }
 0x264   : > { %4676 = vmatmul.mubr.bf16.vlgmr.msra.gmra.mrb[0].mxu0 %v5104_v47 }
 0x269   : > { %4843 = vmatpush1.xpose.msra.mxu1 %v5492_v49 }
 0x26a   : > { %4696 = vmatpush1.xpose.msra.mxu0 %v5490_v48  ;;  %4920 = vmatprep.subr.mxu1 %v5495_v51 }
 0x26b   : > { %4765 = vmatprep.subr.mxu0 %v4685_v50 }
 0x336   : > { %v4431_v42 = vpop.f32.mrb[0].mxu1 }
 0x337   : > { %v4677_v52 = vpop.f32.mrb[0].mxu0  ;;  %v4433_v43 = vpop.f32.mrb[1].mxu1 }
 0x338   : > { %v5500_v53 = vadd.f32 %v4677_v52, %v4431_v42  ;;  %v4679_v54 = vpop.f32.mrb[1].mxu0  ;;  %v4435_v56 = vpop.f32.mrb[2].mxu1 }
 0x339   : > { %v5501_v55 = vadd.f32 %v4679_v54, %v4433_v43  ;;  %v4681_v57 = vpop.f32.mrb[2].mxu0  ;;  %v4436_v58 = vpop.f32.mrb[3].mxu1 }
 0x33a   : > { %v4682_v59 = vpop.f32.mrb[3].mxu0  ;;  %v4691_v62 = vrot.slane %v5500_v53, 2  ;;  %v4838_v0 = vrot.slane %v5500_v53, 4  ;;  %v4916_v3 = vrot.slane %v5500_v53, 6 }
 0x33b   : > { %v4692_v60 = vrot.slane %v5501_v55, 2  ;;  %v4839_v61 = vrot.slane %v5501_v55, 4  ;;  %v4917_v2 = vrot.slane %v5501_v55, 6 }
 0x33d   : > { %4759 = vmatprep.mubr.f32.mxu0 %v4692_v60  ;;  %4906 = vmatprep.mubr.f32.mxu1 %v4839_v61 }
 0x33e   : > { %4760 = vmatmul.mubr.f32.vlgmr.msra.gmra.mrb[4].mxu0 %v4691_v62  ;;  %4907 = vmatmul.mubr.f32.vlgmr.msra.gmra.mrb[4].mxu1 %v4838_v0 }
 0x33f   : > { %4766 = vmatpush1.xpose.msra.mxu0 %v4684_v63  ;;  %4921 = vmatpush1.xpose.msra.mxu1 %v5494_v1 }
 0x340   : > { %4829 = vmatprep.mubr.f32.mxu0 %v5501_v55  ;;  %4984 = vmatprep.mubr.f32.mxu1 %v4917_v2 }
 0x346   : > { %4830 = vmatmul.mubr.f32.vlgmr.msra.gmra.mrb[4].mxu0 %v5500_v53  ;;  %4985 = vmatmul.mubr.f32.vlgmr.msra.gmra.mrb[4].mxu1 %v4916_v3 }
 0x419   : > { %v4831_v4 = vpop.f32.mrb[4].mxu0  ;;  %v4986_v5 = vpop.f32.mrb[4].mxu1 }
 0x41a   : > { %v5502_v6 = vadd.f32 %v4986_v5, %v4831_v4  ;;  %v4833_v7 = vpop.f32.mrb[5].mxu0  ;;  %v4988_v10 = vpop.f32.mrb[5].mxu1 }
 0x41c   : > { %4992 = vst.msk [vmem:[%s1791_s24] sm:$0x3] %vm4991_vm0, %v5502_v6 }
 0x41d PF: > { %p10_p9 = scmp.ge.s32.totalorder %s6234_s16, 4   ;;  %s7569_s12 = smov %s6191_s13 }
 0x41e   : > { %s7570_s13 = smov %s6243_s19  ;;  %s7571_s14 = smov %s6234_s16 }
 0x41f   :  { %12 = sbr.rel (!%p10_p9) target bundleno = 2 (0x2), region = 139 }

</bundles_post_ra>
